<compile_context>
chip_gen: v5e
topology: v5e:2x2
jax: 0.10.0
libtpu: 0.0.40
codegen_flags: <defaults>
</compile_context>

<pallas_src>
import functools

import jax
import jax.numpy as jnp
from jax.experimental import pallas as pl
from jax.experimental.pallas import tpu as pltpu


def _gru_kernel(seq_len, hidden_dim,
                x_ref, w4x0_ref, w4h0_ref, b40_ref,
                w41_ref, b41_ref, wfc_ref, bfc_ref,
                y_ref):
    H = hidden_dim
    batch = x_ref.shape[1]

    # Hoist loop-invariant loads / broadcasts out of the unrolled time loop.
    w4x0 = jnp.broadcast_to(w4x0_ref[...], (batch, 4 * H))   # x-row weights
    b40 = jnp.broadcast_to(b40_ref[...], (batch, 4 * H))
    b41 = jnp.broadcast_to(b41_ref[...], (batch, 4 * H))
    w4h0 = w4h0_ref[...]                                     # (H, 4H)
    w41 = w41_ref[...]                                       # (2H, 4H)

    def gate_update(pre, h_prev):
        # pre columns: [r | z | i_n | h_n]  (PyTorch gate order r, z, n).
        r = jax.nn.sigmoid(pre[:, :H])
        z = jax.nn.sigmoid(pre[:, H:2 * H])
        n = jnp.tanh(pre[:, 2 * H:3 * H] + r * pre[:, 3 * H:])
        return (1.0 - z) * n + z * h_prev

    def step(t, carry):
        h1, h2 = carry
        x_t = x_ref[t]                                       # (batch, 1)
        # Layer 0: input projection is a broadcast multiply (input_dim == 1);
        # the hidden projection is a single fused 4-gate matmul.
        pre0 = (x_t * w4x0
                + jnp.dot(h1, w4h0, preferred_element_type=jnp.float32)
                + b40)
        h1 = gate_update(pre0, h1)
        # Layer 1: one fused matmul over the concatenated [h1, h2_prev].
        cat = jnp.concatenate([h1, h2], axis=-1)             # (batch, 2H)
        pre1 = (jnp.dot(cat, w41, preferred_element_type=jnp.float32)
                + b41)
        h2 = gate_update(pre1, h2)
        return h1, h2

    h0 = jnp.zeros((batch, H), jnp.float32)
    _, h2 = jax.lax.fori_loop(0, seq_len, step, (h0, h0), unroll=True)

    # Final linear layer on the last GRU output (gru_output[-1]).
    y_ref[...] = (jnp.dot(h2, wfc_ref[...], preferred_element_type=jnp.float32)
                  + bfc_ref[...])


def _fused_weights(params):
    """Build fused [r | z | i_n | h_n] weights / biases (once, outside kernel)."""
    H = params["w_hh_l0"].shape[1]
    f32 = jnp.float32

    wih0_t = params["w_ih_l0"].astype(f32).T       # (1, 3H)
    whh0_t = params["w_hh_l0"].astype(f32).T       # (H, 3H)
    wih1_t = params["w_ih_l1"].astype(f32).T       # (H, 3H)
    whh1_t = params["w_hh_l1"].astype(f32).T       # (H, 3H)
    bih0 = params["b_ih_l0"].astype(f32)
    bhh0 = params["b_hh_l0"].astype(f32)
    bih1 = params["b_ih_l1"].astype(f32)
    bhh1 = params["b_hh_l1"].astype(f32)

    def fuse_bias(bih, bhh):
        # r/z biases sum; the n-gate input/hidden biases must stay separate
        # because b_hh_n sits inside the r * (.) term.
        return jnp.concatenate(
            [bih[:2 * H] + bhh[:2 * H], bih[2 * H:], bhh[2 * H:]])[None, :]

    # Layer 0: x feeds [r, z, i_n], h feeds [r, z, h_n].
    w4x0 = jnp.concatenate([wih0_t, jnp.zeros((1, H), f32)], axis=1)          # (1, 4H)
    w4h0 = jnp.concatenate(
        [whh0_t[:, :2 * H], jnp.zeros((H, H), f32), whh0_t[:, 2 * H:]],
        axis=1)                                                               # (H, 4H)
    b40 = fuse_bias(bih0, bhh0)

    # Layer 1: K is the concatenation [h1 (input), h2 (hidden)].
    w41 = jnp.concatenate([
        jnp.concatenate([wih1_t, jnp.zeros((H, H), f32)], axis=1),            # h1 rows
        jnp.concatenate([whh1_t[:, :2 * H], jnp.zeros((H, H), f32),
                         whh1_t[:, 2 * H:]], axis=1),                         # h2 rows
    ], axis=0)                                                                # (2H, 4H)
    b41 = fuse_bias(bih1, bhh1)

    wfc_t = params["w_fc"].astype(f32).T            # (H, out)
    bfc = params["b_fc"].astype(f32)[None, :]       # (1, out)
    return w4x0, w4h0, b40, w41, b41, wfc_t, bfc


@jax.jit
def gru_forward(x, params):
    """x: (batch, seq_length) float32 -> (batch, output_dim) float32."""
    batch, seq_len = x.shape
    hidden_dim = params["w_hh_l0"].shape[1]
    output_dim = params["w_fc"].shape[0]

    # (seq, batch, input_dim=1), mirroring unsqueeze(0) + permute(2,1,0).
    xs = jnp.transpose(x)[:, :, None].astype(jnp.float32)

    operands = (xs,) + _fused_weights(params)

    def full_spec(arr):
        nd = arr.ndim
        return pl.BlockSpec(arr.shape, lambda i, _nd=nd: (0,) * _nd)

    kernel = functools.partial(_gru_kernel, seq_len, hidden_dim)

    y = pl.pallas_call(
        kernel,
        out_shape=jax.ShapeDtypeStruct((batch, output_dim), jnp.float32),
        grid=(1,),
        in_specs=[full_spec(a) for a in operands],
        out_specs=pl.BlockSpec((batch, output_dim), lambda i: (0, 0)),
        compiler_params=pltpu.CompilerParams(
            dimension_semantics=("arbitrary",)),
    )(*operands)
    return y


def gru_reference(x, params):
    """Pure-JAX reference matching torch.nn.GRU(num_layers=2) + Linear."""
    batch, seq_len = x.shape
    hidden_dim = params["w_hh_l0"].shape[1]
    xs = jnp.transpose(x)[:, :, None].astype(jnp.float32)

    def cell(xt, h, wih, whh, bih, bhh):
        gi = xt @ wih.T + bih
        gh = h @ whh.T + bhh
        i_r, i_z, i_n = jnp.split(gi, 3, axis=-1)
        h_r, h_z, h_n = jnp.split(gh, 3, axis=-1)
        r = jax.nn.sigmoid(i_r + h_r)
        z = jax.nn.sigmoid(i_z + h_z)
        n = jnp.tanh(i_n + r * h_n)
        return (1.0 - z) * n + z * h

    h1 = jnp.zeros((batch, hidden_dim), jnp.float32)
    h2 = jnp.zeros((batch, hidden_dim), jnp.float32)
    for t in range(seq_len):
        h1 = cell(xs[t], h1, params["w_ih_l0"], params["w_hh_l0"],
                  params["b_ih_l0"], params["b_hh_l0"])
        h2 = cell(h1, h2, params["w_ih_l1"], params["w_hh_l1"],
                  params["b_ih_l1"], params["b_hh_l1"])
    return h2 @ params["w_fc"].T + params["b_fc"]


def init_params(key, input_dim, hidden_dim, output_dim):
    """Deterministic init mimicking PyTorch's U(-1/sqrt(H), 1/sqrt(H))."""
    bound = 1.0 / float(hidden_dim) ** 0.5
    keys = jax.random.split(key, 10)

    def u(k, shape):
        return jax.random.uniform(k, shape, jnp.float32, -bound, bound)

    return {
        "w_ih_l0": u(keys[0], (3 * hidden_dim, input_dim)),
        "w_hh_l0": u(keys[1], (3 * hidden_dim, hidden_dim)),
        "b_ih_l0": u(keys[2], (3 * hidden_dim,)),
        "b_hh_l0": u(keys[3], (3 * hidden_dim,)),
        "w_ih_l1": u(keys[4], (3 * hidden_dim, hidden_dim)),
        "w_hh_l1": u(keys[5], (3 * hidden_dim, hidden_dim)),
        "b_ih_l1": u(keys[6], (3 * hidden_dim,)),
        "b_hh_l1": u(keys[7], (3 * hidden_dim,)),
        "w_fc": u(keys[8], (output_dim, hidden_dim)),
        "b_fc": u(keys[9], (output_dim,)),
    }


if __name__ == "__main__":
    batch, seq_len = 8, 16
    input_dim, hidden_dim, output_dim = 1, 32, 1   # forward() implies input_dim == 1

    key = jax.random.PRNGKey(0)
    kx, kp = jax.random.split(key)
    x = jax.random.normal(kx, (batch, seq_len), jnp.float32)
    params = init_params(kp, input_dim, hidden_dim, output_dim)

    y = jax.block_until_ready(gru_forward(x, params))
    y_ref = gru_reference(x, params)

    assert y.shape == (batch, output_dim)
    assert bool(jnp.allclose(y, y_ref, rtol=1e-4, atol=1e-4)), (y, y_ref)
    print("KERNEL_OK")
</pallas_src>

<mosaic_0001>
module attributes {stable_mosaic.version = 11 : i64} {
  func.func @_gru_kernel(%arg0: i32, %arg1: memref<16x8x1xf32, #tpu.memory_space<vmem>>, %arg2: memref<1x128xf32, #tpu.memory_space<vmem>>, %arg3: memref<32x128xf32, #tpu.memory_space<vmem>>, %arg4: memref<1x128xf32, #tpu.memory_space<vmem>>, %arg5: memref<64x128xf32, #tpu.memory_space<vmem>>, %arg6: memref<1x128xf32, #tpu.memory_space<vmem>>, %arg7: memref<32x1xf32, #tpu.memory_space<vmem>>, %arg8: memref<1x1xf32, #tpu.memory_space<vmem>>, %arg9: memref<8x1xf32, #tpu.memory_space<vmem>>) attributes {dimension_semantics = [#tpu.dimension_semantics<arbitrary>], iteration_bounds = array<i64: 1>, scalar_prefetch = 0 : i64, scratch_operands = 0 : i64, tpu.core_type = #tpu.core_type<tc>, window_params = [{pipeline_mode = #tpu.pipeline_mode<synchronous>, transform_indices = @transform_0, window_bounds = array<i64: 16, 8, 1>}, {pipeline_mode = #tpu.pipeline_mode<synchronous>, transform_indices = @transform_1, window_bounds = array<i64: 1, 128>}, {pipeline_mode = #tpu.pipeline_mode<synchronous>, transform_indices = @transform_2, window_bounds = array<i64: 32, 128>}, {pipeline_mode = #tpu.pipeline_mode<synchronous>, transform_indices = @transform_3, window_bounds = array<i64: 1, 128>}, {pipeline_mode = #tpu.pipeline_mode<synchronous>, transform_indices = @transform_4, window_bounds = array<i64: 64, 128>}, {pipeline_mode = #tpu.pipeline_mode<synchronous>, transform_indices = @transform_5, window_bounds = array<i64: 1, 128>}, {pipeline_mode = #tpu.pipeline_mode<synchronous>, transform_indices = @transform_6, window_bounds = array<i64: 32, 1>}, {pipeline_mode = #tpu.pipeline_mode<synchronous>, transform_indices = @transform_7, window_bounds = array<i64: 1, 1>}, {pipeline_mode = #tpu.pipeline_mode<synchronous>, transform_indices = @transform_8, window_bounds = array<i64: 8, 1>}]} {
    %c0 = arith.constant 0 : index
    %c0_0 = arith.constant 0 : index
    %0 = vector.load %arg2[%c0, %c0_0] : memref<1x128xf32, #tpu.memory_space<vmem>>, vector<1x128xf32>
    %1 = vector.shape_cast %0 : vector<1x128xf32> to vector<1x128xf32>
    %2 = vector.broadcast %1 : vector<1x128xf32> to vector<8x128xf32>
    %c0_1 = arith.constant 0 : index
    %c0_2 = arith.constant 0 : index
    %3 = vector.load %arg4[%c0_1, %c0_2] : memref<1x128xf32, #tpu.memory_space<vmem>>, vector<1x128xf32>
    %4 = vector.shape_cast %3 : vector<1x128xf32> to vector<1x128xf32>
    %5 = vector.broadcast %4 : vector<1x128xf32> to vector<8x128xf32>
    %c0_3 = arith.constant 0 : index
    %c0_4 = arith.constant 0 : index
    %6 = vector.load %arg6[%c0_3, %c0_4] : memref<1x128xf32, #tpu.memory_space<vmem>>, vector<1x128xf32>
    %7 = vector.shape_cast %6 : vector<1x128xf32> to vector<1x128xf32>
    %8 = vector.broadcast %7 : vector<1x128xf32> to vector<8x128xf32>
    %c0_5 = arith.constant 0 : index
    %c0_6 = arith.constant 0 : index
    %9 = vector.load %arg3[%c0_5, %c0_6] : memref<32x128xf32, #tpu.memory_space<vmem>>, vector<32x128xf32>
    %c0_7 = arith.constant 0 : index
    %c0_8 = arith.constant 0 : index
    %10 = vector.load %arg5[%c0_7, %c0_8] : memref<64x128xf32, #tpu.memory_space<vmem>>, vector<64x128xf32>
    %cst = arith.constant 0.000000e+00 : f32
    %11 = vector.broadcast %cst : f32 to vector<8x32xf32>
    %c0_i32 = arith.constant 0 : i32
    %12 = arith.index_cast %c0_i32 : i32 to index
    %c0_9 = arith.constant 0 : index
    %c0_10 = arith.constant 0 : index
    %13 = vector.load %arg1[%12, %c0_9, %c0_10] : memref<16x8x1xf32, #tpu.memory_space<vmem>>, vector<1x8x1xf32>
    %14 = vector.shape_cast %13 : vector<1x8x1xf32> to vector<8x1xf32>
    %15 = vector.broadcast %14 : vector<8x1xf32> to vector<8x128xf32>
    %16 = arith.mulf %15, %2 : vector<8x128xf32>
    %cst_11 = arith.constant dense<0.000000e+00> : vector<8x128xf32>
    %17 = tpu.matmul %11, %9, %cst_11 {dimension_numbers = #tpu.dot_dimension_numbers<[1], [0], [0], [1], [0, 0, 1, 1], [], []>} : vector<8x32xf32>, vector<32x128xf32>, vector<8x128xf32> -> vector<8x128xf32>
    %18 = arith.addf %16, %17 : vector<8x128xf32>
    %19 = arith.addf %18, %5 : vector<8x128xf32>
    %20 = vector.extract_strided_slice %19 {offsets = [0, 0], sizes = [8, 32], strides = [1, 1]} : vector<8x128xf32> to vector<8x32xf32>
    %21 = arith.negf %20 : vector<8x32xf32>
    %22 = math.exp %21 : vector<8x32xf32>
    %cst_12 = arith.constant 1.000000e+00 : f32
    %23 = vector.broadcast %cst_12 : f32 to vector<8x32xf32>
    %24 = arith.addf %23, %22 : vector<8x32xf32>
    %25 = arith.divf %23, %24 : vector<8x32xf32>
    %26 = vector.extract_strided_slice %19 {offsets = [0, 32], sizes = [8, 32], strides = [1, 1]} : vector<8x128xf32> to vector<8x32xf32>
    %27 = arith.negf %26 : vector<8x32xf32>
    %28 = math.exp %27 : vector<8x32xf32>
    %cst_13 = arith.constant 1.000000e+00 : f32
    %29 = vector.broadcast %cst_13 : f32 to vector<8x32xf32>
    %30 = arith.addf %29, %28 : vector<8x32xf32>
    %31 = arith.divf %29, %30 : vector<8x32xf32>
    %32 = vector.extract_strided_slice %19 {offsets = [0, 64], sizes = [8, 32], strides = [1, 1]} : vector<8x128xf32> to vector<8x32xf32>
    %33 = vector.extract_strided_slice %19 {offsets = [0, 96], sizes = [8, 32], strides = [1, 1]} : vector<8x128xf32> to vector<8x32xf32>
    %34 = arith.mulf %25, %33 : vector<8x32xf32>
    %35 = arith.addf %32, %34 : vector<8x32xf32>
    %36 = math.tanh %35 : vector<8x32xf32>
    %cst_14 = arith.constant 1.000000e+00 : f32
    %37 = vector.broadcast %cst_14 : f32 to vector<8x32xf32>
    %38 = arith.subf %37, %31 : vector<8x32xf32>
    %39 = arith.mulf %38, %36 : vector<8x32xf32>
    %40 = arith.mulf %31, %11 : vector<8x32xf32>
    %41 = arith.addf %39, %40 : vector<8x32xf32>
    %42 = tpu.concatenate %41, %11 in 1 : vector<8x32xf32>, vector<8x32xf32> -> vector<8x64xf32>
    %cst_15 = arith.constant dense<0.000000e+00> : vector<8x128xf32>
    %43 = tpu.matmul %42, %10, %cst_15 {dimension_numbers = #tpu.dot_dimension_numbers<[1], [0], [0], [1], [0, 0, 1, 1], [], []>} : vector<8x64xf32>, vector<64x128xf32>, vector<8x128xf32> -> vector<8x128xf32>
    %44 = arith.addf %43, %8 : vector<8x128xf32>
    %45 = vector.extract_strided_slice %44 {offsets = [0, 0], sizes = [8, 32], strides = [1, 1]} : vector<8x128xf32> to vector<8x32xf32>
    %46 = arith.negf %45 : vector<8x32xf32>
    %47 = math.exp %46 : vector<8x32xf32>
    %cst_16 = arith.constant 1.000000e+00 : f32
    %48 = vector.broadcast %cst_16 : f32 to vector<8x32xf32>
    %49 = arith.addf %48, %47 : vector<8x32xf32>
    %50 = arith.divf %48, %49 : vector<8x32xf32>
    %51 = vector.extract_strided_slice %44 {offsets = [0, 32], sizes = [8, 32], strides = [1, 1]} : vector<8x128xf32> to vector<8x32xf32>
    %52 = arith.negf %51 : vector<8x32xf32>
    %53 = math.exp %52 : vector<8x32xf32>
    %cst_17 = arith.constant 1.000000e+00 : f32
    %54 = vector.broadcast %cst_17 : f32 to vector<8x32xf32>
    %55 = arith.addf %54, %53 : vector<8x32xf32>
    %56 = arith.divf %54, %55 : vector<8x32xf32>
    %57 = vector.extract_strided_slice %44 {offsets = [0, 64], sizes = [8, 32], strides = [1, 1]} : vector<8x128xf32> to vector<8x32xf32>
    %58 = vector.extract_strided_slice %44 {offsets = [0, 96], sizes = [8, 32], strides = [1, 1]} : vector<8x128xf32> to vector<8x32xf32>
    %59 = arith.mulf %50, %58 : vector<8x32xf32>
    %60 = arith.addf %57, %59 : vector<8x32xf32>
    %61 = math.tanh %60 : vector<8x32xf32>
    %cst_18 = arith.constant 1.000000e+00 : f32
    %62 = vector.broadcast %cst_18 : f32 to vector<8x32xf32>
    %63 = arith.subf %62, %56 : vector<8x32xf32>
    %64 = arith.mulf %63, %61 : vector<8x32xf32>
    %65 = arith.mulf %56, %11 : vector<8x32xf32>
    %66 = arith.addf %64, %65 : vector<8x32xf32>
    %c1_i32 = arith.constant 1 : i32
    %67 = arith.index_cast %c1_i32 : i32 to index
    %c0_19 = arith.constant 0 : index
    %c0_20 = arith.constant 0 : index
    %68 = vector.load %arg1[%67, %c0_19, %c0_20] : memref<16x8x1xf32, #tpu.memory_space<vmem>>, vector<1x8x1xf32>
    %69 = vector.shape_cast %68 : vector<1x8x1xf32> to vector<8x1xf32>
    %70 = vector.broadcast %69 : vector<8x1xf32> to vector<8x128xf32>
    %71 = arith.mulf %70, %2 : vector<8x128xf32>
    %cst_21 = arith.constant dense<0.000000e+00> : vector<8x128xf32>
    %72 = tpu.matmul %41, %9, %cst_21 {dimension_numbers = #tpu.dot_dimension_numbers<[1], [0], [0], [1], [0, 0, 1, 1], [], []>} : vector<8x32xf32>, vector<32x128xf32>, vector<8x128xf32> -> vector<8x128xf32>
    %73 = arith.addf %71, %72 : vector<8x128xf32>
    %74 = arith.addf %73, %5 : vector<8x128xf32>
    %75 = vector.extract_strided_slice %74 {offsets = [0, 0], sizes = [8, 32], strides = [1, 1]} : vector<8x128xf32> to vector<8x32xf32>
    %76 = arith.negf %75 : vector<8x32xf32>
    %77 = math.exp %76 : vector<8x32xf32>
    %cst_22 = arith.constant 1.000000e+00 : f32
    %78 = vector.broadcast %cst_22 : f32 to vector<8x32xf32>
    %79 = arith.addf %78, %77 : vector<8x32xf32>
    %80 = arith.divf %78, %79 : vector<8x32xf32>
    %81 = vector.extract_strided_slice %74 {offsets = [0, 32], sizes = [8, 32], strides = [1, 1]} : vector<8x128xf32> to vector<8x32xf32>
    %82 = arith.negf %81 : vector<8x32xf32>
    %83 = math.exp %82 : vector<8x32xf32>
    %cst_23 = arith.constant 1.000000e+00 : f32
    %84 = vector.broadcast %cst_23 : f32 to vector<8x32xf32>
    %85 = arith.addf %84, %83 : vector<8x32xf32>
    %86 = arith.divf %84, %85 : vector<8x32xf32>
    %87 = vector.extract_strided_slice %74 {offsets = [0, 64], sizes = [8, 32], strides = [1, 1]} : vector<8x128xf32> to vector<8x32xf32>
    %88 = vector.extract_strided_slice %74 {offsets = [0, 96], sizes = [8, 32], strides = [1, 1]} : vector<8x128xf32> to vector<8x32xf32>
    %89 = arith.mulf %80, %88 : vector<8x32xf32>
    %90 = arith.addf %87, %89 : vector<8x32xf32>
    %91 = math.tanh %90 : vector<8x32xf32>
    %cst_24 = arith.constant 1.000000e+00 : f32
    %92 = vector.broadcast %cst_24 : f32 to vector<8x32xf32>
    %93 = arith.subf %92, %86 : vector<8x32xf32>
    %94 = arith.mulf %93, %91 : vector<8x32xf32>
    %95 = arith.mulf %86, %41 : vector<8x32xf32>
    %96 = arith.addf %94, %95 : vector<8x32xf32>
    %97 = tpu.concatenate %96, %66 in 1 : vector<8x32xf32>, vector<8x32xf32> -> vector<8x64xf32>
    %cst_25 = arith.constant dense<0.000000e+00> : vector<8x128xf32>
    %98 = tpu.matmul %97, %10, %cst_25 {dimension_numbers = #tpu.dot_dimension_numbers<[1], [0], [0], [1], [0, 0, 1, 1], [], []>} : vector<8x64xf32>, vector<64x128xf32>, vector<8x128xf32> -> vector<8x128xf32>
    %99 = arith.addf %98, %8 : vector<8x128xf32>
    %100 = vector.extract_strided_slice %99 {offsets = [0, 0], sizes = [8, 32], strides = [1, 1]} : vector<8x128xf32> to vector<8x32xf32>
    %101 = arith.negf %100 : vector<8x32xf32>
    %102 = math.exp %101 : vector<8x32xf32>
    %cst_26 = arith.constant 1.000000e+00 : f32
    %103 = vector.broadcast %cst_26 : f32 to vector<8x32xf32>
    %104 = arith.addf %103, %102 : vector<8x32xf32>
    %105 = arith.divf %103, %104 : vector<8x32xf32>
    %106 = vector.extract_strided_slice %99 {offsets = [0, 32], sizes = [8, 32], strides = [1, 1]} : vector<8x128xf32> to vector<8x32xf32>
    %107 = arith.negf %106 : vector<8x32xf32>
    %108 = math.exp %107 : vector<8x32xf32>
    %cst_27 = arith.constant 1.000000e+00 : f32
    %109 = vector.broadcast %cst_27 : f32 to vector<8x32xf32>
    %110 = arith.addf %109, %108 : vector<8x32xf32>
    %111 = arith.divf %109, %110 : vector<8x32xf32>
    %112 = vector.extract_strided_slice %99 {offsets = [0, 64], sizes = [8, 32], strides = [1, 1]} : vector<8x128xf32> to vector<8x32xf32>
    %113 = vector.extract_strided_slice %99 {offsets = [0, 96], sizes = [8, 32], strides = [1, 1]} : vector<8x128xf32> to vector<8x32xf32>
    %114 = arith.mulf %105, %113 : vector<8x32xf32>
    %115 = arith.addf %112, %114 : vector<8x32xf32>
    %116 = math.tanh %115 : vector<8x32xf32>
    %cst_28 = arith.constant 1.000000e+00 : f32
    %117 = vector.broadcast %cst_28 : f32 to vector<8x32xf32>
    %118 = arith.subf %117, %111 : vector<8x32xf32>
    %119 = arith.mulf %118, %116 : vector<8x32xf32>
    %120 = arith.mulf %111, %66 : vector<8x32xf32>
    %121 = arith.addf %119, %120 : vector<8x32xf32>
    %c2_i32 = arith.constant 2 : i32
    %122 = arith.index_cast %c2_i32 : i32 to index
    %c0_29 = arith.constant 0 : index
    %c0_30 = arith.constant 0 : index
    %123 = vector.load %arg1[%122, %c0_29, %c0_30] : memref<16x8x1xf32, #tpu.memory_space<vmem>>, vector<1x8x1xf32>
    %124 = vector.shape_cast %123 : vector<1x8x1xf32> to vector<8x1xf32>
    %125 = vector.broadcast %124 : vector<8x1xf32> to vector<8x128xf32>
    %126 = arith.mulf %125, %2 : vector<8x128xf32>
    %cst_31 = arith.constant dense<0.000000e+00> : vector<8x128xf32>
    %127 = tpu.matmul %96, %9, %cst_31 {dimension_numbers = #tpu.dot_dimension_numbers<[1], [0], [0], [1], [0, 0, 1, 1], [], []>} : vector<8x32xf32>, vector<32x128xf32>, vector<8x128xf32> -> vector<8x128xf32>
    %128 = arith.addf %126, %127 : vector<8x128xf32>
    %129 = arith.addf %128, %5 : vector<8x128xf32>
    %130 = vector.extract_strided_slice %129 {offsets = [0, 0], sizes = [8, 32], strides = [1, 1]} : vector<8x128xf32> to vector<8x32xf32>
    %131 = arith.negf %130 : vector<8x32xf32>
    %132 = math.exp %131 : vector<8x32xf32>
    %cst_32 = arith.constant 1.000000e+00 : f32
    %133 = vector.broadcast %cst_32 : f32 to vector<8x32xf32>
    %134 = arith.addf %133, %132 : vector<8x32xf32>
    %135 = arith.divf %133, %134 : vector<8x32xf32>
    %136 = vector.extract_strided_slice %129 {offsets = [0, 32], sizes = [8, 32], strides = [1, 1]} : vector<8x128xf32> to vector<8x32xf32>
    %137 = arith.negf %136 : vector<8x32xf32>
    %138 = math.exp %137 : vector<8x32xf32>
    %cst_33 = arith.constant 1.000000e+00 : f32
    %139 = vector.broadcast %cst_33 : f32 to vector<8x32xf32>
    %140 = arith.addf %139, %138 : vector<8x32xf32>
    %141 = arith.divf %139, %140 : vector<8x32xf32>
    %142 = vector.extract_strided_slice %129 {offsets = [0, 64], sizes = [8, 32], strides = [1, 1]} : vector<8x128xf32> to vector<8x32xf32>
    %143 = vector.extract_strided_slice %129 {offsets = [0, 96], sizes = [8, 32], strides = [1, 1]} : vector<8x128xf32> to vector<8x32xf32>
    %144 = arith.mulf %135, %143 : vector<8x32xf32>
    %145 = arith.addf %142, %144 : vector<8x32xf32>
    %146 = math.tanh %145 : vector<8x32xf32>
    %cst_34 = arith.constant 1.000000e+00 : f32
    %147 = vector.broadcast %cst_34 : f32 to vector<8x32xf32>
    %148 = arith.subf %147, %141 : vector<8x32xf32>
    %149 = arith.mulf %148, %146 : vector<8x32xf32>
    %150 = arith.mulf %141, %96 : vector<8x32xf32>
    %151 = arith.addf %149, %150 : vector<8x32xf32>
    %152 = tpu.concatenate %151, %121 in 1 : vector<8x32xf32>, vector<8x32xf32> -> vector<8x64xf32>
    %cst_35 = arith.constant dense<0.000000e+00> : vector<8x128xf32>
    %153 = tpu.matmul %152, %10, %cst_35 {dimension_numbers = #tpu.dot_dimension_numbers<[1], [0], [0], [1], [0, 0, 1, 1], [], []>} : vector<8x64xf32>, vector<64x128xf32>, vector<8x128xf32> -> vector<8x128xf32>
    %154 = arith.addf %153, %8 : vector<8x128xf32>
    %155 = vector.extract_strided_slice %154 {offsets = [0, 0], sizes = [8, 32], strides = [1, 1]} : vector<8x128xf32> to vector<8x32xf32>
    %156 = arith.negf %155 : vector<8x32xf32>
    %157 = math.exp %156 : vector<8x32xf32>
    %cst_36 = arith.constant 1.000000e+00 : f32
    %158 = vector.broadcast %cst_36 : f32 to vector<8x32xf32>
    %159 = arith.addf %158, %157 : vector<8x32xf32>
    %160 = arith.divf %158, %159 : vector<8x32xf32>
    %161 = vector.extract_strided_slice %154 {offsets = [0, 32], sizes = [8, 32], strides = [1, 1]} : vector<8x128xf32> to vector<8x32xf32>
    %162 = arith.negf %161 : vector<8x32xf32>
    %163 = math.exp %162 : vector<8x32xf32>
    %cst_37 = arith.constant 1.000000e+00 : f32
    %164 = vector.broadcast %cst_37 : f32 to vector<8x32xf32>
    %165 = arith.addf %164, %163 : vector<8x32xf32>
    %166 = arith.divf %164, %165 : vector<8x32xf32>
    %167 = vector.extract_strided_slice %154 {offsets = [0, 64], sizes = [8, 32], strides = [1, 1]} : vector<8x128xf32> to vector<8x32xf32>
    %168 = vector.extract_strided_slice %154 {offsets = [0, 96], sizes = [8, 32], strides = [1, 1]} : vector<8x128xf32> to vector<8x32xf32>
    %169 = arith.mulf %160, %168 : vector<8x32xf32>
    %170 = arith.addf %167, %169 : vector<8x32xf32>
    %171 = math.tanh %170 : vector<8x32xf32>
    %cst_38 = arith.constant 1.000000e+00 : f32
    %172 = vector.broadcast %cst_38 : f32 to vector<8x32xf32>
    %173 = arith.subf %172, %166 : vector<8x32xf32>
    %174 = arith.mulf %173, %171 : vector<8x32xf32>
    %175 = arith.mulf %166, %121 : vector<8x32xf32>
    %176 = arith.addf %174, %175 : vector<8x32xf32>
    %c3_i32 = arith.constant 3 : i32
    %177 = arith.index_cast %c3_i32 : i32 to index
    %c0_39 = arith.constant 0 : index
    %c0_40 = arith.constant 0 : index
    %178 = vector.load %arg1[%177, %c0_39, %c0_40] : memref<16x8x1xf32, #tpu.memory_space<vmem>>, vector<1x8x1xf32>
    %179 = vector.shape_cast %178 : vector<1x8x1xf32> to vector<8x1xf32>
    %180 = vector.broadcast %179 : vector<8x1xf32> to vector<8x128xf32>
    %181 = arith.mulf %180, %2 : vector<8x128xf32>
    %cst_41 = arith.constant dense<0.000000e+00> : vector<8x128xf32>
    %182 = tpu.matmul %151, %9, %cst_41 {dimension_numbers = #tpu.dot_dimension_numbers<[1], [0], [0], [1], [0, 0, 1, 1], [], []>} : vector<8x32xf32>, vector<32x128xf32>, vector<8x128xf32> -> vector<8x128xf32>
    %183 = arith.addf %181, %182 : vector<8x128xf32>
    %184 = arith.addf %183, %5 : vector<8x128xf32>
    %185 = vector.extract_strided_slice %184 {offsets = [0, 0], sizes = [8, 32], strides = [1, 1]} : vector<8x128xf32> to vector<8x32xf32>
    %186 = arith.negf %185 : vector<8x32xf32>
    %187 = math.exp %186 : vector<8x32xf32>
    %cst_42 = arith.constant 1.000000e+00 : f32
    %188 = vector.broadcast %cst_42 : f32 to vector<8x32xf32>
    %189 = arith.addf %188, %187 : vector<8x32xf32>
    %190 = arith.divf %188, %189 : vector<8x32xf32>
    %191 = vector.extract_strided_slice %184 {offsets = [0, 32], sizes = [8, 32], strides = [1, 1]} : vector<8x128xf32> to vector<8x32xf32>
    %192 = arith.negf %191 : vector<8x32xf32>
    %193 = math.exp %192 : vector<8x32xf32>
    %cst_43 = arith.constant 1.000000e+00 : f32
    %194 = vector.broadcast %cst_43 : f32 to vector<8x32xf32>
    %195 = arith.addf %194, %193 : vector<8x32xf32>
    %196 = arith.divf %194, %195 : vector<8x32xf32>
    %197 = vector.extract_strided_slice %184 {offsets = [0, 64], sizes = [8, 32], strides = [1, 1]} : vector<8x128xf32> to vector<8x32xf32>
    %198 = vector.extract_strided_slice %184 {offsets = [0, 96], sizes = [8, 32], strides = [1, 1]} : vector<8x128xf32> to vector<8x32xf32>
    %199 = arith.mulf %190, %198 : vector<8x32xf32>
    %200 = arith.addf %197, %199 : vector<8x32xf32>
    %201 = math.tanh %200 : vector<8x32xf32>
    %cst_44 = arith.constant 1.000000e+00 : f32
    %202 = vector.broadcast %cst_44 : f32 to vector<8x32xf32>
    %203 = arith.subf %202, %196 : vector<8x32xf32>
    %204 = arith.mulf %203, %201 : vector<8x32xf32>
    %205 = arith.mulf %196, %151 : vector<8x32xf32>
    %206 = arith.addf %204, %205 : vector<8x32xf32>
    %207 = tpu.concatenate %206, %176 in 1 : vector<8x32xf32>, vector<8x32xf32> -> vector<8x64xf32>
    %cst_45 = arith.constant dense<0.000000e+00> : vector<8x128xf32>
    %208 = tpu.matmul %207, %10, %cst_45 {dimension_numbers = #tpu.dot_dimension_numbers<[1], [0], [0], [1], [0, 0, 1, 1], [], []>} : vector<8x64xf32>, vector<64x128xf32>, vector<8x128xf32> -> vector<8x128xf32>
    %209 = arith.addf %208, %8 : vector<8x128xf32>
    %210 = vector.extract_strided_slice %209 {offsets = [0, 0], sizes = [8, 32], strides = [1, 1]} : vector<8x128xf32> to vector<8x32xf32>
    %211 = arith.negf %210 : vector<8x32xf32>
    %212 = math.exp %211 : vector<8x32xf32>
    %cst_46 = arith.constant 1.000000e+00 : f32
    %213 = vector.broadcast %cst_46 : f32 to vector<8x32xf32>
    %214 = arith.addf %213, %212 : vector<8x32xf32>
    %215 = arith.divf %213, %214 : vector<8x32xf32>
    %216 = vector.extract_strided_slice %209 {offsets = [0, 32], sizes = [8, 32], strides = [1, 1]} : vector<8x128xf32> to vector<8x32xf32>
    %217 = arith.negf %216 : vector<8x32xf32>
    %218 = math.exp %217 : vector<8x32xf32>
    %cst_47 = arith.constant 1.000000e+00 : f32
    %219 = vector.broadcast %cst_47 : f32 to vector<8x32xf32>
    %220 = arith.addf %219, %218 : vector<8x32xf32>
    %221 = arith.divf %219, %220 : vector<8x32xf32>
    %222 = vector.extract_strided_slice %209 {offsets = [0, 64], sizes = [8, 32], strides = [1, 1]} : vector<8x128xf32> to vector<8x32xf32>
    %223 = vector.extract_strided_slice %209 {offsets = [0, 96], sizes = [8, 32], strides = [1, 1]} : vector<8x128xf32> to vector<8x32xf32>
    %224 = arith.mulf %215, %223 : vector<8x32xf32>
    %225 = arith.addf %222, %224 : vector<8x32xf32>
    %226 = math.tanh %225 : vector<8x32xf32>
    %cst_48 = arith.constant 1.000000e+00 : f32
    %227 = vector.broadcast %cst_48 : f32 to vector<8x32xf32>
    %228 = arith.subf %227, %221 : vector<8x32xf32>
    %229 = arith.mulf %228, %226 : vector<8x32xf32>
    %230 = arith.mulf %221, %176 : vector<8x32xf32>
    %231 = arith.addf %229, %230 : vector<8x32xf32>
    %c4_i32 = arith.constant 4 : i32
    %232 = arith.index_cast %c4_i32 : i32 to index
    %c0_49 = arith.constant 0 : index
    %c0_50 = arith.constant 0 : index
    %233 = vector.load %arg1[%232, %c0_49, %c0_50] : memref<16x8x1xf32, #tpu.memory_space<vmem>>, vector<1x8x1xf32>
    %234 = vector.shape_cast %233 : vector<1x8x1xf32> to vector<8x1xf32>
    %235 = vector.broadcast %234 : vector<8x1xf32> to vector<8x128xf32>
    %236 = arith.mulf %235, %2 : vector<8x128xf32>
    %cst_51 = arith.constant dense<0.000000e+00> : vector<8x128xf32>
    %237 = tpu.matmul %206, %9, %cst_51 {dimension_numbers = #tpu.dot_dimension_numbers<[1], [0], [0], [1], [0, 0, 1, 1], [], []>} : vector<8x32xf32>, vector<32x128xf32>, vector<8x128xf32> -> vector<8x128xf32>
    %238 = arith.addf %236, %237 : vector<8x128xf32>
    %239 = arith.addf %238, %5 : vector<8x128xf32>
    %240 = vector.extract_strided_slice %239 {offsets = [0, 0], sizes = [8, 32], strides = [1, 1]} : vector<8x128xf32> to vector<8x32xf32>
    %241 = arith.negf %240 : vector<8x32xf32>
    %242 = math.exp %241 : vector<8x32xf32>
    %cst_52 = arith.constant 1.000000e+00 : f32
    %243 = vector.broadcast %cst_52 : f32 to vector<8x32xf32>
    %244 = arith.addf %243, %242 : vector<8x32xf32>
    %245 = arith.divf %243, %244 : vector<8x32xf32>
    %246 = vector.extract_strided_slice %239 {offsets = [0, 32], sizes = [8, 32], strides = [1, 1]} : vector<8x128xf32> to vector<8x32xf32>
    %247 = arith.negf %246 : vector<8x32xf32>
    %248 = math.exp %247 : vector<8x32xf32>
    %cst_53 = arith.constant 1.000000e+00 : f32
    %249 = vector.broadcast %cst_53 : f32 to vector<8x32xf32>
    %250 = arith.addf %249, %248 : vector<8x32xf32>
    %251 = arith.divf %249, %250 : vector<8x32xf32>
    %252 = vector.extract_strided_slice %239 {offsets = [0, 64], sizes = [8, 32], strides = [1, 1]} : vector<8x128xf32> to vector<8x32xf32>
    %253 = vector.extract_strided_slice %239 {offsets = [0, 96], sizes = [8, 32], strides = [1, 1]} : vector<8x128xf32> to vector<8x32xf32>
    %254 = arith.mulf %245, %253 : vector<8x32xf32>
    %255 = arith.addf %252, %254 : vector<8x32xf32>
    %256 = math.tanh %255 : vector<8x32xf32>
    %cst_54 = arith.constant 1.000000e+00 : f32
    %257 = vector.broadcast %cst_54 : f32 to vector<8x32xf32>
    %258 = arith.subf %257, %251 : vector<8x32xf32>
    %259 = arith.mulf %258, %256 : vector<8x32xf32>
    %260 = arith.mulf %251, %206 : vector<8x32xf32>
    %261 = arith.addf %259, %260 : vector<8x32xf32>
    %262 = tpu.concatenate %261, %231 in 1 : vector<8x32xf32>, vector<8x32xf32> -> vector<8x64xf32>
    %cst_55 = arith.constant dense<0.000000e+00> : vector<8x128xf32>
    %263 = tpu.matmul %262, %10, %cst_55 {dimension_numbers = #tpu.dot_dimension_numbers<[1], [0], [0], [1], [0, 0, 1, 1], [], []>} : vector<8x64xf32>, vector<64x128xf32>, vector<8x128xf32> -> vector<8x128xf32>
    %264 = arith.addf %263, %8 : vector<8x128xf32>
    %265 = vector.extract_strided_slice %264 {offsets = [0, 0], sizes = [8, 32], strides = [1, 1]} : vector<8x128xf32> to vector<8x32xf32>
    %266 = arith.negf %265 : vector<8x32xf32>
    %267 = math.exp %266 : vector<8x32xf32>
    %cst_56 = arith.constant 1.000000e+00 : f32
    %268 = vector.broadcast %cst_56 : f32 to vector<8x32xf32>
    %269 = arith.addf %268, %267 : vector<8x32xf32>
    %270 = arith.divf %268, %269 : vector<8x32xf32>
    %271 = vector.extract_strided_slice %264 {offsets = [0, 32], sizes = [8, 32], strides = [1, 1]} : vector<8x128xf32> to vector<8x32xf32>
    %272 = arith.negf %271 : vector<8x32xf32>
    %273 = math.exp %272 : vector<8x32xf32>
    %cst_57 = arith.constant 1.000000e+00 : f32
    %274 = vector.broadcast %cst_57 : f32 to vector<8x32xf32>
    %275 = arith.addf %274, %273 : vector<8x32xf32>
    %276 = arith.divf %274, %275 : vector<8x32xf32>
    %277 = vector.extract_strided_slice %264 {offsets = [0, 64], sizes = [8, 32], strides = [1, 1]} : vector<8x128xf32> to vector<8x32xf32>
    %278 = vector.extract_strided_slice %264 {offsets = [0, 96], sizes = [8, 32], strides = [1, 1]} : vector<8x128xf32> to vector<8x32xf32>
    %279 = arith.mulf %270, %278 : vector<8x32xf32>
    %280 = arith.addf %277, %279 : vector<8x32xf32>
    %281 = math.tanh %280 : vector<8x32xf32>
    %cst_58 = arith.constant 1.000000e+00 : f32
    %282 = vector.broadcast %cst_58 : f32 to vector<8x32xf32>
    %283 = arith.subf %282, %276 : vector<8x32xf32>
    %284 = arith.mulf %283, %281 : vector<8x32xf32>
    %285 = arith.mulf %276, %231 : vector<8x32xf32>
    %286 = arith.addf %284, %285 : vector<8x32xf32>
    %c5_i32 = arith.constant 5 : i32
    %287 = arith.index_cast %c5_i32 : i32 to index
    %c0_59 = arith.constant 0 : index
    %c0_60 = arith.constant 0 : index
    %288 = vector.load %arg1[%287, %c0_59, %c0_60] : memref<16x8x1xf32, #tpu.memory_space<vmem>>, vector<1x8x1xf32>
    %289 = vector.shape_cast %288 : vector<1x8x1xf32> to vector<8x1xf32>
    %290 = vector.broadcast %289 : vector<8x1xf32> to vector<8x128xf32>
    %291 = arith.mulf %290, %2 : vector<8x128xf32>
    %cst_61 = arith.constant dense<0.000000e+00> : vector<8x128xf32>
    %292 = tpu.matmul %261, %9, %cst_61 {dimension_numbers = #tpu.dot_dimension_numbers<[1], [0], [0], [1], [0, 0, 1, 1], [], []>} : vector<8x32xf32>, vector<32x128xf32>, vector<8x128xf32> -> vector<8x128xf32>
    %293 = arith.addf %291, %292 : vector<8x128xf32>
    %294 = arith.addf %293, %5 : vector<8x128xf32>
    %295 = vector.extract_strided_slice %294 {offsets = [0, 0], sizes = [8, 32], strides = [1, 1]} : vector<8x128xf32> to vector<8x32xf32>
    %296 = arith.negf %295 : vector<8x32xf32>
    %297 = math.exp %296 : vector<8x32xf32>
    %cst_62 = arith.constant 1.000000e+00 : f32
    %298 = vector.broadcast %cst_62 : f32 to vector<8x32xf32>
    %299 = arith.addf %298, %297 : vector<8x32xf32>
    %300 = arith.divf %298, %299 : vector<8x32xf32>
    %301 = vector.extract_strided_slice %294 {offsets = [0, 32], sizes = [8, 32], strides = [1, 1]} : vector<8x128xf32> to vector<8x32xf32>
    %302 = arith.negf %301 : vector<8x32xf32>
    %303 = math.exp %302 : vector<8x32xf32>
    %cst_63 = arith.constant 1.000000e+00 : f32
    %304 = vector.broadcast %cst_63 : f32 to vector<8x32xf32>
    %305 = arith.addf %304, %303 : vector<8x32xf32>
    %306 = arith.divf %304, %305 : vector<8x32xf32>
    %307 = vector.extract_strided_slice %294 {offsets = [0, 64], sizes = [8, 32], strides = [1, 1]} : vector<8x128xf32> to vector<8x32xf32>
    %308 = vector.extract_strided_slice %294 {offsets = [0, 96], sizes = [8, 32], strides = [1, 1]} : vector<8x128xf32> to vector<8x32xf32>
    %309 = arith.mulf %300, %308 : vector<8x32xf32>
    %310 = arith.addf %307, %309 : vector<8x32xf32>
    %311 = math.tanh %310 : vector<8x32xf32>
    %cst_64 = arith.constant 1.000000e+00 : f32
    %312 = vector.broadcast %cst_64 : f32 to vector<8x32xf32>
    %313 = arith.subf %312, %306 : vector<8x32xf32>
    %314 = arith.mulf %313, %311 : vector<8x32xf32>
    %315 = arith.mulf %306, %261 : vector<8x32xf32>
    %316 = arith.addf %314, %315 : vector<8x32xf32>
    %317 = tpu.concatenate %316, %286 in 1 : vector<8x32xf32>, vector<8x32xf32> -> vector<8x64xf32>
    %cst_65 = arith.constant dense<0.000000e+00> : vector<8x128xf32>
    %318 = tpu.matmul %317, %10, %cst_65 {dimension_numbers = #tpu.dot_dimension_numbers<[1], [0], [0], [1], [0, 0, 1, 1], [], []>} : vector<8x64xf32>, vector<64x128xf32>, vector<8x128xf32> -> vector<8x128xf32>
    %319 = arith.addf %318, %8 : vector<8x128xf32>
    %320 = vector.extract_strided_slice %319 {offsets = [0, 0], sizes = [8, 32], strides = [1, 1]} : vector<8x128xf32> to vector<8x32xf32>
    %321 = arith.negf %320 : vector<8x32xf32>
    %322 = math.exp %321 : vector<8x32xf32>
    %cst_66 = arith.constant 1.000000e+00 : f32
    %323 = vector.broadcast %cst_66 : f32 to vector<8x32xf32>
    %324 = arith.addf %323, %322 : vector<8x32xf32>
    %325 = arith.divf %323, %324 : vector<8x32xf32>
    %326 = vector.extract_strided_slice %319 {offsets = [0, 32], sizes = [8, 32], strides = [1, 1]} : vector<8x128xf32> to vector<8x32xf32>
    %327 = arith.negf %326 : vector<8x32xf32>
    %328 = math.exp %327 : vector<8x32xf32>
    %cst_67 = arith.constant 1.000000e+00 : f32
    %329 = vector.broadcast %cst_67 : f32 to vector<8x32xf32>
    %330 = arith.addf %329, %328 : vector<8x32xf32>
    %331 = arith.divf %329, %330 : vector<8x32xf32>
    %332 = vector.extract_strided_slice %319 {offsets = [0, 64], sizes = [8, 32], strides = [1, 1]} : vector<8x128xf32> to vector<8x32xf32>
    %333 = vector.extract_strided_slice %319 {offsets = [0, 96], sizes = [8, 32], strides = [1, 1]} : vector<8x128xf32> to vector<8x32xf32>
    %334 = arith.mulf %325, %333 : vector<8x32xf32>
    %335 = arith.addf %332, %334 : vector<8x32xf32>
    %336 = math.tanh %335 : vector<8x32xf32>
    %cst_68 = arith.constant 1.000000e+00 : f32
    %337 = vector.broadcast %cst_68 : f32 to vector<8x32xf32>
    %338 = arith.subf %337, %331 : vector<8x32xf32>
    %339 = arith.mulf %338, %336 : vector<8x32xf32>
    %340 = arith.mulf %331, %286 : vector<8x32xf32>
    %341 = arith.addf %339, %340 : vector<8x32xf32>
    %c6_i32 = arith.constant 6 : i32
    %342 = arith.index_cast %c6_i32 : i32 to index
    %c0_69 = arith.constant 0 : index
    %c0_70 = arith.constant 0 : index
    %343 = vector.load %arg1[%342, %c0_69, %c0_70] : memref<16x8x1xf32, #tpu.memory_space<vmem>>, vector<1x8x1xf32>
    %344 = vector.shape_cast %343 : vector<1x8x1xf32> to vector<8x1xf32>
    %345 = vector.broadcast %344 : vector<8x1xf32> to vector<8x128xf32>
    %346 = arith.mulf %345, %2 : vector<8x128xf32>
    %cst_71 = arith.constant dense<0.000000e+00> : vector<8x128xf32>
    %347 = tpu.matmul %316, %9, %cst_71 {dimension_numbers = #tpu.dot_dimension_numbers<[1], [0], [0], [1], [0, 0, 1, 1], [], []>} : vector<8x32xf32>, vector<32x128xf32>, vector<8x128xf32> -> vector<8x128xf32>
    %348 = arith.addf %346, %347 : vector<8x128xf32>
    %349 = arith.addf %348, %5 : vector<8x128xf32>
    %350 = vector.extract_strided_slice %349 {offsets = [0, 0], sizes = [8, 32], strides = [1, 1]} : vector<8x128xf32> to vector<8x32xf32>
    %351 = arith.negf %350 : vector<8x32xf32>
    %352 = math.exp %351 : vector<8x32xf32>
    %cst_72 = arith.constant 1.000000e+00 : f32
    %353 = vector.broadcast %cst_72 : f32 to vector<8x32xf32>
    %354 = arith.addf %353, %352 : vector<8x32xf32>
    %355 = arith.divf %353, %354 : vector<8x32xf32>
    %356 = vector.extract_strided_slice %349 {offsets = [0, 32], sizes = [8, 32], strides = [1, 1]} : vector<8x128xf32> to vector<8x32xf32>
    %357 = arith.negf %356 : vector<8x32xf32>
    %358 = math.exp %357 : vector<8x32xf32>
    %cst_73 = arith.constant 1.000000e+00 : f32
    %359 = vector.broadcast %cst_73 : f32 to vector<8x32xf32>
    %360 = arith.addf %359, %358 : vector<8x32xf32>
    %361 = arith.divf %359, %360 : vector<8x32xf32>
    %362 = vector.extract_strided_slice %349 {offsets = [0, 64], sizes = [8, 32], strides = [1, 1]} : vector<8x128xf32> to vector<8x32xf32>
    %363 = vector.extract_strided_slice %349 {offsets = [0, 96], sizes = [8, 32], strides = [1, 1]} : vector<8x128xf32> to vector<8x32xf32>
    %364 = arith.mulf %355, %363 : vector<8x32xf32>
    %365 = arith.addf %362, %364 : vector<8x32xf32>
    %366 = math.tanh %365 : vector<8x32xf32>
    %cst_74 = arith.constant 1.000000e+00 : f32
    %367 = vector.broadcast %cst_74 : f32 to vector<8x32xf32>
    %368 = arith.subf %367, %361 : vector<8x32xf32>
    %369 = arith.mulf %368, %366 : vector<8x32xf32>
    %370 = arith.mulf %361, %316 : vector<8x32xf32>
    %371 = arith.addf %369, %370 : vector<8x32xf32>
    %372 = tpu.concatenate %371, %341 in 1 : vector<8x32xf32>, vector<8x32xf32> -> vector<8x64xf32>
    %cst_75 = arith.constant dense<0.000000e+00> : vector<8x128xf32>
    %373 = tpu.matmul %372, %10, %cst_75 {dimension_numbers = #tpu.dot_dimension_numbers<[1], [0], [0], [1], [0, 0, 1, 1], [], []>} : vector<8x64xf32>, vector<64x128xf32>, vector<8x128xf32> -> vector<8x128xf32>
    %374 = arith.addf %373, %8 : vector<8x128xf32>
    %375 = vector.extract_strided_slice %374 {offsets = [0, 0], sizes = [8, 32], strides = [1, 1]} : vector<8x128xf32> to vector<8x32xf32>
    %376 = arith.negf %375 : vector<8x32xf32>
    %377 = math.exp %376 : vector<8x32xf32>
    %cst_76 = arith.constant 1.000000e+00 : f32
    %378 = vector.broadcast %cst_76 : f32 to vector<8x32xf32>
    %379 = arith.addf %378, %377 : vector<8x32xf32>
    %380 = arith.divf %378, %379 : vector<8x32xf32>
    %381 = vector.extract_strided_slice %374 {offsets = [0, 32], sizes = [8, 32], strides = [1, 1]} : vector<8x128xf32> to vector<8x32xf32>
    %382 = arith.negf %381 : vector<8x32xf32>
    %383 = math.exp %382 : vector<8x32xf32>
    %cst_77 = arith.constant 1.000000e+00 : f32
    %384 = vector.broadcast %cst_77 : f32 to vector<8x32xf32>
    %385 = arith.addf %384, %383 : vector<8x32xf32>
    %386 = arith.divf %384, %385 : vector<8x32xf32>
    %387 = vector.extract_strided_slice %374 {offsets = [0, 64], sizes = [8, 32], strides = [1, 1]} : vector<8x128xf32> to vector<8x32xf32>
    %388 = vector.extract_strided_slice %374 {offsets = [0, 96], sizes = [8, 32], strides = [1, 1]} : vector<8x128xf32> to vector<8x32xf32>
    %389 = arith.mulf %380, %388 : vector<8x32xf32>
    %390 = arith.addf %387, %389 : vector<8x32xf32>
    %391 = math.tanh %390 : vector<8x32xf32>
    %cst_78 = arith.constant 1.000000e+00 : f32
    %392 = vector.broadcast %cst_78 : f32 to vector<8x32xf32>
    %393 = arith.subf %392, %386 : vector<8x32xf32>
    %394 = arith.mulf %393, %391 : vector<8x32xf32>
    %395 = arith.mulf %386, %341 : vector<8x32xf32>
    %396 = arith.addf %394, %395 : vector<8x32xf32>
    %c7_i32 = arith.constant 7 : i32
    %397 = arith.index_cast %c7_i32 : i32 to index
    %c0_79 = arith.constant 0 : index
    %c0_80 = arith.constant 0 : index
    %398 = vector.load %arg1[%397, %c0_79, %c0_80] : memref<16x8x1xf32, #tpu.memory_space<vmem>>, vector<1x8x1xf32>
    %399 = vector.shape_cast %398 : vector<1x8x1xf32> to vector<8x1xf32>
    %400 = vector.broadcast %399 : vector<8x1xf32> to vector<8x128xf32>
    %401 = arith.mulf %400, %2 : vector<8x128xf32>
    %cst_81 = arith.constant dense<0.000000e+00> : vector<8x128xf32>
    %402 = tpu.matmul %371, %9, %cst_81 {dimension_numbers = #tpu.dot_dimension_numbers<[1], [0], [0], [1], [0, 0, 1, 1], [], []>} : vector<8x32xf32>, vector<32x128xf32>, vector<8x128xf32> -> vector<8x128xf32>
    %403 = arith.addf %401, %402 : vector<8x128xf32>
    %404 = arith.addf %403, %5 : vector<8x128xf32>
    %405 = vector.extract_strided_slice %404 {offsets = [0, 0], sizes = [8, 32], strides = [1, 1]} : vector<8x128xf32> to vector<8x32xf32>
    %406 = arith.negf %405 : vector<8x32xf32>
    %407 = math.exp %406 : vector<8x32xf32>
    %cst_82 = arith.constant 1.000000e+00 : f32
    %408 = vector.broadcast %cst_82 : f32 to vector<8x32xf32>
    %409 = arith.addf %408, %407 : vector<8x32xf32>
    %410 = arith.divf %408, %409 : vector<8x32xf32>
    %411 = vector.extract_strided_slice %404 {offsets = [0, 32], sizes = [8, 32], strides = [1, 1]} : vector<8x128xf32> to vector<8x32xf32>
    %412 = arith.negf %411 : vector<8x32xf32>
    %413 = math.exp %412 : vector<8x32xf32>
    %cst_83 = arith.constant 1.000000e+00 : f32
    %414 = vector.broadcast %cst_83 : f32 to vector<8x32xf32>
    %415 = arith.addf %414, %413 : vector<8x32xf32>
    %416 = arith.divf %414, %415 : vector<8x32xf32>
    %417 = vector.extract_strided_slice %404 {offsets = [0, 64], sizes = [8, 32], strides = [1, 1]} : vector<8x128xf32> to vector<8x32xf32>
    %418 = vector.extract_strided_slice %404 {offsets = [0, 96], sizes = [8, 32], strides = [1, 1]} : vector<8x128xf32> to vector<8x32xf32>
    %419 = arith.mulf %410, %418 : vector<8x32xf32>
    %420 = arith.addf %417, %419 : vector<8x32xf32>
    %421 = math.tanh %420 : vector<8x32xf32>
    %cst_84 = arith.constant 1.000000e+00 : f32
    %422 = vector.broadcast %cst_84 : f32 to vector<8x32xf32>
    %423 = arith.subf %422, %416 : vector<8x32xf32>
    %424 = arith.mulf %423, %421 : vector<8x32xf32>
    %425 = arith.mulf %416, %371 : vector<8x32xf32>
    %426 = arith.addf %424, %425 : vector<8x32xf32>
    %427 = tpu.concatenate %426, %396 in 1 : vector<8x32xf32>, vector<8x32xf32> -> vector<8x64xf32>
    %cst_85 = arith.constant dense<0.000000e+00> : vector<8x128xf32>
    %428 = tpu.matmul %427, %10, %cst_85 {dimension_numbers = #tpu.dot_dimension_numbers<[1], [0], [0], [1], [0, 0, 1, 1], [], []>} : vector<8x64xf32>, vector<64x128xf32>, vector<8x128xf32> -> vector<8x128xf32>
    %429 = arith.addf %428, %8 : vector<8x128xf32>
    %430 = vector.extract_strided_slice %429 {offsets = [0, 0], sizes = [8, 32], strides = [1, 1]} : vector<8x128xf32> to vector<8x32xf32>
    %431 = arith.negf %430 : vector<8x32xf32>
    %432 = math.exp %431 : vector<8x32xf32>
    %cst_86 = arith.constant 1.000000e+00 : f32
    %433 = vector.broadcast %cst_86 : f32 to vector<8x32xf32>
    %434 = arith.addf %433, %432 : vector<8x32xf32>
    %435 = arith.divf %433, %434 : vector<8x32xf32>
    %436 = vector.extract_strided_slice %429 {offsets = [0, 32], sizes = [8, 32], strides = [1, 1]} : vector<8x128xf32> to vector<8x32xf32>
    %437 = arith.negf %436 : vector<8x32xf32>
    %438 = math.exp %437 : vector<8x32xf32>
    %cst_87 = arith.constant 1.000000e+00 : f32
    %439 = vector.broadcast %cst_87 : f32 to vector<8x32xf32>
    %440 = arith.addf %439, %438 : vector<8x32xf32>
    %441 = arith.divf %439, %440 : vector<8x32xf32>
    %442 = vector.extract_strided_slice %429 {offsets = [0, 64], sizes = [8, 32], strides = [1, 1]} : vector<8x128xf32> to vector<8x32xf32>
    %443 = vector.extract_strided_slice %429 {offsets = [0, 96], sizes = [8, 32], strides = [1, 1]} : vector<8x128xf32> to vector<8x32xf32>
    %444 = arith.mulf %435, %443 : vector<8x32xf32>
    %445 = arith.addf %442, %444 : vector<8x32xf32>
    %446 = math.tanh %445 : vector<8x32xf32>
    %cst_88 = arith.constant 1.000000e+00 : f32
    %447 = vector.broadcast %cst_88 : f32 to vector<8x32xf32>
    %448 = arith.subf %447, %441 : vector<8x32xf32>
    %449 = arith.mulf %448, %446 : vector<8x32xf32>
    %450 = arith.mulf %441, %396 : vector<8x32xf32>
    %451 = arith.addf %449, %450 : vector<8x32xf32>
    %c8_i32 = arith.constant 8 : i32
    %452 = arith.index_cast %c8_i32 : i32 to index
    %c0_89 = arith.constant 0 : index
    %c0_90 = arith.constant 0 : index
    %453 = vector.load %arg1[%452, %c0_89, %c0_90] : memref<16x8x1xf32, #tpu.memory_space<vmem>>, vector<1x8x1xf32>
    %454 = vector.shape_cast %453 : vector<1x8x1xf32> to vector<8x1xf32>
    %455 = vector.broadcast %454 : vector<8x1xf32> to vector<8x128xf32>
    %456 = arith.mulf %455, %2 : vector<8x128xf32>
    %cst_91 = arith.constant dense<0.000000e+00> : vector<8x128xf32>
    %457 = tpu.matmul %426, %9, %cst_91 {dimension_numbers = #tpu.dot_dimension_numbers<[1], [0], [0], [1], [0, 0, 1, 1], [], []>} : vector<8x32xf32>, vector<32x128xf32>, vector<8x128xf32> -> vector<8x128xf32>
    %458 = arith.addf %456, %457 : vector<8x128xf32>
    %459 = arith.addf %458, %5 : vector<8x128xf32>
    %460 = vector.extract_strided_slice %459 {offsets = [0, 0], sizes = [8, 32], strides = [1, 1]} : vector<8x128xf32> to vector<8x32xf32>
    %461 = arith.negf %460 : vector<8x32xf32>
    %462 = math.exp %461 : vector<8x32xf32>
    %cst_92 = arith.constant 1.000000e+00 : f32
    %463 = vector.broadcast %cst_92 : f32 to vector<8x32xf32>
    %464 = arith.addf %463, %462 : vector<8x32xf32>
    %465 = arith.divf %463, %464 : vector<8x32xf32>
    %466 = vector.extract_strided_slice %459 {offsets = [0, 32], sizes = [8, 32], strides = [1, 1]} : vector<8x128xf32> to vector<8x32xf32>
    %467 = arith.negf %466 : vector<8x32xf32>
    %468 = math.exp %467 : vector<8x32xf32>
    %cst_93 = arith.constant 1.000000e+00 : f32
    %469 = vector.broadcast %cst_93 : f32 to vector<8x32xf32>
    %470 = arith.addf %469, %468 : vector<8x32xf32>
    %471 = arith.divf %469, %470 : vector<8x32xf32>
    %472 = vector.extract_strided_slice %459 {offsets = [0, 64], sizes = [8, 32], strides = [1, 1]} : vector<8x128xf32> to vector<8x32xf32>
    %473 = vector.extract_strided_slice %459 {offsets = [0, 96], sizes = [8, 32], strides = [1, 1]} : vector<8x128xf32> to vector<8x32xf32>
    %474 = arith.mulf %465, %473 : vector<8x32xf32>
    %475 = arith.addf %472, %474 : vector<8x32xf32>
    %476 = math.tanh %475 : vector<8x32xf32>
    %cst_94 = arith.constant 1.000000e+00 : f32
    %477 = vector.broadcast %cst_94 : f32 to vector<8x32xf32>
    %478 = arith.subf %477, %471 : vector<8x32xf32>
    %479 = arith.mulf %478, %476 : vector<8x32xf32>
    %480 = arith.mulf %471, %426 : vector<8x32xf32>
    %481 = arith.addf %479, %480 : vector<8x32xf32>
    %482 = tpu.concatenate %481, %451 in 1 : vector<8x32xf32>, vector<8x32xf32> -> vector<8x64xf32>
    %cst_95 = arith.constant dense<0.000000e+00> : vector<8x128xf32>
    %483 = tpu.matmul %482, %10, %cst_95 {dimension_numbers = #tpu.dot_dimension_numbers<[1], [0], [0], [1], [0, 0, 1, 1], [], []>} : vector<8x64xf32>, vector<64x128xf32>, vector<8x128xf32> -> vector<8x128xf32>
    %484 = arith.addf %483, %8 : vector<8x128xf32>
    %485 = vector.extract_strided_slice %484 {offsets = [0, 0], sizes = [8, 32], strides = [1, 1]} : vector<8x128xf32> to vector<8x32xf32>
    %486 = arith.negf %485 : vector<8x32xf32>
    %487 = math.exp %486 : vector<8x32xf32>
    %cst_96 = arith.constant 1.000000e+00 : f32
    %488 = vector.broadcast %cst_96 : f32 to vector<8x32xf32>
    %489 = arith.addf %488, %487 : vector<8x32xf32>
    %490 = arith.divf %488, %489 : vector<8x32xf32>
    %491 = vector.extract_strided_slice %484 {offsets = [0, 32], sizes = [8, 32], strides = [1, 1]} : vector<8x128xf32> to vector<8x32xf32>
    %492 = arith.negf %491 : vector<8x32xf32>
    %493 = math.exp %492 : vector<8x32xf32>
    %cst_97 = arith.constant 1.000000e+00 : f32
    %494 = vector.broadcast %cst_97 : f32 to vector<8x32xf32>
    %495 = arith.addf %494, %493 : vector<8x32xf32>
    %496 = arith.divf %494, %495 : vector<8x32xf32>
    %497 = vector.extract_strided_slice %484 {offsets = [0, 64], sizes = [8, 32], strides = [1, 1]} : vector<8x128xf32> to vector<8x32xf32>
    %498 = vector.extract_strided_slice %484 {offsets = [0, 96], sizes = [8, 32], strides = [1, 1]} : vector<8x128xf32> to vector<8x32xf32>
    %499 = arith.mulf %490, %498 : vector<8x32xf32>
    %500 = arith.addf %497, %499 : vector<8x32xf32>
    %501 = math.tanh %500 : vector<8x32xf32>
    %cst_98 = arith.constant 1.000000e+00 : f32
    %502 = vector.broadcast %cst_98 : f32 to vector<8x32xf32>
    %503 = arith.subf %502, %496 : vector<8x32xf32>
    %504 = arith.mulf %503, %501 : vector<8x32xf32>
    %505 = arith.mulf %496, %451 : vector<8x32xf32>
    %506 = arith.addf %504, %505 : vector<8x32xf32>
    %c9_i32 = arith.constant 9 : i32
    %507 = arith.index_cast %c9_i32 : i32 to index
    %c0_99 = arith.constant 0 : index
    %c0_100 = arith.constant 0 : index
    %508 = vector.load %arg1[%507, %c0_99, %c0_100] : memref<16x8x1xf32, #tpu.memory_space<vmem>>, vector<1x8x1xf32>
    %509 = vector.shape_cast %508 : vector<1x8x1xf32> to vector<8x1xf32>
    %510 = vector.broadcast %509 : vector<8x1xf32> to vector<8x128xf32>
    %511 = arith.mulf %510, %2 : vector<8x128xf32>
    %cst_101 = arith.constant dense<0.000000e+00> : vector<8x128xf32>
    %512 = tpu.matmul %481, %9, %cst_101 {dimension_numbers = #tpu.dot_dimension_numbers<[1], [0], [0], [1], [0, 0, 1, 1], [], []>} : vector<8x32xf32>, vector<32x128xf32>, vector<8x128xf32> -> vector<8x128xf32>
    %513 = arith.addf %511, %512 : vector<8x128xf32>
    %514 = arith.addf %513, %5 : vector<8x128xf32>
    %515 = vector.extract_strided_slice %514 {offsets = [0, 0], sizes = [8, 32], strides = [1, 1]} : vector<8x128xf32> to vector<8x32xf32>
    %516 = arith.negf %515 : vector<8x32xf32>
    %517 = math.exp %516 : vector<8x32xf32>
    %cst_102 = arith.constant 1.000000e+00 : f32
    %518 = vector.broadcast %cst_102 : f32 to vector<8x32xf32>
    %519 = arith.addf %518, %517 : vector<8x32xf32>
    %520 = arith.divf %518, %519 : vector<8x32xf32>
    %521 = vector.extract_strided_slice %514 {offsets = [0, 32], sizes = [8, 32], strides = [1, 1]} : vector<8x128xf32> to vector<8x32xf32>
    %522 = arith.negf %521 : vector<8x32xf32>
    %523 = math.exp %522 : vector<8x32xf32>
    %cst_103 = arith.constant 1.000000e+00 : f32
    %524 = vector.broadcast %cst_103 : f32 to vector<8x32xf32>
    %525 = arith.addf %524, %523 : vector<8x32xf32>
    %526 = arith.divf %524, %525 : vector<8x32xf32>
    %527 = vector.extract_strided_slice %514 {offsets = [0, 64], sizes = [8, 32], strides = [1, 1]} : vector<8x128xf32> to vector<8x32xf32>
    %528 = vector.extract_strided_slice %514 {offsets = [0, 96], sizes = [8, 32], strides = [1, 1]} : vector<8x128xf32> to vector<8x32xf32>
    %529 = arith.mulf %520, %528 : vector<8x32xf32>
    %530 = arith.addf %527, %529 : vector<8x32xf32>
    %531 = math.tanh %530 : vector<8x32xf32>
    %cst_104 = arith.constant 1.000000e+00 : f32
    %532 = vector.broadcast %cst_104 : f32 to vector<8x32xf32>
    %533 = arith.subf %532, %526 : vector<8x32xf32>
    %534 = arith.mulf %533, %531 : vector<8x32xf32>
    %535 = arith.mulf %526, %481 : vector<8x32xf32>
    %536 = arith.addf %534, %535 : vector<8x32xf32>
    %537 = tpu.concatenate %536, %506 in 1 : vector<8x32xf32>, vector<8x32xf32> -> vector<8x64xf32>
    %cst_105 = arith.constant dense<0.000000e+00> : vector<8x128xf32>
    %538 = tpu.matmul %537, %10, %cst_105 {dimension_numbers = #tpu.dot_dimension_numbers<[1], [0], [0], [1], [0, 0, 1, 1], [], []>} : vector<8x64xf32>, vector<64x128xf32>, vector<8x128xf32> -> vector<8x128xf32>
    %539 = arith.addf %538, %8 : vector<8x128xf32>
    %540 = vector.extract_strided_slice %539 {offsets = [0, 0], sizes = [8, 32], strides = [1, 1]} : vector<8x128xf32> to vector<8x32xf32>
    %541 = arith.negf %540 : vector<8x32xf32>
    %542 = math.exp %541 : vector<8x32xf32>
    %cst_106 = arith.constant 1.000000e+00 : f32
    %543 = vector.broadcast %cst_106 : f32 to vector<8x32xf32>
    %544 = arith.addf %543, %542 : vector<8x32xf32>
    %545 = arith.divf %543, %544 : vector<8x32xf32>
    %546 = vector.extract_strided_slice %539 {offsets = [0, 32], sizes = [8, 32], strides = [1, 1]} : vector<8x128xf32> to vector<8x32xf32>
    %547 = arith.negf %546 : vector<8x32xf32>
    %548 = math.exp %547 : vector<8x32xf32>
    %cst_107 = arith.constant 1.000000e+00 : f32
    %549 = vector.broadcast %cst_107 : f32 to vector<8x32xf32>
    %550 = arith.addf %549, %548 : vector<8x32xf32>
    %551 = arith.divf %549, %550 : vector<8x32xf32>
    %552 = vector.extract_strided_slice %539 {offsets = [0, 64], sizes = [8, 32], strides = [1, 1]} : vector<8x128xf32> to vector<8x32xf32>
    %553 = vector.extract_strided_slice %539 {offsets = [0, 96], sizes = [8, 32], strides = [1, 1]} : vector<8x128xf32> to vector<8x32xf32>
    %554 = arith.mulf %545, %553 : vector<8x32xf32>
    %555 = arith.addf %552, %554 : vector<8x32xf32>
    %556 = math.tanh %555 : vector<8x32xf32>
    %cst_108 = arith.constant 1.000000e+00 : f32
    %557 = vector.broadcast %cst_108 : f32 to vector<8x32xf32>
    %558 = arith.subf %557, %551 : vector<8x32xf32>
    %559 = arith.mulf %558, %556 : vector<8x32xf32>
    %560 = arith.mulf %551, %506 : vector<8x32xf32>
    %561 = arith.addf %559, %560 : vector<8x32xf32>
    %c10_i32 = arith.constant 10 : i32
    %562 = arith.index_cast %c10_i32 : i32 to index
    %c0_109 = arith.constant 0 : index
    %c0_110 = arith.constant 0 : index
    %563 = vector.load %arg1[%562, %c0_109, %c0_110] : memref<16x8x1xf32, #tpu.memory_space<vmem>>, vector<1x8x1xf32>
    %564 = vector.shape_cast %563 : vector<1x8x1xf32> to vector<8x1xf32>
    %565 = vector.broadcast %564 : vector<8x1xf32> to vector<8x128xf32>
    %566 = arith.mulf %565, %2 : vector<8x128xf32>
    %cst_111 = arith.constant dense<0.000000e+00> : vector<8x128xf32>
    %567 = tpu.matmul %536, %9, %cst_111 {dimension_numbers = #tpu.dot_dimension_numbers<[1], [0], [0], [1], [0, 0, 1, 1], [], []>} : vector<8x32xf32>, vector<32x128xf32>, vector<8x128xf32> -> vector<8x128xf32>
    %568 = arith.addf %566, %567 : vector<8x128xf32>
    %569 = arith.addf %568, %5 : vector<8x128xf32>
    %570 = vector.extract_strided_slice %569 {offsets = [0, 0], sizes = [8, 32], strides = [1, 1]} : vector<8x128xf32> to vector<8x32xf32>
    %571 = arith.negf %570 : vector<8x32xf32>
    %572 = math.exp %571 : vector<8x32xf32>
    %cst_112 = arith.constant 1.000000e+00 : f32
    %573 = vector.broadcast %cst_112 : f32 to vector<8x32xf32>
    %574 = arith.addf %573, %572 : vector<8x32xf32>
    %575 = arith.divf %573, %574 : vector<8x32xf32>
    %576 = vector.extract_strided_slice %569 {offsets = [0, 32], sizes = [8, 32], strides = [1, 1]} : vector<8x128xf32> to vector<8x32xf32>
    %577 = arith.negf %576 : vector<8x32xf32>
    %578 = math.exp %577 : vector<8x32xf32>
    %cst_113 = arith.constant 1.000000e+00 : f32
    %579 = vector.broadcast %cst_113 : f32 to vector<8x32xf32>
    %580 = arith.addf %579, %578 : vector<8x32xf32>
    %581 = arith.divf %579, %580 : vector<8x32xf32>
    %582 = vector.extract_strided_slice %569 {offsets = [0, 64], sizes = [8, 32], strides = [1, 1]} : vector<8x128xf32> to vector<8x32xf32>
    %583 = vector.extract_strided_slice %569 {offsets = [0, 96], sizes = [8, 32], strides = [1, 1]} : vector<8x128xf32> to vector<8x32xf32>
    %584 = arith.mulf %575, %583 : vector<8x32xf32>
    %585 = arith.addf %582, %584 : vector<8x32xf32>
    %586 = math.tanh %585 : vector<8x32xf32>
    %cst_114 = arith.constant 1.000000e+00 : f32
    %587 = vector.broadcast %cst_114 : f32 to vector<8x32xf32>
    %588 = arith.subf %587, %581 : vector<8x32xf32>
    %589 = arith.mulf %588, %586 : vector<8x32xf32>
    %590 = arith.mulf %581, %536 : vector<8x32xf32>
    %591 = arith.addf %589, %590 : vector<8x32xf32>
    %592 = tpu.concatenate %591, %561 in 1 : vector<8x32xf32>, vector<8x32xf32> -> vector<8x64xf32>
    %cst_115 = arith.constant dense<0.000000e+00> : vector<8x128xf32>
    %593 = tpu.matmul %592, %10, %cst_115 {dimension_numbers = #tpu.dot_dimension_numbers<[1], [0], [0], [1], [0, 0, 1, 1], [], []>} : vector<8x64xf32>, vector<64x128xf32>, vector<8x128xf32> -> vector<8x128xf32>
    %594 = arith.addf %593, %8 : vector<8x128xf32>
    %595 = vector.extract_strided_slice %594 {offsets = [0, 0], sizes = [8, 32], strides = [1, 1]} : vector<8x128xf32> to vector<8x32xf32>
    %596 = arith.negf %595 : vector<8x32xf32>
    %597 = math.exp %596 : vector<8x32xf32>
    %cst_116 = arith.constant 1.000000e+00 : f32
    %598 = vector.broadcast %cst_116 : f32 to vector<8x32xf32>
    %599 = arith.addf %598, %597 : vector<8x32xf32>
    %600 = arith.divf %598, %599 : vector<8x32xf32>
    %601 = vector.extract_strided_slice %594 {offsets = [0, 32], sizes = [8, 32], strides = [1, 1]} : vector<8x128xf32> to vector<8x32xf32>
    %602 = arith.negf %601 : vector<8x32xf32>
    %603 = math.exp %602 : vector<8x32xf32>
    %cst_117 = arith.constant 1.000000e+00 : f32
    %604 = vector.broadcast %cst_117 : f32 to vector<8x32xf32>
    %605 = arith.addf %604, %603 : vector<8x32xf32>
    %606 = arith.divf %604, %605 : vector<8x32xf32>
    %607 = vector.extract_strided_slice %594 {offsets = [0, 64], sizes = [8, 32], strides = [1, 1]} : vector<8x128xf32> to vector<8x32xf32>
    %608 = vector.extract_strided_slice %594 {offsets = [0, 96], sizes = [8, 32], strides = [1, 1]} : vector<8x128xf32> to vector<8x32xf32>
    %609 = arith.mulf %600, %608 : vector<8x32xf32>
    %610 = arith.addf %607, %609 : vector<8x32xf32>
    %611 = math.tanh %610 : vector<8x32xf32>
    %cst_118 = arith.constant 1.000000e+00 : f32
    %612 = vector.broadcast %cst_118 : f32 to vector<8x32xf32>
    %613 = arith.subf %612, %606 : vector<8x32xf32>
    %614 = arith.mulf %613, %611 : vector<8x32xf32>
    %615 = arith.mulf %606, %561 : vector<8x32xf32>
    %616 = arith.addf %614, %615 : vector<8x32xf32>
    %c11_i32 = arith.constant 11 : i32
    %617 = arith.index_cast %c11_i32 : i32 to index
    %c0_119 = arith.constant 0 : index
    %c0_120 = arith.constant 0 : index
    %618 = vector.load %arg1[%617, %c0_119, %c0_120] : memref<16x8x1xf32, #tpu.memory_space<vmem>>, vector<1x8x1xf32>
    %619 = vector.shape_cast %618 : vector<1x8x1xf32> to vector<8x1xf32>
    %620 = vector.broadcast %619 : vector<8x1xf32> to vector<8x128xf32>
    %621 = arith.mulf %620, %2 : vector<8x128xf32>
    %cst_121 = arith.constant dense<0.000000e+00> : vector<8x128xf32>
    %622 = tpu.matmul %591, %9, %cst_121 {dimension_numbers = #tpu.dot_dimension_numbers<[1], [0], [0], [1], [0, 0, 1, 1], [], []>} : vector<8x32xf32>, vector<32x128xf32>, vector<8x128xf32> -> vector<8x128xf32>
    %623 = arith.addf %621, %622 : vector<8x128xf32>
    %624 = arith.addf %623, %5 : vector<8x128xf32>
    %625 = vector.extract_strided_slice %624 {offsets = [0, 0], sizes = [8, 32], strides = [1, 1]} : vector<8x128xf32> to vector<8x32xf32>
    %626 = arith.negf %625 : vector<8x32xf32>
    %627 = math.exp %626 : vector<8x32xf32>
    %cst_122 = arith.constant 1.000000e+00 : f32
    %628 = vector.broadcast %cst_122 : f32 to vector<8x32xf32>
    %629 = arith.addf %628, %627 : vector<8x32xf32>
    %630 = arith.divf %628, %629 : vector<8x32xf32>
    %631 = vector.extract_strided_slice %624 {offsets = [0, 32], sizes = [8, 32], strides = [1, 1]} : vector<8x128xf32> to vector<8x32xf32>
    %632 = arith.negf %631 : vector<8x32xf32>
    %633 = math.exp %632 : vector<8x32xf32>
    %cst_123 = arith.constant 1.000000e+00 : f32
    %634 = vector.broadcast %cst_123 : f32 to vector<8x32xf32>
    %635 = arith.addf %634, %633 : vector<8x32xf32>
    %636 = arith.divf %634, %635 : vector<8x32xf32>
    %637 = vector.extract_strided_slice %624 {offsets = [0, 64], sizes = [8, 32], strides = [1, 1]} : vector<8x128xf32> to vector<8x32xf32>
    %638 = vector.extract_strided_slice %624 {offsets = [0, 96], sizes = [8, 32], strides = [1, 1]} : vector<8x128xf32> to vector<8x32xf32>
    %639 = arith.mulf %630, %638 : vector<8x32xf32>
    %640 = arith.addf %637, %639 : vector<8x32xf32>
    %641 = math.tanh %640 : vector<8x32xf32>
    %cst_124 = arith.constant 1.000000e+00 : f32
    %642 = vector.broadcast %cst_124 : f32 to vector<8x32xf32>
    %643 = arith.subf %642, %636 : vector<8x32xf32>
    %644 = arith.mulf %643, %641 : vector<8x32xf32>
    %645 = arith.mulf %636, %591 : vector<8x32xf32>
    %646 = arith.addf %644, %645 : vector<8x32xf32>
    %647 = tpu.concatenate %646, %616 in 1 : vector<8x32xf32>, vector<8x32xf32> -> vector<8x64xf32>
    %cst_125 = arith.constant dense<0.000000e+00> : vector<8x128xf32>
    %648 = tpu.matmul %647, %10, %cst_125 {dimension_numbers = #tpu.dot_dimension_numbers<[1], [0], [0], [1], [0, 0, 1, 1], [], []>} : vector<8x64xf32>, vector<64x128xf32>, vector<8x128xf32> -> vector<8x128xf32>
    %649 = arith.addf %648, %8 : vector<8x128xf32>
    %650 = vector.extract_strided_slice %649 {offsets = [0, 0], sizes = [8, 32], strides = [1, 1]} : vector<8x128xf32> to vector<8x32xf32>
    %651 = arith.negf %650 : vector<8x32xf32>
    %652 = math.exp %651 : vector<8x32xf32>
    %cst_126 = arith.constant 1.000000e+00 : f32
    %653 = vector.broadcast %cst_126 : f32 to vector<8x32xf32>
    %654 = arith.addf %653, %652 : vector<8x32xf32>
    %655 = arith.divf %653, %654 : vector<8x32xf32>
    %656 = vector.extract_strided_slice %649 {offsets = [0, 32], sizes = [8, 32], strides = [1, 1]} : vector<8x128xf32> to vector<8x32xf32>
    %657 = arith.negf %656 : vector<8x32xf32>
    %658 = math.exp %657 : vector<8x32xf32>
    %cst_127 = arith.constant 1.000000e+00 : f32
    %659 = vector.broadcast %cst_127 : f32 to vector<8x32xf32>
    %660 = arith.addf %659, %658 : vector<8x32xf32>
    %661 = arith.divf %659, %660 : vector<8x32xf32>
    %662 = vector.extract_strided_slice %649 {offsets = [0, 64], sizes = [8, 32], strides = [1, 1]} : vector<8x128xf32> to vector<8x32xf32>
    %663 = vector.extract_strided_slice %649 {offsets = [0, 96], sizes = [8, 32], strides = [1, 1]} : vector<8x128xf32> to vector<8x32xf32>
    %664 = arith.mulf %655, %663 : vector<8x32xf32>
    %665 = arith.addf %662, %664 : vector<8x32xf32>
    %666 = math.tanh %665 : vector<8x32xf32>
    %cst_128 = arith.constant 1.000000e+00 : f32
    %667 = vector.broadcast %cst_128 : f32 to vector<8x32xf32>
    %668 = arith.subf %667, %661 : vector<8x32xf32>
    %669 = arith.mulf %668, %666 : vector<8x32xf32>
    %670 = arith.mulf %661, %616 : vector<8x32xf32>
    %671 = arith.addf %669, %670 : vector<8x32xf32>
    %c12_i32 = arith.constant 12 : i32
    %672 = arith.index_cast %c12_i32 : i32 to index
    %c0_129 = arith.constant 0 : index
    %c0_130 = arith.constant 0 : index
    %673 = vector.load %arg1[%672, %c0_129, %c0_130] : memref<16x8x1xf32, #tpu.memory_space<vmem>>, vector<1x8x1xf32>
    %674 = vector.shape_cast %673 : vector<1x8x1xf32> to vector<8x1xf32>
    %675 = vector.broadcast %674 : vector<8x1xf32> to vector<8x128xf32>
    %676 = arith.mulf %675, %2 : vector<8x128xf32>
    %cst_131 = arith.constant dense<0.000000e+00> : vector<8x128xf32>
    %677 = tpu.matmul %646, %9, %cst_131 {dimension_numbers = #tpu.dot_dimension_numbers<[1], [0], [0], [1], [0, 0, 1, 1], [], []>} : vector<8x32xf32>, vector<32x128xf32>, vector<8x128xf32> -> vector<8x128xf32>
    %678 = arith.addf %676, %677 : vector<8x128xf32>
    %679 = arith.addf %678, %5 : vector<8x128xf32>
    %680 = vector.extract_strided_slice %679 {offsets = [0, 0], sizes = [8, 32], strides = [1, 1]} : vector<8x128xf32> to vector<8x32xf32>
    %681 = arith.negf %680 : vector<8x32xf32>
    %682 = math.exp %681 : vector<8x32xf32>
    %cst_132 = arith.constant 1.000000e+00 : f32
    %683 = vector.broadcast %cst_132 : f32 to vector<8x32xf32>
    %684 = arith.addf %683, %682 : vector<8x32xf32>
    %685 = arith.divf %683, %684 : vector<8x32xf32>
    %686 = vector.extract_strided_slice %679 {offsets = [0, 32], sizes = [8, 32], strides = [1, 1]} : vector<8x128xf32> to vector<8x32xf32>
    %687 = arith.negf %686 : vector<8x32xf32>
    %688 = math.exp %687 : vector<8x32xf32>
    %cst_133 = arith.constant 1.000000e+00 : f32
    %689 = vector.broadcast %cst_133 : f32 to vector<8x32xf32>
    %690 = arith.addf %689, %688 : vector<8x32xf32>
    %691 = arith.divf %689, %690 : vector<8x32xf32>
    %692 = vector.extract_strided_slice %679 {offsets = [0, 64], sizes = [8, 32], strides = [1, 1]} : vector<8x128xf32> to vector<8x32xf32>
    %693 = vector.extract_strided_slice %679 {offsets = [0, 96], sizes = [8, 32], strides = [1, 1]} : vector<8x128xf32> to vector<8x32xf32>
    %694 = arith.mulf %685, %693 : vector<8x32xf32>
    %695 = arith.addf %692, %694 : vector<8x32xf32>
    %696 = math.tanh %695 : vector<8x32xf32>
    %cst_134 = arith.constant 1.000000e+00 : f32
    %697 = vector.broadcast %cst_134 : f32 to vector<8x32xf32>
    %698 = arith.subf %697, %691 : vector<8x32xf32>
    %699 = arith.mulf %698, %696 : vector<8x32xf32>
    %700 = arith.mulf %691, %646 : vector<8x32xf32>
    %701 = arith.addf %699, %700 : vector<8x32xf32>
    %702 = tpu.concatenate %701, %671 in 1 : vector<8x32xf32>, vector<8x32xf32> -> vector<8x64xf32>
    %cst_135 = arith.constant dense<0.000000e+00> : vector<8x128xf32>
    %703 = tpu.matmul %702, %10, %cst_135 {dimension_numbers = #tpu.dot_dimension_numbers<[1], [0], [0], [1], [0, 0, 1, 1], [], []>} : vector<8x64xf32>, vector<64x128xf32>, vector<8x128xf32> -> vector<8x128xf32>
    %704 = arith.addf %703, %8 : vector<8x128xf32>
    %705 = vector.extract_strided_slice %704 {offsets = [0, 0], sizes = [8, 32], strides = [1, 1]} : vector<8x128xf32> to vector<8x32xf32>
    %706 = arith.negf %705 : vector<8x32xf32>
    %707 = math.exp %706 : vector<8x32xf32>
    %cst_136 = arith.constant 1.000000e+00 : f32
    %708 = vector.broadcast %cst_136 : f32 to vector<8x32xf32>
    %709 = arith.addf %708, %707 : vector<8x32xf32>
    %710 = arith.divf %708, %709 : vector<8x32xf32>
    %711 = vector.extract_strided_slice %704 {offsets = [0, 32], sizes = [8, 32], strides = [1, 1]} : vector<8x128xf32> to vector<8x32xf32>
    %712 = arith.negf %711 : vector<8x32xf32>
    %713 = math.exp %712 : vector<8x32xf32>
    %cst_137 = arith.constant 1.000000e+00 : f32
    %714 = vector.broadcast %cst_137 : f32 to vector<8x32xf32>
    %715 = arith.addf %714, %713 : vector<8x32xf32>
    %716 = arith.divf %714, %715 : vector<8x32xf32>
    %717 = vector.extract_strided_slice %704 {offsets = [0, 64], sizes = [8, 32], strides = [1, 1]} : vector<8x128xf32> to vector<8x32xf32>
    %718 = vector.extract_strided_slice %704 {offsets = [0, 96], sizes = [8, 32], strides = [1, 1]} : vector<8x128xf32> to vector<8x32xf32>
    %719 = arith.mulf %710, %718 : vector<8x32xf32>
    %720 = arith.addf %717, %719 : vector<8x32xf32>
    %721 = math.tanh %720 : vector<8x32xf32>
    %cst_138 = arith.constant 1.000000e+00 : f32
    %722 = vector.broadcast %cst_138 : f32 to vector<8x32xf32>
    %723 = arith.subf %722, %716 : vector<8x32xf32>
    %724 = arith.mulf %723, %721 : vector<8x32xf32>
    %725 = arith.mulf %716, %671 : vector<8x32xf32>
    %726 = arith.addf %724, %725 : vector<8x32xf32>
    %c13_i32 = arith.constant 13 : i32
    %727 = arith.index_cast %c13_i32 : i32 to index
    %c0_139 = arith.constant 0 : index
    %c0_140 = arith.constant 0 : index
    %728 = vector.load %arg1[%727, %c0_139, %c0_140] : memref<16x8x1xf32, #tpu.memory_space<vmem>>, vector<1x8x1xf32>
    %729 = vector.shape_cast %728 : vector<1x8x1xf32> to vector<8x1xf32>
    %730 = vector.broadcast %729 : vector<8x1xf32> to vector<8x128xf32>
    %731 = arith.mulf %730, %2 : vector<8x128xf32>
    %cst_141 = arith.constant dense<0.000000e+00> : vector<8x128xf32>
    %732 = tpu.matmul %701, %9, %cst_141 {dimension_numbers = #tpu.dot_dimension_numbers<[1], [0], [0], [1], [0, 0, 1, 1], [], []>} : vector<8x32xf32>, vector<32x128xf32>, vector<8x128xf32> -> vector<8x128xf32>
    %733 = arith.addf %731, %732 : vector<8x128xf32>
    %734 = arith.addf %733, %5 : vector<8x128xf32>
    %735 = vector.extract_strided_slice %734 {offsets = [0, 0], sizes = [8, 32], strides = [1, 1]} : vector<8x128xf32> to vector<8x32xf32>
    %736 = arith.negf %735 : vector<8x32xf32>
    %737 = math.exp %736 : vector<8x32xf32>
    %cst_142 = arith.constant 1.000000e+00 : f32
    %738 = vector.broadcast %cst_142 : f32 to vector<8x32xf32>
    %739 = arith.addf %738, %737 : vector<8x32xf32>
    %740 = arith.divf %738, %739 : vector<8x32xf32>
    %741 = vector.extract_strided_slice %734 {offsets = [0, 32], sizes = [8, 32], strides = [1, 1]} : vector<8x128xf32> to vector<8x32xf32>
    %742 = arith.negf %741 : vector<8x32xf32>
    %743 = math.exp %742 : vector<8x32xf32>
    %cst_143 = arith.constant 1.000000e+00 : f32
    %744 = vector.broadcast %cst_143 : f32 to vector<8x32xf32>
    %745 = arith.addf %744, %743 : vector<8x32xf32>
    %746 = arith.divf %744, %745 : vector<8x32xf32>
    %747 = vector.extract_strided_slice %734 {offsets = [0, 64], sizes = [8, 32], strides = [1, 1]} : vector<8x128xf32> to vector<8x32xf32>
    %748 = vector.extract_strided_slice %734 {offsets = [0, 96], sizes = [8, 32], strides = [1, 1]} : vector<8x128xf32> to vector<8x32xf32>
    %749 = arith.mulf %740, %748 : vector<8x32xf32>
    %750 = arith.addf %747, %749 : vector<8x32xf32>
    %751 = math.tanh %750 : vector<8x32xf32>
    %cst_144 = arith.constant 1.000000e+00 : f32
    %752 = vector.broadcast %cst_144 : f32 to vector<8x32xf32>
    %753 = arith.subf %752, %746 : vector<8x32xf32>
    %754 = arith.mulf %753, %751 : vector<8x32xf32>
    %755 = arith.mulf %746, %701 : vector<8x32xf32>
    %756 = arith.addf %754, %755 : vector<8x32xf32>
    %757 = tpu.concatenate %756, %726 in 1 : vector<8x32xf32>, vector<8x32xf32> -> vector<8x64xf32>
    %cst_145 = arith.constant dense<0.000000e+00> : vector<8x128xf32>
    %758 = tpu.matmul %757, %10, %cst_145 {dimension_numbers = #tpu.dot_dimension_numbers<[1], [0], [0], [1], [0, 0, 1, 1], [], []>} : vector<8x64xf32>, vector<64x128xf32>, vector<8x128xf32> -> vector<8x128xf32>
    %759 = arith.addf %758, %8 : vector<8x128xf32>
    %760 = vector.extract_strided_slice %759 {offsets = [0, 0], sizes = [8, 32], strides = [1, 1]} : vector<8x128xf32> to vector<8x32xf32>
    %761 = arith.negf %760 : vector<8x32xf32>
    %762 = math.exp %761 : vector<8x32xf32>
    %cst_146 = arith.constant 1.000000e+00 : f32
    %763 = vector.broadcast %cst_146 : f32 to vector<8x32xf32>
    %764 = arith.addf %763, %762 : vector<8x32xf32>
    %765 = arith.divf %763, %764 : vector<8x32xf32>
    %766 = vector.extract_strided_slice %759 {offsets = [0, 32], sizes = [8, 32], strides = [1, 1]} : vector<8x128xf32> to vector<8x32xf32>
    %767 = arith.negf %766 : vector<8x32xf32>
    %768 = math.exp %767 : vector<8x32xf32>
    %cst_147 = arith.constant 1.000000e+00 : f32
    %769 = vector.broadcast %cst_147 : f32 to vector<8x32xf32>
    %770 = arith.addf %769, %768 : vector<8x32xf32>
    %771 = arith.divf %769, %770 : vector<8x32xf32>
    %772 = vector.extract_strided_slice %759 {offsets = [0, 64], sizes = [8, 32], strides = [1, 1]} : vector<8x128xf32> to vector<8x32xf32>
    %773 = vector.extract_strided_slice %759 {offsets = [0, 96], sizes = [8, 32], strides = [1, 1]} : vector<8x128xf32> to vector<8x32xf32>
    %774 = arith.mulf %765, %773 : vector<8x32xf32>
    %775 = arith.addf %772, %774 : vector<8x32xf32>
    %776 = math.tanh %775 : vector<8x32xf32>
    %cst_148 = arith.constant 1.000000e+00 : f32
    %777 = vector.broadcast %cst_148 : f32 to vector<8x32xf32>
    %778 = arith.subf %777, %771 : vector<8x32xf32>
    %779 = arith.mulf %778, %776 : vector<8x32xf32>
    %780 = arith.mulf %771, %726 : vector<8x32xf32>
    %781 = arith.addf %779, %780 : vector<8x32xf32>
    %c14_i32 = arith.constant 14 : i32
    %782 = arith.index_cast %c14_i32 : i32 to index
    %c0_149 = arith.constant 0 : index
    %c0_150 = arith.constant 0 : index
    %783 = vector.load %arg1[%782, %c0_149, %c0_150] : memref<16x8x1xf32, #tpu.memory_space<vmem>>, vector<1x8x1xf32>
    %784 = vector.shape_cast %783 : vector<1x8x1xf32> to vector<8x1xf32>
    %785 = vector.broadcast %784 : vector<8x1xf32> to vector<8x128xf32>
    %786 = arith.mulf %785, %2 : vector<8x128xf32>
    %cst_151 = arith.constant dense<0.000000e+00> : vector<8x128xf32>
    %787 = tpu.matmul %756, %9, %cst_151 {dimension_numbers = #tpu.dot_dimension_numbers<[1], [0], [0], [1], [0, 0, 1, 1], [], []>} : vector<8x32xf32>, vector<32x128xf32>, vector<8x128xf32> -> vector<8x128xf32>
    %788 = arith.addf %786, %787 : vector<8x128xf32>
    %789 = arith.addf %788, %5 : vector<8x128xf32>
    %790 = vector.extract_strided_slice %789 {offsets = [0, 0], sizes = [8, 32], strides = [1, 1]} : vector<8x128xf32> to vector<8x32xf32>
    %791 = arith.negf %790 : vector<8x32xf32>
    %792 = math.exp %791 : vector<8x32xf32>
    %cst_152 = arith.constant 1.000000e+00 : f32
    %793 = vector.broadcast %cst_152 : f32 to vector<8x32xf32>
    %794 = arith.addf %793, %792 : vector<8x32xf32>
    %795 = arith.divf %793, %794 : vector<8x32xf32>
    %796 = vector.extract_strided_slice %789 {offsets = [0, 32], sizes = [8, 32], strides = [1, 1]} : vector<8x128xf32> to vector<8x32xf32>
    %797 = arith.negf %796 : vector<8x32xf32>
    %798 = math.exp %797 : vector<8x32xf32>
    %cst_153 = arith.constant 1.000000e+00 : f32
    %799 = vector.broadcast %cst_153 : f32 to vector<8x32xf32>
    %800 = arith.addf %799, %798 : vector<8x32xf32>
    %801 = arith.divf %799, %800 : vector<8x32xf32>
    %802 = vector.extract_strided_slice %789 {offsets = [0, 64], sizes = [8, 32], strides = [1, 1]} : vector<8x128xf32> to vector<8x32xf32>
    %803 = vector.extract_strided_slice %789 {offsets = [0, 96], sizes = [8, 32], strides = [1, 1]} : vector<8x128xf32> to vector<8x32xf32>
    %804 = arith.mulf %795, %803 : vector<8x32xf32>
    %805 = arith.addf %802, %804 : vector<8x32xf32>
    %806 = math.tanh %805 : vector<8x32xf32>
    %cst_154 = arith.constant 1.000000e+00 : f32
    %807 = vector.broadcast %cst_154 : f32 to vector<8x32xf32>
    %808 = arith.subf %807, %801 : vector<8x32xf32>
    %809 = arith.mulf %808, %806 : vector<8x32xf32>
    %810 = arith.mulf %801, %756 : vector<8x32xf32>
    %811 = arith.addf %809, %810 : vector<8x32xf32>
    %812 = tpu.concatenate %811, %781 in 1 : vector<8x32xf32>, vector<8x32xf32> -> vector<8x64xf32>
    %cst_155 = arith.constant dense<0.000000e+00> : vector<8x128xf32>
    %813 = tpu.matmul %812, %10, %cst_155 {dimension_numbers = #tpu.dot_dimension_numbers<[1], [0], [0], [1], [0, 0, 1, 1], [], []>} : vector<8x64xf32>, vector<64x128xf32>, vector<8x128xf32> -> vector<8x128xf32>
    %814 = arith.addf %813, %8 : vector<8x128xf32>
    %815 = vector.extract_strided_slice %814 {offsets = [0, 0], sizes = [8, 32], strides = [1, 1]} : vector<8x128xf32> to vector<8x32xf32>
    %816 = arith.negf %815 : vector<8x32xf32>
    %817 = math.exp %816 : vector<8x32xf32>
    %cst_156 = arith.constant 1.000000e+00 : f32
    %818 = vector.broadcast %cst_156 : f32 to vector<8x32xf32>
    %819 = arith.addf %818, %817 : vector<8x32xf32>
    %820 = arith.divf %818, %819 : vector<8x32xf32>
    %821 = vector.extract_strided_slice %814 {offsets = [0, 32], sizes = [8, 32], strides = [1, 1]} : vector<8x128xf32> to vector<8x32xf32>
    %822 = arith.negf %821 : vector<8x32xf32>
    %823 = math.exp %822 : vector<8x32xf32>
    %cst_157 = arith.constant 1.000000e+00 : f32
    %824 = vector.broadcast %cst_157 : f32 to vector<8x32xf32>
    %825 = arith.addf %824, %823 : vector<8x32xf32>
    %826 = arith.divf %824, %825 : vector<8x32xf32>
    %827 = vector.extract_strided_slice %814 {offsets = [0, 64], sizes = [8, 32], strides = [1, 1]} : vector<8x128xf32> to vector<8x32xf32>
    %828 = vector.extract_strided_slice %814 {offsets = [0, 96], sizes = [8, 32], strides = [1, 1]} : vector<8x128xf32> to vector<8x32xf32>
    %829 = arith.mulf %820, %828 : vector<8x32xf32>
    %830 = arith.addf %827, %829 : vector<8x32xf32>
    %831 = math.tanh %830 : vector<8x32xf32>
    %cst_158 = arith.constant 1.000000e+00 : f32
    %832 = vector.broadcast %cst_158 : f32 to vector<8x32xf32>
    %833 = arith.subf %832, %826 : vector<8x32xf32>
    %834 = arith.mulf %833, %831 : vector<8x32xf32>
    %835 = arith.mulf %826, %781 : vector<8x32xf32>
    %836 = arith.addf %834, %835 : vector<8x32xf32>
    %c15_i32 = arith.constant 15 : i32
    %837 = arith.index_cast %c15_i32 : i32 to index
    %c0_159 = arith.constant 0 : index
    %c0_160 = arith.constant 0 : index
    %838 = vector.load %arg1[%837, %c0_159, %c0_160] : memref<16x8x1xf32, #tpu.memory_space<vmem>>, vector<1x8x1xf32>
    %839 = vector.shape_cast %838 : vector<1x8x1xf32> to vector<8x1xf32>
    %840 = vector.broadcast %839 : vector<8x1xf32> to vector<8x128xf32>
    %841 = arith.mulf %840, %2 : vector<8x128xf32>
    %cst_161 = arith.constant dense<0.000000e+00> : vector<8x128xf32>
    %842 = tpu.matmul %811, %9, %cst_161 {dimension_numbers = #tpu.dot_dimension_numbers<[1], [0], [0], [1], [0, 0, 1, 1], [], []>} : vector<8x32xf32>, vector<32x128xf32>, vector<8x128xf32> -> vector<8x128xf32>
    %843 = arith.addf %841, %842 : vector<8x128xf32>
    %844 = arith.addf %843, %5 : vector<8x128xf32>
    %845 = vector.extract_strided_slice %844 {offsets = [0, 0], sizes = [8, 32], strides = [1, 1]} : vector<8x128xf32> to vector<8x32xf32>
    %846 = arith.negf %845 : vector<8x32xf32>
    %847 = math.exp %846 : vector<8x32xf32>
    %cst_162 = arith.constant 1.000000e+00 : f32
    %848 = vector.broadcast %cst_162 : f32 to vector<8x32xf32>
    %849 = arith.addf %848, %847 : vector<8x32xf32>
    %850 = arith.divf %848, %849 : vector<8x32xf32>
    %851 = vector.extract_strided_slice %844 {offsets = [0, 32], sizes = [8, 32], strides = [1, 1]} : vector<8x128xf32> to vector<8x32xf32>
    %852 = arith.negf %851 : vector<8x32xf32>
    %853 = math.exp %852 : vector<8x32xf32>
    %cst_163 = arith.constant 1.000000e+00 : f32
    %854 = vector.broadcast %cst_163 : f32 to vector<8x32xf32>
    %855 = arith.addf %854, %853 : vector<8x32xf32>
    %856 = arith.divf %854, %855 : vector<8x32xf32>
    %857 = vector.extract_strided_slice %844 {offsets = [0, 64], sizes = [8, 32], strides = [1, 1]} : vector<8x128xf32> to vector<8x32xf32>
    %858 = vector.extract_strided_slice %844 {offsets = [0, 96], sizes = [8, 32], strides = [1, 1]} : vector<8x128xf32> to vector<8x32xf32>
    %859 = arith.mulf %850, %858 : vector<8x32xf32>
    %860 = arith.addf %857, %859 : vector<8x32xf32>
    %861 = math.tanh %860 : vector<8x32xf32>
    %cst_164 = arith.constant 1.000000e+00 : f32
    %862 = vector.broadcast %cst_164 : f32 to vector<8x32xf32>
    %863 = arith.subf %862, %856 : vector<8x32xf32>
    %864 = arith.mulf %863, %861 : vector<8x32xf32>
    %865 = arith.mulf %856, %811 : vector<8x32xf32>
    %866 = arith.addf %864, %865 : vector<8x32xf32>
    %867 = tpu.concatenate %866, %836 in 1 : vector<8x32xf32>, vector<8x32xf32> -> vector<8x64xf32>
    %cst_165 = arith.constant dense<0.000000e+00> : vector<8x128xf32>
    %868 = tpu.matmul %867, %10, %cst_165 {dimension_numbers = #tpu.dot_dimension_numbers<[1], [0], [0], [1], [0, 0, 1, 1], [], []>} : vector<8x64xf32>, vector<64x128xf32>, vector<8x128xf32> -> vector<8x128xf32>
    %869 = arith.addf %868, %8 : vector<8x128xf32>
    %870 = vector.extract_strided_slice %869 {offsets = [0, 0], sizes = [8, 32], strides = [1, 1]} : vector<8x128xf32> to vector<8x32xf32>
    %871 = arith.negf %870 : vector<8x32xf32>
    %872 = math.exp %871 : vector<8x32xf32>
    %cst_166 = arith.constant 1.000000e+00 : f32
    %873 = vector.broadcast %cst_166 : f32 to vector<8x32xf32>
    %874 = arith.addf %873, %872 : vector<8x32xf32>
    %875 = arith.divf %873, %874 : vector<8x32xf32>
    %876 = vector.extract_strided_slice %869 {offsets = [0, 32], sizes = [8, 32], strides = [1, 1]} : vector<8x128xf32> to vector<8x32xf32>
    %877 = arith.negf %876 : vector<8x32xf32>
    %878 = math.exp %877 : vector<8x32xf32>
    %cst_167 = arith.constant 1.000000e+00 : f32
    %879 = vector.broadcast %cst_167 : f32 to vector<8x32xf32>
    %880 = arith.addf %879, %878 : vector<8x32xf32>
    %881 = arith.divf %879, %880 : vector<8x32xf32>
    %882 = vector.extract_strided_slice %869 {offsets = [0, 64], sizes = [8, 32], strides = [1, 1]} : vector<8x128xf32> to vector<8x32xf32>
    %883 = vector.extract_strided_slice %869 {offsets = [0, 96], sizes = [8, 32], strides = [1, 1]} : vector<8x128xf32> to vector<8x32xf32>
    %884 = arith.mulf %875, %883 : vector<8x32xf32>
    %885 = arith.addf %882, %884 : vector<8x32xf32>
    %886 = math.tanh %885 : vector<8x32xf32>
    %cst_168 = arith.constant 1.000000e+00 : f32
    %887 = vector.broadcast %cst_168 : f32 to vector<8x32xf32>
    %888 = arith.subf %887, %881 : vector<8x32xf32>
    %889 = arith.mulf %888, %886 : vector<8x32xf32>
    %890 = arith.mulf %881, %836 : vector<8x32xf32>
    %891 = arith.addf %889, %890 : vector<8x32xf32>
    %c16_i32 = arith.constant 16 : i32
    %c0_169 = arith.constant 0 : index
    %c0_170 = arith.constant 0 : index
    %892 = vector.load %arg7[%c0_169, %c0_170] : memref<32x1xf32, #tpu.memory_space<vmem>>, vector<32x1xf32>
    %cst_171 = arith.constant dense<0.000000e+00> : vector<8x1xf32>
    %893 = tpu.matmul %891, %892, %cst_171 {dimension_numbers = #tpu.dot_dimension_numbers<[1], [0], [0], [1], [0, 0, 1, 1], [], []>} : vector<8x32xf32>, vector<32x1xf32>, vector<8x1xf32> -> vector<8x1xf32>
    %c0_172 = arith.constant 0 : index
    %c0_173 = arith.constant 0 : index
    %894 = vector.load %arg8[%c0_172, %c0_173] : memref<1x1xf32, #tpu.memory_space<vmem>>, vector<1x1xf32>
    %895 = vector.broadcast %894 : vector<1x1xf32> to vector<8x1xf32>
    %896 = arith.addf %893, %895 : vector<8x1xf32>
    %c0_174 = arith.constant 0 : index
    %c0_175 = arith.constant 0 : index
    %897 = vector.load %arg9[%c0_174, %c0_175] : memref<8x1xf32, #tpu.memory_space<vmem>>, vector<8x1xf32>
    tpu.vector_store %arg9[%c0_174, %c0_175], %896 {strides = array<i32>} : memref<8x1xf32, #tpu.memory_space<vmem>>, vector<8x1xf32>,
    return
  }
  func.func @transform_0(%arg0: i32) -> (i32, i32, i32) {
    %c0_i32 = arith.constant 0 : i32
    %c0_i32_0 = arith.constant 0 : i32
    %c0_i32_1 = arith.constant 0 : i32
    %c0_i32_2 = arith.constant 0 : i32
    return %c0_i32, %c0_i32_0, %c0_i32_1 : i32, i32, i32
  }
  func.func @transform_1(%arg0: i32) -> (i32, i32) {
    %c0_i32 = arith.constant 0 : i32
    %c0_i32_0 = arith.constant 0 : i32
    %c0_i32_1 = arith.constant 0 : i32
    return %c0_i32, %c0_i32_0 : i32, i32
  }
  func.func @transform_2(%arg0: i32) -> (i32, i32) {
    %c0_i32 = arith.constant 0 : i32
    %c0_i32_0 = arith.constant 0 : i32
    %c0_i32_1 = arith.constant 0 : i32
    return %c0_i32, %c0_i32_0 : i32, i32
  }
  func.func @transform_3(%arg0: i32) -> (i32, i32) {
    %c0_i32 = arith.constant 0 : i32
    %c0_i32_0 = arith.constant 0 : i32
    %c0_i32_1 = arith.constant 0 : i32
    return %c0_i32, %c0_i32_0 : i32, i32
  }
  func.func @transform_4(%arg0: i32) -> (i32, i32) {
    %c0_i32 = arith.constant 0 : i32
    %c0_i32_0 = arith.constant 0 : i32
    %c0_i32_1 = arith.constant 0 : i32
    return %c0_i32, %c0_i32_0 : i32, i32
  }
  func.func @transform_5(%arg0: i32) -> (i32, i32) {
    %c0_i32 = arith.constant 0 : i32
    %c0_i32_0 = arith.constant 0 : i32
    %c0_i32_1 = arith.constant 0 : i32
    return %c0_i32, %c0_i32_0 : i32, i32
  }
  func.func @transform_6(%arg0: i32) -> (i32, i32) {
    %c0_i32 = arith.constant 0 : i32
    %c0_i32_0 = arith.constant 0 : i32
    %c0_i32_1 = arith.constant 0 : i32
    return %c0_i32, %c0_i32_0 : i32, i32
  }
  func.func @transform_7(%arg0: i32) -> (i32, i32) {
    %c0_i32 = arith.constant 0 : i32
    %c0_i32_0 = arith.constant 0 : i32
    %c0_i32_1 = arith.constant 0 : i32
    return %c0_i32, %c0_i32_0 : i32, i32
  }
  func.func @transform_8(%arg0: i32) -> (i32, i32) {
    %c0_i32 = arith.constant 0 : i32
    %c0_i32_0 = arith.constant 0 : i32
    %c0_i32_1 = arith.constant 0 : i32
    return %c0_i32, %c0_i32_0 : i32, i32
  }
}

</mosaic_0001>

<bundles_post_ra>
// kernel: gru_forward.1
= control target key start
LH: loop header
LB: loop body
LE: loop exit
PB: predicated region body
PF: predicated region fallthrough
CT: control target
= control target key end

     0   :  { %v2573_v2 = vmov 0   ;;  %v2574_v6 = vmov 0.0   ;;  %s2575_s19 = smov 32   ;;  %s2576_s20 = smov 64   ;;  %vm62_vm4 = vcmask 261120   ;;  %vm131_vm5 = vcmask 523264   ;;  %s3407_s2 = inlined_call_operand.vmem [shape: f32[32,128], index: 2, kind: input, shape index: {}]   ;;  %s3408_s0 = inlined_call_operand.vmem [shape: f32[16,8,1], index: 0, kind: input, shape index: {}]   ;;  %s3409_s1 = inlined_call_operand.vmem [shape: f32[1,128], index: 1, kind: input, shape index: {}]   ;;  %s3410_s3 = inlined_call_operand.vmem [shape: f32[1,128], index: 3, kind: input, shape index: {}]   ;;  %s3411_s5 = inlined_call_operand.vmem [shape: f32[1,128], index: 5, kind: input, shape index: {}]   ;;  %s3412_s4 = inlined_call_operand.vmem [shape: f32[64,128], index: 4, kind: input, shape index: {}]   ;;  %s3413_s6 = inlined_call_operand.vmem [shape: f32[32,1], index: 6, kind: input, shape index: {}]   ;;  %s3414_s7 = inlined_call_operand.<no memory space> [shape: f32[1,1], index: 7, kind: input, shape index: {}]   ;;  %s3415_s8 = inlined_call_operand.vmem [shape: f32[8,1], index: 8, kind: output, shape index: {}]  }
   0x1   :  { %v2626_v0 = vld [vmem:[%s3407_s2 + $0x18] sm:$0xff]  ;;  %v2631_v1 = vld [vmem:[%s3407_s2 + $0x10] sm:$0xff]  ;;  %2356 = vset.pattern.permute.xlu0 %v2573_v2  ;;  %2357 = vset.pattern.permute.xlu2 %v2573_v2  ;;  %v55_v3 = vld [vmem:[%s3408_s0] sm:$0xff]  ;;  %s2577_s21 = smov 96  }
   0x2   :  { %78 = vmatpush.msra.mxu0 %v2626_v0  ;;  %215 = vmatpush.msra.mxu2 %v2626_v0  ;;  %v2641_v4 = vld [vmem:[%s3407_s2 + $0x8] sm:$0xff]  ;;  %v2648_v5 = vld [vmem:[%s3407_s2] sm:$0xff]  ;;  %v2680_v32 = vld [vmem:[%s3412_s4 + $0x38] sm:$0xff] }
   0x3   :  { %58 = vperm.xlu0 %2356, %v55_v3   ;;  %2358 = vset.pattern.permute.xlu1 %v2573_v2  ;;  %v2665_v7 = vld [vmem:[%s3409_s1] ss:$0 sm:$0xff]  ;;  %v2685_v33 = vld [vmem:[%s3412_s4 + $0x30] sm:$0xff]  ;;  %v2692_v34 = vld [vmem:[%s3412_s4 + $0x28] sm:$0xff] }
   0x4   :  { %79 = vmatpush.msra.mxu0 %v2631_v1  ;;  %216 = vmatpush.msra.mxu2 %v2631_v1  ;;  %v2671_v10 = vld [vmem:[%s3410_s3] ss:$0 sm:$0xff]  ;;  %v2708_v36 = vld [vmem:[%s3412_s4 + $0x18] sm:$0xff]  ;;  %v2716_v37 = vld [vmem:[%s3412_s4 + $0x10] sm:$0xff] }
   0x5   :  { %143 = vmatpush.msra.mxu1 %v2680_v32  ;;  %279 = vmatpush.msra.mxu3 %v2680_v32  ;;  %v2700_v35 = vld [vmem:[%s3412_s4 + $0x20] sm:$0xff]  ;;  %v2724_v38 = vld [vmem:[%s3412_s4 + $0x8] sm:$0xff] }
   0x6   :  { %80 = vmatpush.msra.mxu0 %v2641_v4  ;;  %217 = vmatpush.msra.mxu2 %v2641_v4  ;;  %v2740_v44 = vld [vmem:[%s3412_s4] sm:$0xff]  ;;  %v2275_v45 = vld [vmem:[%s3408_s0 + $0x8] sm:$0xff] }
   0x7   :  { %144 = vmatpush.msra.mxu1 %v2685_v33  ;;  %280 = vmatpush.msra.mxu3 %v2685_v33 }
   0x8   :  { %81 = vmatpush.msra.mxu0 %v2648_v5  ;;  %218 = vmatpush.msra.mxu2 %v2648_v5 }
   0x9   :  { %82 = vmatmul.f32.vlgmr.msra.gmra.mxu0 %v2574_v6  ;;  %145 = vmatpush.msra.mxu1 %v2692_v34 }
   0xa   :  { %351 = vmatpush.msrb.mxu0 %v2626_v0  ;;  %415 = vmatpush.msrb.mxu2 %v2680_v32 }
   0xb   :  { %281 = vmatpush.msra.mxu3 %v2692_v34  ;;  %146 = vmatpush.msra.mxu1 %v2700_v35 }
   0xc   :  { %352 = vmatpush.msrb.mxu0 %v2631_v1  ;;  %416 = vmatpush.msrb.mxu2 %v2685_v33 }
   0xd   :  { %282 = vmatpush.msra.mxu3 %v2700_v35  ;;  %147 = vmatpush.msra.mxu1 %v2708_v36 }
   0xe   :  { %353 = vmatpush.msrb.mxu0 %v2641_v4  ;;  %417 = vmatpush.msrb.mxu2 %v2692_v34 }
   0xf   :  { %283 = vmatpush.msra.mxu3 %v2708_v36  ;;  %148 = vmatpush.msra.mxu1 %v2716_v37 }
  0x10   :  { %354 = vmatpush.msrb.mxu0 %v2648_v5  ;;  %418 = vmatpush.msrb.mxu2 %v2700_v35 }
  0x11   :  { %284 = vmatpush.msra.mxu3 %v2716_v37  ;;  %149 = vmatpush.msra.mxu1 %v2724_v38 }
  0x12   :  { %487 = vmatpush.msra.mxu0 %v2626_v0  ;;  %419 = vmatpush.msrb.mxu2 %v2708_v36 }
  0x13   :  { %285 = vmatpush.msra.mxu3 %v2724_v38  ;;  %150 = vmatpush.msra.mxu1 %v2740_v44 }
  0x14   :  { %488 = vmatpush.msra.mxu0 %v2631_v1  ;;  %420 = vmatpush.msrb.mxu2 %v2716_v37 }
  0x15   :  { %286 = vmatpush.msra.mxu3 %v2740_v44  ;;  %551 = vmatpush.msrb.mxu1 %v2680_v32 }
  0x16   :  { %489 = vmatpush.msra.mxu0 %v2641_v4  ;;  %421 = vmatpush.msrb.mxu2 %v2724_v38 }
  0x17   :  { %623 = vmatpush.msrb.mxu3 %v2626_v0  ;;  %552 = vmatpush.msrb.mxu1 %v2685_v33 }
  0x18   :  { %490 = vmatpush.msra.mxu0 %v2648_v5  ;;  %422 = vmatpush.msrb.mxu2 %v2740_v44 }
  0x19   :  { %624 = vmatpush.msrb.mxu3 %v2631_v1  ;;  %553 = vmatpush.msrb.mxu1 %v2692_v34 }
  0x1b   :  { %625 = vmatpush.msrb.mxu3 %v2641_v4  ;;  %554 = vmatpush.msrb.mxu1 %v2700_v35 }
  0x1d   :  { %626 = vmatpush.msrb.mxu3 %v2648_v5  ;;  %555 = vmatpush.msrb.mxu1 %v2708_v36 }
  0x1f   :  { %556 = vmatpush.msrb.mxu1 %v2716_v37 }
  0x21   :  { %557 = vmatpush.msrb.mxu1 %v2724_v38 }
  0x23   :  { %558 = vmatpush.msrb.mxu1 %v2740_v44 }
  0x75   :  { %v59_v8 = vpop.permute.xlu0 %58 }
  0x76   :  { %v61_v9 = vmul.f32 %v2665_v7, %v59_v8 }
  0x86   :  { %v83_v11 = vpop.f32.mrf.mxu0 }
  0x87   :  { %v86_v12 = vadd.f32 %v83_v11, %v61_v9 }
  0x89   :  { %v87_v13 = vadd.f32 %v2671_v10, %v86_v12 }
  0x8b   :  { %108 = vrot.lane.b32.xlu0 %v87_v13, %s2575_s19  ;;  %v2272_v14 = vmul.f32 -1.442695, %v87_v13 }
  0x8d   :  { %2363 = vpow2.f32 %v2272_v14 }
  0x93   :  { %v2364_v15 = vpop.eup %2363 }
  0x94   :  { %v91_v16 = vadd.f32 1.0, %v2364_v15 }
  0x96   :  { %2365 = vrcp.f32 %v91_v16  ;;  %v103_v22 = vand.u32 2147483648, %v91_v16  ;;  %vm97_vm1 = vweird.f32 %v91_v16  ;;  %v101_v23 = vand.u32 2147483647, %v91_v16 }
  0x98   :  { %v104_v25 = vor.u32 1.1754944e-38, %v103_v22  ;;  %vm102_vm3 = vcmp.eq.f32.partialorder %v101_v23, 8.507059e+37 }
  0x9c   :  { %v2366_v17 = vpop.eup %2365 }
  0x9d   :  { %v93_v18 = vmul.f32 %v2366_v17, %v91_v16  ;;  %vm98_vm0 = vweird.f32 %v2366_v17 }
  0x9e   :  { %vm99_vm2 = vmor %vm97_vm1, %vm98_vm0 }
  0x9f   :  { %v94_v19 = vsub.f32 1.0, %v93_v18  ;;  %v2280_v18 = vld [vmem:[%s3408_s0 + $0x10] sm:$0xff] }
  0xa1   :  { %v95_v20 = vmul.f32 %v2366_v17, %v94_v19 }
  0xa3   :  { %v96_v21 = vadd.f32 %v2366_v17, %v95_v20 }
  0xa5   :  { %v100_v24 = vsel %vm99_vm2, %v2366_v17, %v96_v21 }
  0xa6   :  { %v105_v27 = vsel %vm102_vm3, %v104_v25, %v100_v24 }
  0xa7   :  { %v118_v39 = vsub.f32 1.0, %v105_v27  ;;  %v124_v42 = vmul.f32 0.0, %v105_v27 }
  0xfd   :  { %v109_v26 = vpop.permute.xlu0 %108 }
  0xfe   :  { %v111_v28 = vmul.f32 %v109_v26, %v105_v27 }
 0x100   :  { %113 = vrot.lane.b32.xlu1 %v111_v28, %s2576_s20 }
 0x172   :  { %v114_v29 = vpop.permute.xlu1 %113 }
 0x173   :  { %v116_v30 = vadd.f32 %v114_v29, %v87_v13 }
 0x175   :  { %2367 = vtanh.f32 %v116_v30 }
 0x17b   :  { %v2368_v31 = vpop.eup %2367 }
 0x17c   :  { %120 = vrot.lane.b32.xlu1 %v2368_v31, %s2577_s21 }
 0x1ee   :  { %v121_v40 = vpop.permute.xlu1 %120 }
 0x1ef   :  { %v123_v41 = vmul.f32 %v121_v40, %v118_v39 }
 0x1f1   :  { %v2733_v43 = vadd.f32 %v124_v42, %v123_v41 }
 0x1f3   :  { %127 = vrot.lane.b32.xlu2 %v2733_v43, %s2577_s21 }
 0x1fb   :  { %197 = vperm.xlu2 %2357, %v2275_v45  }
 0x24d   :  { %v128_v46 = vpop.permute.xlu2 %127 }
 0x24e   :  { %2276 = vmatmul.msk.f32.vlgmr.msra.gmra.mxu2 %vm62_vm4, %v128_v46  ;;  %v130_v47 = vsel %vm62_vm4, %v128_v46, 0.0 }
 0x24f   :  { %2273 = vmatmul.msk.f32.vlgmr.msra.gmra.mxu1 %vm131_vm5, %v130_v47  ;;  %759 = vmatpush.msra.mxu2 %v2626_v0 }
 0x250   :  { %895 = vmatpush.msra.mxu1 %v2626_v0 }
 0x251   :  { %760 = vmatpush.msra.mxu2 %v2631_v1 }
 0x252   :  { %896 = vmatpush.msra.mxu1 %v2631_v1 }
 0x253   :  { %761 = vmatpush.msra.mxu2 %v2641_v4 }
 0x254   :  { %897 = vmatpush.msra.mxu1 %v2641_v4 }
 0x255   :  { %762 = vmatpush.msra.mxu2 %v2648_v5  ;;  %v198_v48 = vpop.permute.xlu2 %197 }
 0x256   :  { %898 = vmatpush.msra.mxu1 %v2648_v5  ;;  %v200_v49 = vmul.f32 %v2665_v7, %v198_v48  ;;  %v2285_v48 = vld [vmem:[%s3408_s0 + $0x18] sm:$0xff] }
 0x2d1   :  { %v220_v50 = vpop.f32.mrf.mxu2 }
 0x2d2   :  { %v223_v51 = vadd.f32 %v220_v50, %v200_v49 }
 0x2d4   :  { %v224_v52 = vadd.f32 %v2671_v10, %v223_v51 }
 0x2d6   :  { %245 = vrot.lane.b32.xlu0 %v224_v52, %s2575_s19  ;;  %v2277_v53 = vmul.f32 -1.442695, %v224_v52 }
 0x2d8   :  { %2369 = vpow2.f32 %v2277_v53  ;;  %v152_v53 = vpop.f32.mrf.mxu1 }
 0x2de   :  { %v2370_v54 = vpop.eup %2369 }
 0x2df   :  { %v228_v55 = vadd.f32 1.0, %v2370_v54 }
 0x2e1   :  { %2371 = vrcp.f32 %v228_v55  ;;  %v240_v61 = vand.u32 2147483648, %v228_v55  ;;  %vm234_vm7 = vweird.f32 %v228_v55  ;;  %v238_v62 = vand.u32 2147483647, %v228_v55 }
 0x2e3   :  { %v241_v2 = vor.u32 1.1754944e-38, %v240_v61  ;;  %vm239_vm9 = vcmp.eq.f32.partialorder %v238_v62, 8.507059e+37 }
 0x2e7   :  { %v2372_v56 = vpop.eup %2371 }
 0x2e8   :  { %v230_v57 = vmul.f32 %v2372_v56, %v228_v55  ;;  %vm235_vm6 = vweird.f32 %v2372_v56 }
 0x2e9   :  { %vm236_vm8 = vmor %vm234_vm7, %vm235_vm6 }
 0x2ea   :  { %v231_v58 = vsub.f32 1.0, %v230_v57 }
 0x2ec   :  { %v232_v59 = vmul.f32 %v2372_v56, %v231_v58 }
 0x2ee   :  { %v233_v60 = vadd.f32 %v2372_v56, %v232_v59 }
 0x2f0   :  { %v237_v63 = vsel %vm236_vm8, %v2372_v56, %v233_v60 }
 0x2f1   :  { %v242_v6 = vsel %vm239_vm9, %v241_v2, %v237_v63 }
 0x2f2   :  { %v255_v13 = vsub.f32 1.0, %v242_v6  ;;  %v261_v15 = vmul.f32 %v242_v6, %v2733_v43 }
 0x348   :  { %v246_v3 = vpop.permute.xlu0 %245 }
 0x349   :  { %v248_v8 = vmul.f32 %v246_v3, %v242_v6 }
 0x34b   :  { %250 = vrot.lane.b32.xlu1 %v248_v8, %s2576_s20 }
 0x353   :  { %333 = vperm.xlu1 %2358, %v2280_v18  }
 0x3bd   :  { %v251_v9 = vpop.permute.xlu1 %250 }
 0x3be   :  { %v253_v11 = vadd.f32 %v251_v9, %v224_v52  ;;  %v2807_v52 = vld [vmem:[%s3411_s5] ss:$0 sm:$0xff] }
 0x3bf   :  { %v153_v54 = vadd.f32 %v2807_v52, %v152_v53 }
 0x3c0   :  { %2373 = vtanh.f32 %v253_v11 }
 0x3c1   :  { %v2274_v55 = vmul.f32 -1.442695, %v153_v54 }
 0x3c5   :  { %v334_v20 = vpop.permute.xlu1 %333 }
 0x3c6   :  { %v2374_v12 = vpop.eup %2373  ;;  %v336_v21 = vmul.f32 %v2665_v7, %v334_v20 }
 0x3c7   :  { %257 = vrot.lane.b32.xlu2 %v2374_v12, %s2577_s21 }
 0x421   :  { %v258_v14 = vpop.permute.xlu2 %257 }
 0x422   :  { %v260_v16 = vmul.f32 %v258_v14, %v255_v13 }
 0x424   :  { %v2777_v17 = vadd.f32 %v261_v15, %v260_v16 }
 0x426   :  { %264 = vrot.lane.b32.xlu0 %v2777_v17, %s2577_s21 }
 0x498   :  { %v2784_v19 = vpop.permute.xlu0 %264 }
 0x499   :  { %2281 = vmatmul.msk.f32.vlgmr.msrb.gmra.mxu0 %vm62_vm4, %v2784_v19 }
 0x49a   :  { %687 = vmatpush.msrb.mxu0 %v2680_v32 }
 0x49c   :  { %688 = vmatpush.msrb.mxu0 %v2685_v33 }
 0x49e   :  { %689 = vmatpush.msrb.mxu0 %v2692_v34 }
 0x4a0   :  { %690 = vmatpush.msrb.mxu0 %v2700_v35 }
 0x4a2   :  { %691 = vmatpush.msrb.mxu0 %v2708_v36 }
 0x4a4   :  { %692 = vmatpush.msrb.mxu0 %v2716_v37 }
 0x4a6   :  { %693 = vmatpush.msrb.mxu0 %v2724_v38 }
 0x4a8   :  { %694 = vmatpush.msrb.mxu0 %v2740_v44 }
 0x516   :  { %v356_v22 = vpop.f32.mrf.mxu0 }
 0x517   :  { %v359_v23 = vadd.f32 %v356_v22, %v336_v21 }
 0x519   :  { %v360_v24 = vadd.f32 %v2671_v10, %v359_v23 }
 0x51b   :  { %381 = vrot.lane.b32.xlu2 %v360_v24, %s2575_s19  ;;  %v2282_v25 = vmul.f32 -1.442695, %v360_v24 }
 0x51d   :  { %2375 = vpow2.f32 %v2282_v25 }
 0x523   :  { %v2376_v26 = vpop.eup %2375 }
 0x524   :  { %v364_v27 = vadd.f32 1.0, %v2376_v26 }
 0x526   :  { %2377 = vrcp.f32 %v364_v27  ;;  %v376_v40 = vand.u32 2147483648, %v364_v27  ;;  %vm370_vm11 = vweird.f32 %v364_v27  ;;  %v374_v41 = vand.u32 2147483647, %v364_v27 }
 0x528   :  { %v377_v43 = vor.u32 1.1754944e-38, %v376_v40  ;;  %vm375_vm13 = vcmp.eq.f32.partialorder %v374_v41, 8.507059e+37 }
 0x52c   :  { %v2378_v28 = vpop.eup %2377 }
 0x52d   :  { %v366_v29 = vmul.f32 %v2378_v28, %v364_v27  ;;  %vm371_vm10 = vweird.f32 %v2378_v28 }
 0x52e   :  { %vm372_vm12 = vmor %vm370_vm11, %vm371_vm10 }
 0x52f   :  { %v367_v30 = vsub.f32 1.0, %v366_v29 }
 0x531   :  { %v368_v31 = vmul.f32 %v2378_v28, %v367_v30 }
 0x533   :  { %v369_v39 = vadd.f32 %v2378_v28, %v368_v31 }
 0x535   :  { %v373_v42 = vsel %vm372_vm12, %v2378_v28, %v369_v39 }
 0x536   :  { %v378_v46 = vsel %vm375_vm13, %v377_v43, %v373_v42 }
 0x537   :  { %v391_v62 = vsub.f32 1.0, %v378_v46  ;;  %v397_v2 = vmul.f32 %v378_v46, %v2777_v17 }
 0x575   :  { %v382_v45 = vpop.permute.xlu2 %381 }
 0x576   :  { %v384_v47 = vmul.f32 %v382_v45, %v378_v46 }
 0x578   :  { %386 = vrot.lane.b32.xlu0 %v384_v47, %s2576_s20 }
 0x580   :  { %469 = vperm.xlu0 %2356, %v2285_v48  }
 0x5ea   :  { %v387_v49 = vpop.permute.xlu0 %386 }
 0x5eb   :  { %v389_v50 = vadd.f32 %v387_v49, %v360_v24 }
 0x5ed   :  { %2379 = vtanh.f32 %v389_v50 }
 0x5ee   :  { %2381 = vpow2.f32 %v2274_v55 }
 0x5f2   :  { %v470_v18 = vpop.permute.xlu0 %469 }
 0x5f3   :  { %v2380_v51 = vpop.eup %2379  ;;  %v472_v20 = vmul.f32 %v2665_v7, %v470_v18 }
 0x5f4   :  { %393 = vrot.lane.b32.xlu1 %v2380_v51, %s2577_s21  ;;  %v2382_v56 = vpop.eup %2381 }
 0x5f5   :  { %v158_v57 = vadd.f32 1.0, %v2382_v56 }
 0x5f7   :  { %2383 = vrcp.f32 %v158_v57  ;;  %v170_v8 = vand.u32 2147483648, %v158_v57  ;;  %vm164_vm15 = vweird.f32 %v158_v57  ;;  %v168_v11 = vand.u32 2147483647, %v158_v57 }
 0x5f9   :  { %v171_v13 = vor.u32 1.1754944e-38, %v170_v8  ;;  %vm169_vm1 = vcmp.eq.f32.partialorder %v168_v11, 8.507059e+37 }
 0x5fc   :  { %175 = vrot.lane.b32.xlu1 %v153_v54, %s2575_s19 }
 0x5fd   :  { %v2384_v58 = vpop.eup %2383 }
 0x5fe   :  { %v160_v59 = vmul.f32 %v2384_v58, %v158_v57  ;;  %vm165_vm14 = vweird.f32 %v2384_v58 }
 0x5ff   :  { %vm166_vm0 = vmor %vm164_vm15, %vm165_vm14 }
 0x600   :  { %v161_v60 = vsub.f32 1.0, %v160_v59  ;;  %v2290_v59 = vld [vmem:[%s3408_s0 + $0x20] sm:$0xff] }
 0x602   :  { %v162_v61 = vmul.f32 %v2384_v58, %v161_v60 }
 0x604   :  { %v163_v6 = vadd.f32 %v2384_v58, %v162_v61 }
 0x606   :  { %v167_v12 = vsel %vm166_vm0, %v2384_v58, %v163_v6 }
 0x607   :  { %v172_v14 = vsel %vm169_vm1, %v171_v13, %v167_v12 }
 0x608   :  { %v185_v50 = vsub.f32 1.0, %v172_v14  ;;  %v191_v53 = vmul.f32 0.0, %v172_v14 }
 0x666   :  { %v394_v63 = vpop.permute.xlu1 %393 }
 0x667   :  { %v396_v3 = vmul.f32 %v394_v63, %v391_v62 }
 0x669   :  { %v2812_v9 = vadd.f32 %v397_v2, %v396_v3 }
 0x66b   :  { %400 = vrot.lane.b32.xlu2 %v2812_v9, %s2577_s21 }
 0x66e   :  { %v176_v15 = vpop.permute.xlu1 %175 }
 0x66f   :  { %v178_v16 = vmul.f32 %v176_v15, %v172_v14 }
 0x671   :  { %180 = vrot.lane.b32.xlu0 %v178_v16, %s2576_s20 }
 0x6c5   :  { %v2817_v17 = vpop.permute.xlu2 %400 }
 0x6c6   :  { %2286 = vmatmul.msk.f32.vlgmr.msra.gmra.mxu0 %vm62_vm4, %v2817_v17 }
 0x6c7   :  { %1031 = vmatpush.msra.mxu0 %v2626_v0 }
 0x6c9   :  { %1032 = vmatpush.msra.mxu0 %v2631_v1 }
 0x6cb   :  { %1033 = vmatpush.msra.mxu0 %v2641_v4 }
 0x6cd   :  { %1034 = vmatpush.msra.mxu0 %v2648_v5 }
 0x6e3   :  { %v181_v21 = vpop.permute.xlu0 %180 }
 0x6e4   :  { %v183_v24 = vadd.f32 %v181_v21, %v153_v54 }
 0x6e6   :  { %2385 = vtanh.f32 %v183_v24 }
 0x6ec   :  { %v2386_v26 = vpop.eup %2385 }
 0x743   :  { %v492_v22 = vpop.f32.mrf.mxu0 }
 0x744   :  { %v495_v23 = vadd.f32 %v492_v22, %v472_v20 }
 0x746   :  { %v496_v25 = vadd.f32 %v2671_v10, %v495_v23 }
 0x748   :  { %517 = vrot.lane.b32.xlu2 %v496_v25, %s2575_s19  ;;  %v2287_v27 = vmul.f32 -1.442695, %v496_v25 }
 0x74a   :  { %2387 = vpow2.f32 %v2287_v27 }
 0x750   :  { %187 = vrot.lane.b32.xlu2 %v2386_v26, %s2577_s21  ;;  %v2388_v28 = vpop.eup %2387 }
 0x751   :  { %v500_v29 = vadd.f32 1.0, %v2388_v28 }
 0x753   :  { %2389 = vrcp.f32 %v500_v29  ;;  %v512_v42 = vand.u32 2147483648, %v500_v29  ;;  %vm506_vm3 = vweird.f32 %v500_v29  ;;  %v510_v43 = vand.u32 2147483647, %v500_v29 }
 0x755   :  { %v513_v46 = vor.u32 1.1754944e-38, %v512_v42  ;;  %vm511_vm7 = vcmp.eq.f32.partialorder %v510_v43, 8.507059e+37 }
 0x759   :  { %v2390_v30 = vpop.eup %2389 }
 0x75a   :  { %v502_v31 = vmul.f32 %v2390_v30, %v500_v29  ;;  %vm507_vm2 = vweird.f32 %v2390_v30 }
 0x75b   :  { %vm508_vm6 = vmor %vm506_vm3, %vm507_vm2 }
 0x75c   :  { %v503_v39 = vsub.f32 1.0, %v502_v31 }
 0x75e   :  { %v504_v40 = vmul.f32 %v2390_v30, %v503_v39 }
 0x760   :  { %v505_v41 = vadd.f32 %v2390_v30, %v504_v40 }
 0x762   :  { %v509_v45 = vsel %vm508_vm6, %v2390_v30, %v505_v41 }
 0x763   :  { %v514_v48 = vsel %vm511_vm7, %v513_v46, %v509_v45 }
 0x764   :  { %v527_v12 = vsub.f32 1.0, %v514_v48  ;;  %v533_v14 = vmul.f32 %v514_v48, %v2812_v9 }
 0x7a2   :  { %v518_v47 = vpop.permute.xlu2 %517 }
 0x7a3   :  { %v520_v49 = vmul.f32 %v518_v47, %v514_v48 }
 0x7a5   :  { %522 = vrot.lane.b32.xlu1 %v520_v49, %s2576_s20 }
 0x7aa   :  { %v188_v51 = vpop.permute.xlu2 %187 }
 0x7ab   :  { %v190_v54 = vmul.f32 %v188_v51, %v185_v50 }
 0x7ad   :  { %v2830_v55 = vadd.f32 %v191_v53, %v190_v54 }
 0x7af   :  { %v267_v56 = vsel %vm62_vm4, %v2784_v19, %v2830_v55 }
 0x7b0   :  { %2278 = vmatmul.msk.f32.vlgmr.msra.gmra.mxu3 %vm131_vm5, %v267_v56 }
 0x7b1   :  { %823 = vmatpush.msra.mxu3 %v2680_v32 }
 0x7b3   :  { %824 = vmatpush.msra.mxu3 %v2685_v33 }
 0x7b5   :  { %825 = vmatpush.msra.mxu3 %v2692_v34 }
 0x7b7   :  { %826 = vmatpush.msra.mxu3 %v2700_v35 }
 0x7b9   :  { %827 = vmatpush.msra.mxu3 %v2708_v36 }
 0x7bb   :  { %828 = vmatpush.msra.mxu3 %v2716_v37 }
 0x7bd   :  { %829 = vmatpush.msra.mxu3 %v2724_v38 }
 0x7bf   :  { %830 = vmatpush.msra.mxu3 %v2740_v44 }
 0x817   :  { %v523_v57 = vpop.permute.xlu1 %522 }
 0x818   :  { %v525_v19 = vadd.f32 %v523_v57, %v496_v25 }
 0x81a   :  { %2391 = vtanh.f32 %v525_v19 }
 0x820   :  { %v2392_v58 = vpop.eup %2391 }
 0x821   :  { %529 = vrot.lane.b32.xlu0 %v2392_v58, %s2577_s21 }
 0x829   :  { %605 = vperm.xlu0 %2356, %v2290_v59  }
 0x833   :  { %v288_v60 = vpop.f32.mrf.mxu3 }
 0x834   :  { %v289_v61 = vadd.f32 %v2807_v52, %v288_v60 }
 0x836   :  { %311 = vrot.lane.b32.xlu2 %v289_v61, %s2575_s19  ;;  %v2279_v62 = vmul.f32 -1.442695, %v289_v61 }
 0x838   :  { %2393 = vpow2.f32 %v2279_v62 }
 0x83e   :  { %v2394_v63 = vpop.eup %2393 }
 0x83f   :  { %v294_v2 = vadd.f32 1.0, %v2394_v63 }
 0x841   :  { %2395 = vrcp.f32 %v294_v2  ;;  %v306_v20 = vand.u32 2147483648, %v294_v2  ;;  %vm300_vm9 = vweird.f32 %v294_v2  ;;  %v304_v21 = vand.u32 2147483647, %v294_v2 }
 0x843   :  { %v307_v24 = vor.u32 1.1754944e-38, %v306_v20  ;;  %vm305_vm11 = vcmp.eq.f32.partialorder %v304_v21, 8.507059e+37 }
 0x847   :  { %v2396_v3 = vpop.eup %2395 }
 0x848   :  { %v296_v6 = vmul.f32 %v2396_v3, %v294_v2  ;;  %vm301_vm8 = vweird.f32 %v2396_v3 }
 0x849   :  { %vm302_vm10 = vmor %vm300_vm9, %vm301_vm8 }
 0x84a   :  { %v297_v8 = vsub.f32 1.0, %v296_v6 }
 0x84c   :  { %v298_v11 = vmul.f32 %v2396_v3, %v297_v8 }
 0x84e   :  { %v299_v16 = vadd.f32 %v2396_v3, %v298_v11 }
 0x850   :  { %v303_v22 = vsel %vm302_vm10, %v2396_v3, %v299_v16 }
 0x851   :  { %v308_v25 = vsel %vm305_vm11, %v307_v24, %v303_v22 }
 0x852   :  { %v321_v39 = vsub.f32 1.0, %v308_v25  ;;  %v327_v43 = vmul.f32 %v308_v25, %v2830_v55 }
 0x890   :  { %v312_v23 = vpop.permute.xlu2 %311 }
 0x891   :  { %v314_v26 = vmul.f32 %v312_v23, %v308_v25 }
 0x893   :  { %v530_v13 = vpop.permute.xlu0 %529 }
 0x894   :  { %v532_v15 = vmul.f32 %v530_v13, %v527_v12 }
 0x896   :  { %v2851_v18 = vadd.f32 %v533_v14, %v532_v15 }
 0x898   :  { %536 = vrot.lane.b32.xlu1 %v2851_v18, %s2577_s21 }
 0x89b   :  { %v606_v30 = vpop.permute.xlu0 %605 }
 0x89c   :  { %v608_v31 = vmul.f32 %v2665_v7, %v606_v30 }
 0x8a0   :  { %316 = vrot.lane.b32.xlu1 %v314_v26, %s2576_s20 }
 0x90a   :  { %v2856_v9 = vpop.permute.xlu1 %536 }
 0x90b   :  { %2291 = vmatmul.msk.f32.vlgmr.msrb.gmra.mxu3 %vm62_vm4, %v2856_v9 }
 0x90c   :  { %1167 = vmatpush.msrb.mxu3 %v2626_v0 }
 0x90e   :  { %1168 = vmatpush.msrb.mxu3 %v2631_v1 }
 0x910   :  { %1169 = vmatpush.msrb.mxu3 %v2641_v4 }
 0x912   :  { %v317_v27 = vpop.permute.xlu1 %316  ;;  %1170 = vmatpush.msrb.mxu3 %v2648_v5 }
 0x913   :  { %v319_v28 = vadd.f32 %v317_v27, %v289_v61 }
 0x915   :  { %2397 = vtanh.f32 %v319_v28 }
 0x91b   :  { %v2398_v29 = vpop.eup %2397 }
 0x91c   :  { %323 = vrot.lane.b32.xlu0 %v2398_v29, %s2577_s21 }
 0x98e   :  { %v628_v40 = vpop.f32.mrf.mxu3  ;;  %v324_v41 = vpop.permute.xlu0 %323 }
 0x98f   :  { %v631_v42 = vadd.f32 %v628_v40, %v608_v31  ;;  %v326_v45 = vmul.f32 %v324_v41, %v321_v39  ;;  %v2295_v41 = vld [vmem:[%s3408_s0 + $0x28] sm:$0xff] }
 0x991   :  { %v632_v46 = vadd.f32 %v2671_v10, %v631_v42  ;;  %v2868_v47 = vadd.f32 %v327_v43, %v326_v45 }
 0x993   :  { %653 = vrot.lane.b32.xlu2 %v632_v46, %s2575_s19  ;;  %v403_v48 = vsel %vm62_vm4, %v2817_v17, %v2868_v47  ;;  %v2292_v49 = vmul.f32 -1.442695, %v632_v46 }
 0x994   :  { %2283 = vmatmul.msk.f32.vlgmr.msrb.gmra.mxu2 %vm131_vm5, %v403_v48 }
 0x995   :  { %959 = vmatpush.msrb.mxu2 %v2680_v32  ;;  %2399 = vpow2.f32 %v2292_v49 }
 0x997   :  { %960 = vmatpush.msrb.mxu2 %v2685_v33 }
 0x999   :  { %961 = vmatpush.msrb.mxu2 %v2692_v34 }
 0x99b   :  { %962 = vmatpush.msrb.mxu2 %v2700_v35  ;;  %v2400_v17 = vpop.eup %2399 }
 0x99c   :  { %v636_v50 = vadd.f32 1.0, %v2400_v17 }
 0x99d   :  { %963 = vmatpush.msrb.mxu2 %v2708_v36 }
 0x99e   :  { %2401 = vrcp.f32 %v636_v50  ;;  %v648_v57 = vand.u32 2147483648, %v636_v50  ;;  %vm642_vm13 = vweird.f32 %v636_v50  ;;  %v646_v19 = vand.u32 2147483647, %v636_v50 }
 0x99f   :  { %964 = vmatpush.msrb.mxu2 %v2716_v37 }
 0x9a0   :  { %v649_v59 = vor.u32 1.1754944e-38, %v648_v57  ;;  %vm647_vm15 = vcmp.eq.f32.partialorder %v646_v19, 8.507059e+37 }
 0x9a1   :  { %965 = vmatpush.msrb.mxu2 %v2724_v38 }
 0x9a3   :  { %966 = vmatpush.msrb.mxu2 %v2740_v44 }
 0x9a4   :  { %v2402_v51 = vpop.eup %2401 }
 0x9a5   :  { %v638_v53 = vmul.f32 %v2402_v51, %v636_v50  ;;  %vm643_vm12 = vweird.f32 %v2402_v51 }
 0x9a6   :  { %vm644_vm14 = vmor %vm642_vm13, %vm643_vm12 }
 0x9a7   :  { %v639_v54 = vsub.f32 1.0, %v638_v53 }
 0x9a9   :  { %v640_v55 = vmul.f32 %v2402_v51, %v639_v54 }
 0x9ab   :  { %v641_v56 = vadd.f32 %v2402_v51, %v640_v55 }
 0x9ad   :  { %v645_v58 = vsel %vm644_vm14, %v2402_v51, %v641_v56 }
 0x9ae   :  { %v650_v61 = vsel %vm647_vm15, %v649_v59, %v645_v58 }
 0x9af   :  { %v663_v29 = vsub.f32 1.0, %v650_v61  ;;  %v669_v31 = vmul.f32 %v650_v61, %v2851_v18 }
 0x9ed   :  { %v654_v60 = vpop.permute.xlu2 %653 }
 0x9ee   :  { %v656_v62 = vmul.f32 %v654_v60, %v650_v61 }
 0x9f0   :  { %658 = vrot.lane.b32.xlu1 %v656_v62, %s2576_s20 }
 0xa17   :  { %v424_v63 = vpop.f32.mrf.mxu2 }
 0xa18   :  { %v425_v2 = vadd.f32 %v2807_v52, %v424_v63 }
 0xa1a   :  { %447 = vrot.lane.b32.xlu1 %v425_v2, %s2575_s19  ;;  %v2284_v3 = vmul.f32 -1.442695, %v425_v2 }
 0xa1c   :  { %2403 = vpow2.f32 %v2284_v3 }
 0xa22   :  { %v2404_v11 = vpop.eup %2403 }
 0xa23   :  { %v430_v13 = vadd.f32 1.0, %v2404_v11 }
 0xa25   :  { %v442_v22 = vand.u32 2147483648, %v430_v13  ;;  %vm436_vm1 = vweird.f32 %v430_v13  ;;  %v440_v23 = vand.u32 2147483647, %v430_v13 }
 0xa27   :  { %v443_v25 = vor.u32 1.1754944e-38, %v442_v22  ;;  %vm441_vm3 = vcmp.eq.f32.partialorder %v440_v23, 8.507059e+37 }
 0xa62   :  { %v659_v6 = vpop.permute.xlu1 %658 }
 0xa63   :  { %v661_v8 = vadd.f32 %v659_v6, %v632_v46  ;;  %v2300_v6 = vld [vmem:[%s3408_s0 + $0x30] sm:$0xff] }
 0xa65   :  { %2405 = vtanh.f32 %v661_v8 }
 0xa66   :  { %2407 = vrcp.f32 %v430_v13 }
 0xa6b   :  { %v2406_v12 = vpop.eup %2405 }
 0xa6c   :  { %665 = vrot.lane.b32.xlu2 %v2406_v12, %s2577_s21  ;;  %v2408_v14 = vpop.eup %2407 }
 0xa6d   :  { %v432_v15 = vmul.f32 %v2408_v14, %v430_v13  ;;  %vm437_vm0 = vweird.f32 %v2408_v14 }
 0xa6e   :  { %vm438_vm2 = vmor %vm436_vm1, %vm437_vm0 }
 0xa6f   :  { %v433_v16 = vsub.f32 1.0, %v432_v15 }
 0xa71   :  { %v434_v20 = vmul.f32 %v2408_v14, %v433_v16 }
 0xa73   :  { %v435_v21 = vadd.f32 %v2408_v14, %v434_v20 }
 0xa75   :  { %v439_v24 = vsel %vm438_vm2, %v2408_v14, %v435_v21 }
 0xa76   :  { %v444_v27 = vsel %vm441_vm3, %v443_v25, %v439_v24 }
 0xa77   :  { %v457_v18 = vsub.f32 1.0, %v444_v27  ;;  %v463_v49 = vmul.f32 %v444_v27, %v2868_v47 }
 0xa8c   :  { %v448_v26 = vpop.permute.xlu1 %447 }
 0xa8d   :  { %v450_v28 = vmul.f32 %v448_v26, %v444_v27 }
 0xa8f   :  { %452 = vrot.lane.b32.xlu2 %v450_v28, %s2576_s20 }
 0xac6   :  { %v666_v30 = vpop.permute.xlu2 %665 }
 0xac7   :  { %v668_v39 = vmul.f32 %v666_v30, %v663_v29 }
 0xac9   :  { %v2889_v40 = vadd.f32 %v669_v31, %v668_v39 }
 0xacb   :  { %672 = vrot.lane.b32.xlu0 %v2889_v40, %s2577_s21 }
 0xad3   :  { %741 = vperm.xlu0 %2356, %v2295_v41  }
 0xae9   :  { %v453_v42 = vpop.permute.xlu2 %452 }
 0xaea   :  { %v455_v43 = vadd.f32 %v453_v42, %v425_v2 }
 0xaec   :  { %2409 = vtanh.f32 %v455_v43 }
 0xaf2   :  { %v2410_v45 = vpop.eup %2409 }
 0xaf3   :  { %459 = vrot.lane.b32.xlu1 %v2410_v45, %s2577_s21 }
 0xb3d   :  { %v2897_v46 = vpop.permute.xlu0 %672 }
 0xb3e   :  { %2296 = vmatmul.msk.f32.vlgmr.msra.gmra.mxu2 %vm62_vm4, %v2897_v46 }
 0xb3f   :  { %1303 = vmatpush.msra.mxu2 %v2626_v0 }
 0xb41   :  { %1304 = vmatpush.msra.mxu2 %v2631_v1 }
 0xb43   :  { %1305 = vmatpush.msra.mxu2 %v2641_v4 }
 0xb45   :  { %1306 = vmatpush.msra.mxu2 %v2648_v5  ;;  %v742_v0 = vpop.permute.xlu0 %741 }
 0xb46   :  { %v744_v1 = vmul.f32 %v2665_v7, %v742_v0  ;;  %v2962_v0 = vld [vmem:[%s3407_s2] sm:$0xff] }
 0xb65   :  { %v460_v48 = vpop.permute.xlu1 %459 }
 0xb66   :  { %v462_v17 = vmul.f32 %v460_v48, %v457_v18 }
 0xb68   :  { %v2906_v50 = vadd.f32 %v463_v49, %v462_v17  ;;  %v2950_v17 = vld [vmem:[%s3407_s2 + $0x10] sm:$0xff] }
 0xb6a   :  { %v539_v51 = vsel %vm62_vm4, %v2856_v9, %v2906_v50 }
 0xb6b   :  { %2288 = vmatmul.msk.f32.vlgmr.msrb.gmra.mxu1 %vm131_vm5, %v539_v51  ;;  %v2956_v51 = vld [vmem:[%s3407_s2 + $0x8] sm:$0xff] }
 0xb6c   :  { %1095 = vmatpush.msrb.mxu1 %v2680_v32 }
 0xb6e   :  { %1096 = vmatpush.msrb.mxu1 %v2685_v33 }
 0xb70   :  { %1097 = vmatpush.msrb.mxu1 %v2692_v34 }
 0xb72   :  { %1098 = vmatpush.msrb.mxu1 %v2700_v35 }
 0xb74   :  { %1099 = vmatpush.msrb.mxu1 %v2708_v36 }
 0xb76   :  { %1100 = vmatpush.msrb.mxu1 %v2716_v37 }
 0xb78   :  { %1101 = vmatpush.msrb.mxu1 %v2724_v38 }
 0xb7a   :  { %1102 = vmatpush.msrb.mxu1 %v2740_v44 }
 0xbc1   :  { %v764_v4 = vpop.f32.mrf.mxu2 }
 0xbc2   :  { %v767_v5 = vadd.f32 %v764_v4, %v744_v1 }
 0xbc4   :  { %v768_v9 = vadd.f32 %v2671_v10, %v767_v5 }
 0xbc6   :  { %789 = vrot.lane.b32.xlu2 %v768_v9, %s2575_s19  ;;  %v2297_v47 = vmul.f32 -1.442695, %v768_v9 }
 0xbc8   :  { %2411 = vpow2.f32 %v2297_v47 }
 0xbce   :  { %v2412_v53 = vpop.eup %2411 }
 0xbcf   :  { %v772_v54 = vadd.f32 1.0, %v2412_v53 }
 0xbd1   :  { %2413 = vrcp.f32 %v772_v54  ;;  %v784_v59 = vand.u32 2147483648, %v772_v54  ;;  %vm778_vm7 = vweird.f32 %v772_v54  ;;  %v782_v7 = vand.u32 2147483647, %v772_v54 }
 0xbd3   :  { %v785_v61 = vor.u32 1.1754944e-38, %v784_v59  ;;  %vm783_vm9 = vcmp.eq.f32.partialorder %v782_v7, 8.507059e+37 }
 0xbd7   :  { %v2414_v55 = vpop.eup %2413 }
 0xbd8   :  { %v774_v56 = vmul.f32 %v2414_v55, %v772_v54  ;;  %vm779_vm6 = vweird.f32 %v2414_v55 }
 0xbd9   :  { %vm780_vm8 = vmor %vm778_vm7, %vm779_vm6 }
 0xbda   :  { %v775_v57 = vsub.f32 1.0, %v774_v56 }
 0xbdc   :  { %v776_v19 = vmul.f32 %v2414_v55, %v775_v57 }
 0xbde   :  { %v777_v58 = vadd.f32 %v2414_v55, %v776_v19 }
 0xbe0   :  { %v781_v60 = vsel %vm780_vm8, %v2414_v55, %v777_v58 }
 0xbe1   :  { %v786_v62 = vsel %vm783_vm9, %v785_v61, %v781_v60 }
 0xbe2   :  { %v799_v31 = vsub.f32 1.0, %v786_v62  ;;  %v805_v41 = vmul.f32 %v786_v62, %v2889_v40  ;;  %v2944_v40 = vld [vmem:[%s3407_s2 + $0x18] sm:$0xff] }
 0xbe8   :  { %v560_v2 = vpop.f32.mrf.mxu1 }
 0xbe9   :  { %v561_v3 = vadd.f32 %v2807_v52, %v560_v2 }
 0xbeb   :  { %v2289_v8 = vmul.f32 -1.442695, %v561_v3 }
 0xbed   :  { %2415 = vpow2.f32 %v2289_v8 }
 0xbf3   :  { %v2416_v11 = vpop.eup %2415 }
 0xbf4   :  { %v566_v12 = vadd.f32 1.0, %v2416_v11 }
 0xbf6   :  { %2417 = vrcp.f32 %v566_v12  ;;  %v578_v24 = vand.u32 2147483648, %v566_v12  ;;  %vm572_vm11 = vweird.f32 %v566_v12  ;;  %v576_v25 = vand.u32 2147483647, %v566_v12 }
 0xbf8   :  { %v579_v27 = vor.u32 1.1754944e-38, %v578_v24  ;;  %vm577_vm13 = vcmp.eq.f32.partialorder %v576_v25, 8.507059e+37 }
 0xbfc   :  { %v2418_v13 = vpop.eup %2417 }
 0xbfd   :  { %v568_v14 = vmul.f32 %v2418_v13, %v566_v12  ;;  %vm573_vm10 = vweird.f32 %v2418_v13 }
 0xbfe   :  { %vm574_vm12 = vmor %vm572_vm11, %vm573_vm10 }
 0xbff   :  { %v569_v16 = vsub.f32 1.0, %v568_v14 }
 0xc01   :  { %v570_v21 = vmul.f32 %v2418_v13, %v569_v16 }
 0xc03   :  { %v571_v22 = vadd.f32 %v2418_v13, %v570_v21 }
 0xc05   :  { %v575_v26 = vsel %vm574_vm12, %v2418_v13, %v571_v22 }
 0xc06   :  { %v580_v29 = vsel %vm577_vm13, %v579_v27, %v575_v26 }
 0xc07   :  { %v593_v1 = vsub.f32 1.0, %v580_v29  ;;  %v599_v5 = vmul.f32 %v580_v29, %v2906_v50 }
 0xc20   :  { %v790_v10 = vpop.permute.xlu2 %789 }
 0xc21   :  { %v792_v63 = vmul.f32 %v790_v10, %v786_v62 }
 0xc23   :  { %794 = vrot.lane.b32.xlu0 %v792_v63, %s2576_s20 }
 0xc2b   :  { %583 = vrot.lane.b32.xlu0 %v561_v3, %s2575_s19 }
 0xc33   :  { %877 = vperm.xlu0 %2356, %v2300_v6  }
 0xc95   :  { %v795_v15 = vpop.permute.xlu0 %794 }
 0xc96   :  { %v797_v20 = vadd.f32 %v795_v15, %v768_v9 }
 0xc98   :  { %2419 = vtanh.f32 %v797_v20 }
 0xc9d   :  { %v584_v28 = vpop.permute.xlu0 %583 }
 0xc9e   :  { %v2420_v23 = vpop.eup %2419  ;;  %v586_v30 = vmul.f32 %v584_v28, %v580_v29 }
 0xc9f   :  { %801 = vrot.lane.b32.xlu1 %v2420_v23, %s2577_s21 }
 0xca5   :  { %v878_v50 = vpop.permute.xlu0 %877 }
 0xca7   :  { %588 = vrot.lane.b32.xlu1 %v586_v30, %s2576_s20 }
 0xd11   :  { %v802_v39 = vpop.permute.xlu1 %801 }
 0xd12   :  { %v804_v42 = vmul.f32 %v802_v39, %v799_v31 }
 0xd14   :  { %v2932_v43 = vadd.f32 %v805_v41, %v804_v42 }
 0xd16   :  { %808 = vrot.lane.b32.xlu2 %v2932_v43, %s2577_s21 }
 0xd19   :  { %v589_v45 = vpop.permute.xlu1 %588 }
 0xd1a   :  { %v591_v18 = vadd.f32 %v589_v45, %v561_v3 }
 0xd1c   :  { %2421 = vtanh.f32 %v591_v18  ;;  %v2305_v18 = vld [vmem:[%s3408_s0 + $0x38] sm:$0xff] }
 0xd22   :  { %v2422_v48 = vpop.eup %2421 }
 0xd23   :  { %595 = vrot.lane.b32.xlu2 %v2422_v48, %s2577_s21 }
 0xd70   :  { %v2937_v49 = vpop.permute.xlu2 %808 }
 0xd71   :  { %2301 = vmatmul.msk.f32.vlgmr.msra.gmra.mxu1 %vm62_vm4, %v2937_v49 }
 0xd72   :  { %1439 = vmatpush.msra.mxu1 %v2944_v40 }
 0xd74   :  { %1440 = vmatpush.msra.mxu1 %v2950_v17 }
 0xd76   :  { %1441 = vmatpush.msra.mxu1 %v2956_v51 }
 0xd78   :  { %1442 = vmatpush.msra.mxu1 %v2962_v0 }
 0xd7d   :  { %v596_v4 = vpop.permute.xlu2 %595 }
 0xd7e   :  { %v598_v9 = vmul.f32 %v596_v4, %v593_v1 }
 0xd80   :  { %v2966_v47 = vadd.f32 %v599_v5, %v598_v9 }
 0xd82   :  { %v675_v53 = vsel %vm62_vm4, %v2897_v46, %v2966_v47  ;;  %v2983_v46 = vld [vmem:[%s3409_s1] ss:$0 sm:$0xff] }
 0xd83   :  { %2293 = vmatmul.msk.f32.vlgmr.msrb.gmra.mxu0 %vm131_vm5, %v675_v53 }
 0xd84   :  { %1231 = vmatpush.msrb.mxu0 %v2680_v32  ;;  %v880_v32 = vmul.f32 %v2983_v46, %v878_v50 }
 0xd86   :  { %1232 = vmatpush.msrb.mxu0 %v2685_v33 }
 0xd88   :  { %1233 = vmatpush.msrb.mxu0 %v2692_v34 }
 0xd8a   :  { %1234 = vmatpush.msrb.mxu0 %v2700_v35  ;;  %v2989_v35 = vld [vmem:[%s3410_s3] ss:$0 sm:$0xff] }
 0xd8c   :  { %1235 = vmatpush.msrb.mxu0 %v2708_v36 }
 0xd8e   :  { %1236 = vmatpush.msrb.mxu0 %v2716_v37 }
 0xd90   :  { %1237 = vmatpush.msrb.mxu0 %v2724_v38 }
 0xd92   :  { %1238 = vmatpush.msrb.mxu0 %v2740_v44 }
 0xdee   :  { %v900_v33 = vpop.f32.mrf.mxu1 }
 0xdef   :  { %v903_v34 = vadd.f32 %v900_v33, %v880_v32  ;;  %v3025_v32 = vld [vmem:[%s3412_s4 + $0x38] sm:$0xff]  ;;  %v3043_v33 = vld [vmem:[%s3412_s4 + $0x20] sm:$0xff] }
 0xdf1   :  { %v904_v36 = vadd.f32 %v2989_v35, %v903_v34  ;;  %v3049_v34 = vld [vmem:[%s3412_s4 + $0x18] sm:$0xff] }
 0xdf3   :  { %925 = vrot.lane.b32.xlu1 %v904_v36, %s2575_s19  ;;  %v2302_v44 = vmul.f32 -1.442695, %v904_v36 }
 0xdf5   :  { %2423 = vpow2.f32 %v2302_v44 }
 0xdfb   :  { %v2424_v54 = vpop.eup %2423 }
 0xdfc   :  { %v908_v55 = vadd.f32 1.0, %v2424_v54 }
 0xdfe   :  { %2425 = vrcp.f32 %v908_v55  ;;  %v920_v7 = vand.u32 2147483648, %v908_v55  ;;  %vm914_vm15 = vweird.f32 %v908_v55  ;;  %v918_v60 = vand.u32 2147483647, %v908_v55 }
 0xe00   :  { %v696_v37 = vpop.f32.mrf.mxu0  ;;  %v921_v10 = vor.u32 1.1754944e-38, %v920_v7  ;;  %vm919_vm1 = vcmp.eq.f32.partialorder %v918_v60, 8.507059e+37 }
 0xe01   :  { %v697_v38 = vadd.f32 %v2807_v52, %v696_v37  ;;  %v3061_v37 = vld [vmem:[%s3412_s4 + $0x8] sm:$0xff] }
 0xe03   :  { %719 = vrot.lane.b32.xlu1 %v697_v38, %s2575_s19  ;;  %v2294_v3 = vmul.f32 -1.442695, %v697_v38 }
 0xe04   :  { %v2426_v56 = vpop.eup %2425 }
 0xe05   :  { %v910_v57 = vmul.f32 %v2426_v56, %v908_v55  ;;  %vm915_vm14 = vweird.f32 %v2426_v56  ;;  %2427 = vpow2.f32 %v2294_v3 }
 0xe06   :  { %vm916_vm0 = vmor %vm914_vm15, %vm915_vm14 }
 0xe07   :  { %v911_v19 = vsub.f32 1.0, %v910_v57 }
 0xe09   :  { %v912_v58 = vmul.f32 %v2426_v56, %v911_v19 }
 0xe0b   :  { %v913_v59 = vadd.f32 %v2426_v56, %v912_v58  ;;  %v2428_v6 = vpop.eup %2427 }
 0xe0c   :  { %v702_v8 = vadd.f32 1.0, %v2428_v6 }
 0xe0d   :  { %v917_v61 = vsel %vm916_vm0, %v2426_v56, %v913_v59 }
 0xe0e   :  { %v922_v63 = vsel %vm919_vm1, %v921_v10, %v917_v61  ;;  %2429 = vrcp.f32 %v702_v8  ;;  %v714_v22 = vand.u32 2147483648, %v702_v8  ;;  %vm708_vm3 = vweird.f32 %v702_v8 }
 0xe0f   :  { %v712_v23 = vand.u32 2147483647, %v702_v8  ;;  %v935_v29 = vsub.f32 1.0, %v922_v63  ;;  %v941_v31 = vmul.f32 %v922_v63, %v2932_v43 }
 0xe10   :  { %v715_v25 = vor.u32 1.1754944e-38, %v714_v22 }
 0xe11   :  { %vm713_vm7 = vcmp.eq.f32.partialorder %v712_v23, 8.507059e+37 }
 0xe14   :  { %v2430_v11 = vpop.eup %2429 }
 0xe15   :  { %v704_v12 = vmul.f32 %v2430_v11, %v702_v8  ;;  %vm709_vm2 = vweird.f32 %v2430_v11 }
 0xe16   :  { %vm710_vm6 = vmor %vm708_vm3, %vm709_vm2 }
 0xe17   :  { %v705_v13 = vsub.f32 1.0, %v704_v12 }
 0xe19   :  { %v706_v16 = vmul.f32 %v2430_v11, %v705_v13 }
 0xe1b   :  { %v707_v20 = vadd.f32 %v2430_v11, %v706_v16 }
 0xe1d   :  { %v711_v24 = vsel %vm710_vm6, %v2430_v11, %v707_v20 }
 0xe1e   :  { %v716_v27 = vsel %vm713_vm7, %v715_v25, %v711_v24 }
 0xe1f   :  { %v729_v43 = vsub.f32 1.0, %v716_v27  ;;  %v735_v5 = vmul.f32 %v716_v27, %v2966_v47  ;;  %v3031_v47 = vld [vmem:[%s3412_s4 + $0x30] sm:$0xff] }
 0xe65   :  { %v926_v62 = vpop.permute.xlu1 %925 }
 0xe66   :  { %v928_v2 = vmul.f32 %v926_v62, %v922_v63 }
 0xe68   :  { %930 = vrot.lane.b32.xlu2 %v928_v2, %s2576_s20 }
 0xe75   :  { %v720_v26 = vpop.permute.xlu1 %719 }
 0xe76   :  { %v722_v28 = vmul.f32 %v720_v26, %v716_v27 }
 0xec2   :  { %v931_v14 = vpop.permute.xlu2 %930 }
 0xec3   :  { %v933_v15 = vadd.f32 %v931_v14, %v904_v36  ;;  %v3055_v36 = vld [vmem:[%s3412_s4 + $0x10] sm:$0xff] }
 0xec5   :  { %2431 = vtanh.f32 %v933_v15 }
 0xecb   :  { %v2432_v21 = vpop.eup %2431 }
 0xecc   :  { %937 = vrot.lane.b32.xlu0 %v2432_v21, %s2577_s21 }
 0xed4   :  { %724 = vrot.lane.b32.xlu0 %v722_v28, %s2576_s20 }
 0xf3e   :  { %v938_v30 = vpop.permute.xlu0 %937 }
 0xf3f   :  { %v940_v39 = vmul.f32 %v938_v30, %v935_v29 }
 0xf41   :  { %v2999_v41 = vadd.f32 %v941_v31, %v940_v39 }
 0xf43   :  { %944 = vrot.lane.b32.xlu2 %v2999_v41, %s2577_s21 }
 0xf46   :  { %v725_v42 = vpop.permute.xlu0 %724 }
 0xf47   :  { %v727_v45 = vadd.f32 %v725_v42, %v697_v38  ;;  %v3067_v38 = vld [vmem:[%s3412_s4] sm:$0xff] }
 0xf49   :  { %2433 = vtanh.f32 %v727_v45 }
 0xf4b   :  { %1013 = vperm.xlu2 %2357, %v2305_v18  }
 0xf4f   :  { %v2434_v48 = vpop.eup %2433 }
 0xf50   :  { %731 = vrot.lane.b32.xlu1 %v2434_v48, %s2577_s21 }
 0xf9d   :  { %v3007_v1 = vpop.permute.xlu2 %944 }
 0xf9e   :  { %2306 = vmatmul.msk.f32.vlgmr.msra.gmra.mxu0 %vm62_vm4, %v3007_v1 }
 0xf9f   :  { %1575 = vmatpush.msra.mxu0 %v2944_v40 }
 0xfa1   :  { %1576 = vmatpush.msra.mxu0 %v2950_v17 }
 0xfa3   :  { %1577 = vmatpush.msra.mxu0 %v2956_v51 }
 0xfa5   :  { %1578 = vmatpush.msra.mxu0 %v2962_v0  ;;  %v1014_v44 = vpop.permute.xlu2 %1013 }
 0xfa6   :  { %v1016_v54 = vmul.f32 %v2983_v46, %v1014_v44  ;;  %v2310_v44 = vld [vmem:[%s3408_s0 + $0x40] sm:$0xff] }
 0xfc2   :  { %v732_v4 = vpop.permute.xlu1 %731 }
 0xfc3   :  { %v734_v9 = vmul.f32 %v732_v4, %v729_v43 }
 0xfc5   :  { %v3016_v53 = vadd.f32 %v735_v5, %v734_v9 }
 0xfc7   :  { %v811_v50 = vsel %vm62_vm4, %v2937_v49, %v3016_v53  ;;  %v3037_v49 = vld [vmem:[%s3412_s4 + $0x28] sm:$0xff] }
 0xfc8   :  { %2298 = vmatmul.msk.f32.vlgmr.msra.gmra.mxu3 %vm131_vm5, %v811_v50 }
 0xfc9   :  { %1367 = vmatpush.msra.mxu3 %v3025_v32 }
 0xfcb   :  { %1368 = vmatpush.msra.mxu3 %v3031_v47 }
 0xfcd   :  { %1369 = vmatpush.msra.mxu3 %v3037_v49 }
 0xfcf   :  { %1370 = vmatpush.msra.mxu3 %v3043_v33 }
 0xfd1   :  { %1371 = vmatpush.msra.mxu3 %v3049_v34 }
 0xfd3   :  { %1372 = vmatpush.msra.mxu3 %v3055_v36 }
 0xfd5   :  { %1373 = vmatpush.msra.mxu3 %v3061_v37 }
 0xfd7   :  { %1374 = vmatpush.msra.mxu3 %v3067_v38 }
0x101b   :  { %v1036_v55 = vpop.f32.mrf.mxu0 }
0x101c   :  { %v1039_v56 = vadd.f32 %v1036_v55, %v1016_v54 }
0x101e   :  { %v1040_v57 = vadd.f32 %v2989_v35, %v1039_v56 }
0x1020   :  { %1061 = vrot.lane.b32.xlu0 %v1040_v57, %s2575_s19  ;;  %v2307_v59 = vmul.f32 -1.442695, %v1040_v57 }
0x1022   :  { %2435 = vpow2.f32 %v2307_v59 }
0x1028   :  { %v2436_v7 = vpop.eup %2435 }
0x1029   :  { %v1044_v60 = vadd.f32 1.0, %v2436_v7 }
0x102b   :  { %2437 = vrcp.f32 %v1044_v60  ;;  %v1056_v3 = vand.u32 2147483648, %v1044_v60  ;;  %vm1050_vm9 = vweird.f32 %v1044_v60  ;;  %v1054_v6 = vand.u32 2147483647, %v1044_v60 }
0x102d   :  { %v1057_v11 = vor.u32 1.1754944e-38, %v1056_v3  ;;  %vm1055_vm11 = vcmp.eq.f32.partialorder %v1054_v6, 8.507059e+37 }
0x1031   :  { %v2438_v61 = vpop.eup %2437 }
0x1032   :  { %v1046_v10 = vmul.f32 %v2438_v61, %v1044_v60  ;;  %vm1051_vm8 = vweird.f32 %v2438_v61 }
0x1033   :  { %vm1052_vm10 = vmor %vm1050_vm9, %vm1051_vm8 }
0x1034   :  { %v1047_v62 = vsub.f32 1.0, %v1046_v10 }
0x1036   :  { %v1048_v63 = vmul.f32 %v2438_v61, %v1047_v62  ;;  %v3116_v62 = vld [vmem:[%s3411_s5] ss:$0 sm:$0xff] }
0x1038   :  { %v1049_v2 = vadd.f32 %v2438_v61, %v1048_v63 }
0x103a   :  { %v1053_v8 = vsel %vm1052_vm10, %v2438_v61, %v1049_v2 }
0x104b   :  { %v832_v19 = vpop.f32.mrf.mxu3 }
0x104c   :  { %v833_v58 = vadd.f32 %v2807_v52, %v832_v19  ;;  %v1058_v52 = vsel %vm1055_vm11, %v1057_v11, %v1053_v8 }
0x104d   :  { %v1071_v18 = vsub.f32 1.0, %v1058_v52  ;;  %v1077_v43 = vmul.f32 %v1058_v52, %v2999_v41 }
0x104e   :  { %855 = vrot.lane.b32.xlu0 %v833_v58, %s2575_s19  ;;  %v2299_v14 = vmul.f32 -1.442695, %v833_v58 }
0x1050   :  { %2439 = vpow2.f32 %v2299_v14 }
0x1056   :  { %v2440_v15 = vpop.eup %2439 }
0x1057   :  { %v838_v16 = vadd.f32 1.0, %v2440_v15 }
0x1059   :  { %2441 = vrcp.f32 %v838_v16  ;;  %v850_v28 = vand.u32 2147483648, %v838_v16  ;;  %vm844_vm13 = vweird.f32 %v838_v16  ;;  %v848_v29 = vand.u32 2147483647, %v838_v16 }
0x105b   :  { %v851_v31 = vor.u32 1.1754944e-38, %v850_v28  ;;  %vm849_vm15 = vcmp.eq.f32.partialorder %v848_v29, 8.507059e+37 }
0x105f   :  { %v2442_v20 = vpop.eup %2441 }
0x1060   :  { %v840_v21 = vmul.f32 %v2442_v20, %v838_v16  ;;  %vm845_vm12 = vweird.f32 %v2442_v20 }
0x1061   :  { %vm846_vm14 = vmor %vm844_vm13, %vm845_vm12 }
0x1062   :  { %v841_v22 = vsub.f32 1.0, %v840_v21 }
0x1064   :  { %v842_v25 = vmul.f32 %v2442_v20, %v841_v22 }
0x1066   :  { %v843_v26 = vadd.f32 %v2442_v20, %v842_v25 }
0x1068   :  { %v847_v30 = vsel %vm846_vm14, %v2442_v20, %v843_v26 }
0x1069   :  { %v852_v42 = vsel %vm849_vm15, %v851_v31, %v847_v30 }
0x106a   :  { %v865_v41 = vsub.f32 1.0, %v852_v42 }
0x1092   :  { %v1062_v12 = vpop.permute.xlu0 %1061 }
0x1093   :  { %v1064_v13 = vmul.f32 %v1062_v12, %v1058_v52 }
0x1095   :  { %1066 = vrot.lane.b32.xlu1 %v1064_v13, %s2576_s20 }
0x10c0   :  { %v856_v39 = vpop.permute.xlu0 %855 }
0x10c1   :  { %v858_v45 = vmul.f32 %v856_v39, %v852_v42 }
0x1107   :  { %v1067_v23 = vpop.permute.xlu1 %1066 }
0x1108   :  { %v1069_v24 = vadd.f32 %v1067_v23, %v1040_v57  ;;  %v871_v57 = vmul.f32 %v852_v42, %v3016_v53 }
0x110a   :  { %2443 = vtanh.f32 %v1069_v24 }
0x1110   :  { %v2444_v27 = vpop.eup %2443 }
0x1111   :  { %1073 = vrot.lane.b32.xlu2 %v2444_v27, %s2577_s21 }
0x1119   :  { %860 = vrot.lane.b32.xlu2 %v858_v45, %s2576_s20 }
0x116b   :  { %v1074_v48 = vpop.permute.xlu2 %1073 }
0x116c   :  { %v1076_v4 = vmul.f32 %v1074_v48, %v1071_v18 }
0x116e   :  { %v3079_v5 = vadd.f32 %v1077_v43, %v1076_v4 }
0x1170   :  { %1080 = vrot.lane.b32.xlu1 %v3079_v5, %s2577_s21 }
0x1173   :  { %v861_v9 = vpop.permute.xlu2 %860 }
0x1174   :  { %v863_v50 = vadd.f32 %v861_v9, %v833_v58  ;;  %v2315_v9 = vld [vmem:[%s3408_s0 + $0x48] sm:$0xff] }
0x1176   :  { %2445 = vtanh.f32 %v863_v50 }
0x1178   :  { %1149 = vperm.xlu1 %2358, %v2310_v44  }
0x117c   :  { %v2446_v54 = vpop.eup %2445 }
0x117d   :  { %867 = vrot.lane.b32.xlu0 %v2446_v54, %s2577_s21 }
0x11e2   :  { %v3087_v55 = vpop.permute.xlu1 %1080 }
0x11e3   :  { %2311 = vmatmul.msk.f32.vlgmr.msrb.gmra.mxu3 %vm62_vm4, %v3087_v55 }
0x11e4   :  { %1711 = vmatpush.msrb.mxu3 %v2944_v40 }
0x11e6   :  { %1712 = vmatpush.msrb.mxu3 %v2950_v17 }
0x11e8   :  { %1713 = vmatpush.msrb.mxu3 %v2956_v51 }
0x11ea   :  { %1714 = vmatpush.msrb.mxu3 %v2962_v0  ;;  %v1150_v53 = vpop.permute.xlu1 %1149 }
0x11ef   :  { %v868_v56 = vpop.permute.xlu0 %867 }
0x11f0   :  { %v870_v19 = vmul.f32 %v868_v56, %v865_v41 }
0x11f2   :  { %v3096_v58 = vadd.f32 %v871_v57, %v870_v19 }
0x11f4   :  { %v947_v59 = vsel %vm62_vm4, %v3007_v1, %v3096_v58  ;;  %v1152_v1 = vmul.f32 %v2983_v46, %v1150_v53 }
0x11f5   :  { %2303 = vmatmul.msk.f32.vlgmr.msrb.gmra.mxu2 %vm131_vm5, %v947_v59 }
0x11f6   :  { %1503 = vmatpush.msrb.mxu2 %v3025_v32 }
0x11f8   :  { %1504 = vmatpush.msrb.mxu2 %v3031_v47 }
0x11fa   :  { %1505 = vmatpush.msrb.mxu2 %v3037_v49 }
0x11fc   :  { %1506 = vmatpush.msrb.mxu2 %v3043_v33 }
0x11fe   :  { %1507 = vmatpush.msrb.mxu2 %v3049_v34 }
0x1200   :  { %1508 = vmatpush.msrb.mxu2 %v3055_v36 }
0x1202   :  { %1509 = vmatpush.msrb.mxu2 %v3061_v37 }
0x1204   :  { %1510 = vmatpush.msrb.mxu2 %v3067_v38 }
0x1266   :  { %v1172_v7 = vpop.f32.mrf.mxu3 }
0x1267   :  { %v1175_v60 = vadd.f32 %v1172_v7, %v1152_v1 }
0x1269   :  { %v1176_v61 = vadd.f32 %v2989_v35, %v1175_v60 }
0x126b   :  { %1197 = vrot.lane.b32.xlu2 %v1176_v61, %s2575_s19  ;;  %v2312_v2 = vmul.f32 -1.442695, %v1176_v61 }
0x126d   :  { %2447 = vpow2.f32 %v2312_v2 }
0x1273   :  { %v2448_v3 = vpop.eup %2447 }
0x1274   :  { %v1180_v6 = vadd.f32 1.0, %v2448_v3 }
0x1276   :  { %2449 = vrcp.f32 %v1180_v6  ;;  %v1192_v14 = vand.u32 2147483648, %v1180_v6  ;;  %vm1186_vm1 = vweird.f32 %v1180_v6  ;;  %v1190_v16 = vand.u32 2147483647, %v1180_v6 }
0x1278   :  { %v968_v10 = vpop.f32.mrf.mxu2  ;;  %v1193_v21 = vor.u32 1.1754944e-38, %v1192_v14  ;;  %vm1191_vm3 = vcmp.eq.f32.partialorder %v1190_v16, 8.507059e+37 }
0x1279   :  { %v969_v63 = vadd.f32 %v3116_v62, %v968_v10 }
0x127b   :  { %991 = vrot.lane.b32.xlu1 %v969_v63, %s2575_s19  ;;  %v2304_v15 = vmul.f32 -1.442695, %v969_v63 }
0x127c   :  { %v2450_v8 = vpop.eup %2449 }
0x127d   :  { %v1182_v11 = vmul.f32 %v2450_v8, %v1180_v6  ;;  %vm1187_vm0 = vweird.f32 %v2450_v8  ;;  %2451 = vpow2.f32 %v2304_v15 }
0x127e   :  { %vm1188_vm2 = vmor %vm1186_vm1, %vm1187_vm0 }
0x127f   :  { %v1183_v52 = vsub.f32 1.0, %v1182_v11 }
0x1281   :  { %v1184_v12 = vmul.f32 %v2450_v8, %v1183_v52 }
0x1283   :  { %v1185_v13 = vadd.f32 %v2450_v8, %v1184_v12  ;;  %v2452_v25 = vpop.eup %2451 }
0x1284   :  { %v974_v26 = vadd.f32 1.0, %v2452_v25 }
0x1285   :  { %v1189_v20 = vsel %vm1188_vm2, %v2450_v8, %v1185_v13 }
0x1286   :  { %v1194_v22 = vsel %vm1191_vm3, %v1193_v21, %v1189_v20  ;;  %2453 = vrcp.f32 %v974_v26  ;;  %v986_v39 = vand.u32 2147483648, %v974_v26  ;;  %vm980_vm7 = vweird.f32 %v974_v26 }
0x1287   :  { %v984_v42 = vand.u32 2147483647, %v974_v26  ;;  %v1207_v19 = vsub.f32 1.0, %v1194_v22  ;;  %v1213_v53 = vmul.f32 %v1194_v22, %v3079_v5 }
0x1288   :  { %v987_v18 = vor.u32 1.1754944e-38, %v986_v39 }
0x1289   :  { %vm985_vm9 = vcmp.eq.f32.partialorder %v984_v42, 8.507059e+37 }
0x128c   :  { %v2454_v27 = vpop.eup %2453 }
0x128d   :  { %v976_v28 = vmul.f32 %v2454_v27, %v974_v26  ;;  %vm981_vm6 = vweird.f32 %v2454_v27 }
0x128e   :  { %vm982_vm8 = vmor %vm980_vm7, %vm981_vm6 }
0x128f   :  { %v977_v29 = vsub.f32 1.0, %v976_v28 }
0x1291   :  { %v978_v30 = vmul.f32 %v2454_v27, %v977_v29 }
0x1293   :  { %v979_v31 = vadd.f32 %v2454_v27, %v978_v30 }
0x1295   :  { %v983_v45 = vsel %vm982_vm8, %v2454_v27, %v979_v31 }
0x1296   :  { %v988_v43 = vsel %vm985_vm9, %v987_v18, %v983_v45 }
0x1297   :  { %v1001_v60 = vsub.f32 1.0, %v988_v43  ;;  %v1007_v10 = vmul.f32 %v988_v43, %v3096_v58 }
0x12c5   :  { %v1198_v23 = vpop.permute.xlu2 %1197 }
0x12c6   :  { %v1200_v24 = vmul.f32 %v1198_v23, %v1194_v22 }
0x12c8   :  { %1202 = vrot.lane.b32.xlu0 %v1200_v24, %s2576_s20 }
0x12ed   :  { %v992_v48 = vpop.permute.xlu1 %991 }
0x12ee   :  { %v994_v4 = vmul.f32 %v992_v48, %v988_v43 }
0x12f0   :  { %996 = vrot.lane.b32.xlu0 %v994_v4, %s2576_s20 }
0x12f8   :  { %1285 = vperm.xlu0 %2356, %v2315_v9  }
0x133a   :  { %v1203_v50 = vpop.permute.xlu0 %1202 }
0x133b   :  { %v1205_v44 = vadd.f32 %v1203_v50, %v1176_v61 }
0x133d   :  { %2455 = vtanh.f32 %v1205_v44 }
0x1343   :  { %v2456_v54 = vpop.eup %2455 }
0x1344   :  { %1209 = vrot.lane.b32.xlu2 %v2456_v54, %s2577_s21 }
0x1362   :  { %v997_v41 = vpop.permute.xlu0 %996 }
0x1363   :  { %v999_v56 = vadd.f32 %v997_v41, %v969_v63 }
0x1365   :  { %2457 = vtanh.f32 %v999_v56 }
0x136a   :  { %v1286_v13 = vpop.permute.xlu0 %1285 }
0x136b   :  { %v2458_v57 = vpop.eup %2457  ;;  %v1288_v15 = vmul.f32 %v2983_v46, %v1286_v13 }
0x136c   :  { %1003 = vrot.lane.b32.xlu2 %v2458_v57, %s2577_s21 }
0x139e   :  { %v1210_v59 = vpop.permute.xlu2 %1209 }
0x139f   :  { %v1212_v1 = vmul.f32 %v1210_v59, %v1207_v19 }
0x13a1   :  { %v3128_v7 = vadd.f32 %v1213_v53, %v1212_v1 }
0x13a3   :  { %1216 = vrot.lane.b32.xlu1 %v3128_v7, %s2577_s21 }
0x13c6   :  { %v1004_v61 = vpop.permute.xlu2 %1003 }
0x13c7   :  { %v1006_v2 = vmul.f32 %v1004_v61, %v1001_v60 }
0x13c9   :  { %v3133_v63 = vadd.f32 %v1007_v10, %v1006_v2  ;;  %v2320_v10 = vld [vmem:[%s3408_s0 + $0x50] sm:$0xff] }
0x13cb   :  { %v1083_v3 = vsel %vm62_vm4, %v3087_v55, %v3133_v63 }
0x13cc   :  { %2308 = vmatmul.msk.f32.vlgmr.msrb.gmra.mxu1 %vm131_vm5, %v1083_v3 }
0x13cd   :  { %1639 = vmatpush.msrb.mxu1 %v3025_v32 }
0x13cf   :  { %1640 = vmatpush.msrb.mxu1 %v3031_v47 }
0x13d1   :  { %1641 = vmatpush.msrb.mxu1 %v3037_v49 }
0x13d3   :  { %1642 = vmatpush.msrb.mxu1 %v3043_v33 }
0x13d5   :  { %1643 = vmatpush.msrb.mxu1 %v3049_v34 }
0x13d7   :  { %1644 = vmatpush.msrb.mxu1 %v3055_v36 }
0x13d9   :  { %1645 = vmatpush.msrb.mxu1 %v3061_v37 }
0x13db   :  { %1646 = vmatpush.msrb.mxu1 %v3067_v38 }
0x1415   :  { %v3147_v5 = vpop.permute.xlu1 %1216 }
0x1416   :  { %2316 = vmatmul.msk.f32.vlgmr.msra.gmra.mxu2 %vm62_vm4, %v3147_v5 }
0x1417   :  { %1847 = vmatpush.msra.mxu2 %v2944_v40 }
0x1419   :  { %1848 = vmatpush.msra.mxu2 %v2950_v17 }
0x141b   :  { %1849 = vmatpush.msra.mxu2 %v2956_v51 }
0x141d   :  { %1850 = vmatpush.msra.mxu2 %v2962_v0 }
0x1449   :  { %v1104_v55 = vpop.f32.mrf.mxu1 }
0x144a   :  { %v1105_v58 = vadd.f32 %v3116_v62, %v1104_v55 }
0x144c   :  { %1127 = vrot.lane.b32.xlu2 %v1105_v58, %s2575_s19  ;;  %v2309_v6 = vmul.f32 -1.442695, %v1105_v58 }
0x144e   :  { %2459 = vpow2.f32 %v2309_v6 }
0x1454   :  { %v2460_v8 = vpop.eup %2459 }
0x1455   :  { %v1110_v11 = vadd.f32 1.0, %v2460_v8 }
0x1457   :  { %2461 = vrcp.f32 %v1110_v11  ;;  %v1122_v24 = vand.u32 2147483648, %v1110_v11  ;;  %vm1116_vm11 = vweird.f32 %v1110_v11  ;;  %v1120_v25 = vand.u32 2147483647, %v1110_v11 }
0x1459   :  { %v1123_v27 = vor.u32 1.1754944e-38, %v1122_v24  ;;  %vm1121_vm13 = vcmp.eq.f32.partialorder %v1120_v25, 8.507059e+37 }
0x145d   :  { %v2462_v52 = vpop.eup %2461 }
0x145e   :  { %v1112_v12 = vmul.f32 %v2462_v52, %v1110_v11  ;;  %vm1117_vm10 = vweird.f32 %v2462_v52 }
0x145f   :  { %vm1118_vm12 = vmor %vm1116_vm11, %vm1117_vm10 }
0x1460   :  { %v1113_v14 = vsub.f32 1.0, %v1112_v12 }
0x1462   :  { %v1114_v21 = vmul.f32 %v2462_v52, %v1113_v14 }
0x1464   :  { %v1115_v23 = vadd.f32 %v2462_v52, %v1114_v21 }
0x1466   :  { %v1119_v26 = vsel %vm1118_vm12, %v2462_v52, %v1115_v23 }
0x1467   :  { %v1124_v29 = vsel %vm1121_vm13, %v1123_v27, %v1119_v26 }
0x1468   :  { %v1137_v2 = vsub.f32 1.0, %v1124_v29  ;;  %v1143_v55 = vmul.f32 %v1124_v29, %v3133_v63 }
0x1499   :  { %v1308_v16 = vpop.f32.mrf.mxu2 }
0x149a   :  { %v1311_v20 = vadd.f32 %v1308_v16, %v1288_v15 }
0x149c   :  { %v1312_v22 = vadd.f32 %v2989_v35, %v1311_v20 }
0x149e   :  { %1333 = vrot.lane.b32.xlu1 %v1312_v22, %s2575_s19  ;;  %v2317_v31 = vmul.f32 -1.442695, %v1312_v22 }
0x14a0   :  { %2463 = vpow2.f32 %v2317_v31 }
0x14a6   :  { %v1128_v28 = vpop.permute.xlu2 %1127  ;;  %v2464_v39 = vpop.eup %2463 }
0x14a7   :  { %v1130_v30 = vmul.f32 %v1128_v28, %v1124_v29  ;;  %v1316_v42 = vadd.f32 1.0, %v2464_v39 }
0x14a9   :  { %1132 = vrot.lane.b32.xlu1 %v1130_v30, %s2576_s20  ;;  %2465 = vrcp.f32 %v1316_v42  ;;  %v1328_v9 = vand.u32 2147483648, %v1316_v42  ;;  %vm1322_vm15 = vweird.f32 %v1316_v42  ;;  %v1326_v50 = vand.u32 2147483647, %v1316_v42 }
0x14ab   :  { %v1329_v54 = vor.u32 1.1754944e-38, %v1328_v9  ;;  %vm1327_vm1 = vcmp.eq.f32.partialorder %v1326_v50, 8.507059e+37 }
0x14af   :  { %v2466_v45 = vpop.eup %2465 }
0x14b0   :  { %v1318_v18 = vmul.f32 %v2466_v45, %v1316_v42  ;;  %vm1323_vm14 = vweird.f32 %v2466_v45 }
0x14b1   :  { %vm1324_vm0 = vmor %vm1322_vm15, %vm1323_vm14 }
0x14b2   :  { %v1319_v48 = vsub.f32 1.0, %v1318_v18 }
0x14b4   :  { %v1320_v43 = vmul.f32 %v2466_v45, %v1319_v48 }
0x14b6   :  { %v1321_v4 = vadd.f32 %v2466_v45, %v1320_v43 }
0x14b8   :  { %v1325_v44 = vsel %vm1324_vm0, %v2466_v45, %v1321_v4 }
0x14b9   :  { %v1330_v56 = vsel %vm1327_vm1, %v1329_v54, %v1325_v44 }
0x14ba   :  { %v1343_v63 = vsub.f32 1.0, %v1330_v56  ;;  %v1349_v11 = vmul.f32 %v1330_v56, %v3128_v7 }
0x1510   :  { %v1334_v41 = vpop.permute.xlu1 %1333 }
0x1511   :  { %v1336_v57 = vmul.f32 %v1334_v41, %v1330_v56 }
0x1513   :  { %1338 = vrot.lane.b32.xlu0 %v1336_v57, %s2576_s20 }
0x151b   :  { %v1133_v19 = vpop.permute.xlu1 %1132 }
0x151c   :  { %v1135_v59 = vadd.f32 %v1133_v19, %v1105_v58 }
0x151e   :  { %2467 = vtanh.f32 %v1135_v59 }
0x1524   :  { %v2468_v53 = vpop.eup %2467 }
0x1525   :  { %1139 = vrot.lane.b32.xlu0 %v2468_v53, %s2577_s21 }
0x1585   :  { %v1339_v1 = vpop.permute.xlu0 %1338 }
0x1586   :  { %v1341_v60 = vadd.f32 %v1339_v1, %v1312_v22 }
0x1588   :  { %2469 = vtanh.f32 %v1341_v60 }
0x158e   :  { %v2470_v61 = vpop.eup %2469 }
0x158f   :  { %1345 = vrot.lane.b32.xlu2 %v2470_v61, %s2577_s21 }
0x1597   :  { %1421 = vperm.xlu2 %2357, %v2320_v10   ;;  %v1140_v3 = vpop.permute.xlu0 %1139 }
0x1598   :  { %v1142_v58 = vmul.f32 %v1140_v3, %v1137_v2 }
0x159a   :  { %v3168_v6 = vadd.f32 %v1143_v55, %v1142_v58 }
0x159c   :  { %v1219_v8 = vsel %vm62_vm4, %v3147_v5, %v3168_v6 }
0x159d   :  { %2313 = vmatmul.msk.f32.vlgmr.msrb.gmra.mxu0 %vm131_vm5, %v1219_v8 }
0x159e   :  { %1775 = vmatpush.msrb.mxu0 %v3025_v32 }
0x15a0   :  { %1776 = vmatpush.msrb.mxu0 %v3031_v47 }
0x15a2   :  { %1777 = vmatpush.msrb.mxu0 %v3037_v49 }
0x15a4   :  { %1778 = vmatpush.msrb.mxu0 %v3043_v33 }
0x15a6   :  { %1779 = vmatpush.msrb.mxu0 %v3049_v34 }
0x15a8   :  { %1780 = vmatpush.msrb.mxu0 %v3055_v36 }
0x15aa   :  { %1781 = vmatpush.msrb.mxu0 %v3061_v37 }
0x15ac   :  { %1782 = vmatpush.msrb.mxu0 %v3067_v38 }
0x15e9   :  { %v1346_v5 = vpop.permute.xlu2 %1345 }
0x15ea   :  { %v1348_v52 = vmul.f32 %v1346_v5, %v1343_v63 }
0x15ec   :  { %v3183_v12 = vadd.f32 %v1349_v11, %v1348_v52 }
0x15ee   :  { %1352 = vrot.lane.b32.xlu1 %v3183_v12, %s2577_s21 }
0x15f1   :  { %v1422_v42 = vpop.permute.xlu2 %1421 }
0x15f2   :  { %v1424_v45 = vmul.f32 %v2983_v46, %v1422_v42 }
0x161a   :  { %v1240_v13 = vpop.f32.mrf.mxu0 }
0x161b   :  { %v1241_v14 = vadd.f32 %v3116_v62, %v1240_v13 }
0x161d   :  { %1263 = vrot.lane.b32.xlu0 %v1241_v14, %s2575_s19  ;;  %v2314_v16 = vmul.f32 -1.442695, %v1241_v14 }
0x161f   :  { %2471 = vpow2.f32 %v2314_v16 }
0x1625   :  { %v2472_v7 = vpop.eup %2471 }
0x1626   :  { %v1246_v20 = vadd.f32 1.0, %v2472_v7 }
0x1628   :  { %2473 = vrcp.f32 %v1246_v20  ;;  %v1258_v26 = vand.u32 2147483648, %v1246_v20  ;;  %vm1252_vm3 = vweird.f32 %v1246_v20  ;;  %v1256_v27 = vand.u32 2147483647, %v1246_v20 }
0x162a   :  { %v1259_v29 = vor.u32 1.1754944e-38, %v1258_v26  ;;  %vm1257_vm7 = vcmp.eq.f32.partialorder %v1256_v27, 8.507059e+37 }
0x162e   :  { %v2474_v21 = vpop.eup %2473 }
0x162f   :  { %v1248_v22 = vmul.f32 %v2474_v21, %v1246_v20  ;;  %vm1253_vm2 = vweird.f32 %v2474_v21 }
0x1630   :  { %vm1254_vm6 = vmor %vm1252_vm3, %vm1253_vm2 }
0x1631   :  { %v1249_v23 = vsub.f32 1.0, %v1248_v22 }
0x1633   :  { %v1250_v24 = vmul.f32 %v2474_v21, %v1249_v23 }
0x1635   :  { %v1251_v25 = vadd.f32 %v2474_v21, %v1250_v24 }
0x1637   :  { %v1255_v28 = vsel %vm1254_vm6, %v2474_v21, %v1251_v25 }
0x1638   :  { %v1260_v31 = vsel %vm1257_vm7, %v1259_v29, %v1255_v28 }
0x1639   :  { %v1273_v58 = vsub.f32 1.0, %v1260_v31  ;;  %v1279_v63 = vmul.f32 %v1260_v31, %v3168_v6 }
0x1660   :  { %v3189_v15 = vpop.permute.xlu1 %1352 }
0x1661   :  { %2321 = vmatmul.msk.f32.vlgmr.msra.gmra.mxu1 %vm62_vm4, %v3189_v15 }
0x1662   :  { %1983 = vmatpush.msra.mxu1 %v2944_v40 }
0x1664   :  { %1984 = vmatpush.msra.mxu1 %v2950_v17 }
0x1666   :  { %1985 = vmatpush.msra.mxu1 %v2956_v51 }
0x1668   :  { %1986 = vmatpush.msra.mxu1 %v2962_v0 }
0x168f   :  { %v1264_v30 = vpop.permute.xlu0 %1263 }
0x1690   :  { %v1266_v39 = vmul.f32 %v1264_v30, %v1260_v31 }
0x1692   :  { %1268 = vrot.lane.b32.xlu2 %v1266_v39, %s2576_s20 }
0x16de   :  { %v1444_v18 = vpop.f32.mrf.mxu1 }
0x16df   :  { %v1447_v48 = vadd.f32 %v1444_v18, %v1424_v45 }
0x16e1   :  { %v1448_v43 = vadd.f32 %v2989_v35, %v1447_v48 }
0x16e3   :  { %1469 = vrot.lane.b32.xlu1 %v1448_v43, %s2575_s19  ;;  %v2322_v44 = vmul.f32 -1.442695, %v1448_v43 }
0x16ec   :  { %v1269_v4 = vpop.permute.xlu2 %1268 }
0x16ed   :  { %v1271_v9 = vadd.f32 %v1269_v4, %v1241_v14 }
0x16ef   :  { %2475 = vtanh.f32 %v1271_v9 }
0x16f0   :  { %2477 = vpow2.f32 %v2322_v44 }
0x16f5   :  { %v2476_v50 = vpop.eup %2475 }
0x16f6   :  { %1275 = vrot.lane.b32.xlu1 %v2476_v50, %s2577_s21  ;;  %v2478_v54 = vpop.eup %2477 }
0x16f7   :  { %v1452_v41 = vadd.f32 1.0, %v2478_v54 }
0x16f9   :  { %2479 = vrcp.f32 %v1452_v41  ;;  %v1464_v1 = vand.u32 2147483648, %v1452_v41  ;;  %vm1458_vm9 = vweird.f32 %v1452_v41  ;;  %v1462_v60 = vand.u32 2147483647, %v1452_v41 }
0x16fb   :  { %v1465_v10 = vor.u32 1.1754944e-38, %v1464_v1  ;;  %vm1463_vm11 = vcmp.eq.f32.partialorder %v1462_v60, 8.507059e+37 }
0x16ff   :  { %v2480_v56 = vpop.eup %2479 }
0x1700   :  { %v1454_v57 = vmul.f32 %v2480_v56, %v1452_v41  ;;  %vm1459_vm8 = vweird.f32 %v2480_v56 }
0x1701   :  { %vm1460_vm10 = vmor %vm1458_vm9, %vm1459_vm8 }
0x1702   :  { %v1455_v19 = vsub.f32 1.0, %v1454_v57 }
0x1704   :  { %v1456_v59 = vmul.f32 %v2480_v56, %v1455_v19 }
0x1706   :  { %v1457_v53 = vadd.f32 %v2480_v56, %v1456_v59 }
0x1708   :  { %v1461_v61 = vsel %vm1460_vm10, %v2480_v56, %v1457_v53 }
0x1709   :  { %v1466_v3 = vsel %vm1463_vm11, %v1465_v10, %v1461_v61 }
0x170a   :  { %v1479_v20 = vsub.f32 1.0, %v1466_v3  ;;  %v1485_v22 = vmul.f32 %v1466_v3, %v3183_v12 }
0x1755   :  { %v1470_v2 = vpop.permute.xlu1 %1469 }
0x1756   :  { %v1472_v55 = vmul.f32 %v1470_v2, %v1466_v3 }
0x1758   :  { %1474 = vrot.lane.b32.xlu0 %v1472_v55, %s2576_s20 }
0x1768   :  { %v1276_v8 = vpop.permute.xlu1 %1275 }
0x1769   :  { %v1278_v5 = vmul.f32 %v1276_v8, %v1273_v58 }
0x176b   :  { %v3204_v11 = vadd.f32 %v1279_v63, %v1278_v5 }
0x176d   :  { %v1355_v52 = vsel %vm62_vm4, %v3189_v15, %v3204_v11  ;;  %v2325_v15 = vld [vmem:[%s3408_s0 + $0x58] sm:$0xff] }
0x176e   :  { %2318 = vmatmul.msk.f32.vlgmr.msra.gmra.mxu3 %vm131_vm5, %v1355_v52 }
0x176f   :  { %1911 = vmatpush.msra.mxu3 %v3025_v32 }
0x1771   :  { %1912 = vmatpush.msra.mxu3 %v3031_v47 }
0x1773   :  { %1913 = vmatpush.msra.mxu3 %v3037_v49 }
0x1775   :  { %1914 = vmatpush.msra.mxu3 %v3043_v33 }
0x1777   :  { %1915 = vmatpush.msra.mxu3 %v3049_v34 }
0x1779   :  { %1916 = vmatpush.msra.mxu3 %v3055_v36 }
0x177b   :  { %1917 = vmatpush.msra.mxu3 %v3061_v37 }
0x177d   :  { %1918 = vmatpush.msra.mxu3 %v3067_v38 }
0x17ca   :  { %v1475_v6 = vpop.permute.xlu0 %1474 }
0x17cb   :  { %v1477_v13 = vadd.f32 %v1475_v6, %v1448_v43 }
0x17cd   :  { %2481 = vtanh.f32 %v1477_v13 }
0x17d3   :  { %v2482_v14 = vpop.eup %2481 }
0x17d4   :  { %1481 = vrot.lane.b32.xlu2 %v2482_v14, %s2577_s21 }
0x17dc   :  { %1557 = vperm.xlu2 %2357, %v2325_v15  }
0x17f1   :  { %v1376_v16 = vpop.f32.mrf.mxu3 }
0x17f2   :  { %v1377_v7 = vadd.f32 %v3116_v62, %v1376_v16 }
0x17f4   :  { %1399 = vrot.lane.b32.xlu1 %v1377_v7, %s2575_s19  ;;  %v2319_v25 = vmul.f32 -1.442695, %v1377_v7 }
0x17f6   :  { %2483 = vpow2.f32 %v2319_v25 }
0x17fc   :  { %v2484_v26 = vpop.eup %2483 }
0x17fd   :  { %v1382_v27 = vadd.f32 1.0, %v2484_v26 }
0x17ff   :  { %2485 = vrcp.f32 %v1382_v27  ;;  %v1394_v42 = vand.u32 2147483648, %v1382_v27  ;;  %vm1388_vm13 = vweird.f32 %v1382_v27  ;;  %v1392_v12 = vand.u32 2147483647, %v1382_v27 }
0x1801   :  { %v1395_v18 = vor.u32 1.1754944e-38, %v1394_v42  ;;  %vm1393_vm15 = vcmp.eq.f32.partialorder %v1392_v12, 8.507059e+37 }
0x1805   :  { %v2486_v28 = vpop.eup %2485 }
0x1806   :  { %v1384_v29 = vmul.f32 %v2486_v28, %v1382_v27  ;;  %vm1389_vm12 = vweird.f32 %v2486_v28 }
0x1807   :  { %vm1390_vm14 = vmor %vm1388_vm13, %vm1389_vm12 }
0x1808   :  { %v1385_v30 = vsub.f32 1.0, %v1384_v29 }
0x180a   :  { %v1386_v31 = vmul.f32 %v2486_v28, %v1385_v30 }
0x180c   :  { %v1387_v39 = vadd.f32 %v2486_v28, %v1386_v31 }
0x180e   :  { %v1391_v45 = vsel %vm1390_vm14, %v2486_v28, %v1387_v39 }
0x180f   :  { %v1396_v43 = vsel %vm1393_vm15, %v1395_v18, %v1391_v45 }
0x182e   :  { %v1482_v21 = vpop.permute.xlu2 %1481 }
0x182f   :  { %v1484_v23 = vmul.f32 %v1482_v21, %v1479_v20 }
0x1831   :  { %v3225_v24 = vadd.f32 %v1485_v22, %v1484_v23 }
0x1833   :  { %1488 = vrot.lane.b32.xlu0 %v3225_v24, %s2577_s21 }
0x1836   :  { %v1558_v41 = vpop.permute.xlu2 %1557 }
0x1837   :  { %v1560_v56 = vmul.f32 %v2983_v46, %v1558_v41 }
0x1866   :  { %v1400_v48 = vpop.permute.xlu1 %1399 }
0x1867   :  { %v1402_v4 = vmul.f32 %v1400_v48, %v1396_v43 }
0x1869   :  { %1404 = vrot.lane.b32.xlu0 %v1402_v4, %s2576_s20 }
0x18a5   :  { %v1489_v9 = vpop.permute.xlu0 %1488 }
0x18a6   :  { %2326 = vmatmul.msk.f32.vlgmr.msra.gmra.mxu0 %vm62_vm4, %v1489_v9 }
0x18a7   :  { %2119 = vmatpush.msra.mxu0 %v2944_v40  ;;  %v1409_v40 = vsub.f32 1.0, %v1396_v43 }
0x18a9   :  { %2120 = vmatpush.msra.mxu0 %v2950_v17 }
0x18ab   :  { %2121 = vmatpush.msra.mxu0 %v2956_v51  ;;  %v1415_v51 = vmul.f32 %v1396_v43, %v3204_v11 }
0x18ad   :  { %2122 = vmatpush.msra.mxu0 %v2962_v0 }
0x18db   :  { %v1405_v50 = vpop.permute.xlu0 %1404 }
0x18dc   :  { %v1407_v44 = vadd.f32 %v1405_v50, %v1377_v7  ;;  %v2330_v50 = vld [vmem:[%s3408_s0 + $0x60] sm:$0xff] }
0x18de   :  { %2487 = vtanh.f32 %v1407_v44 }
0x18e4   :  { %v2488_v54 = vpop.eup %2487 }
0x18e5   :  { %1411 = vrot.lane.b32.xlu2 %v2488_v54, %s2577_s21 }
0x1923   :  { %v1580_v57 = vpop.f32.mrf.mxu0 }
0x1924   :  { %v1583_v19 = vadd.f32 %v1580_v57, %v1560_v56 }
0x1926   :  { %v1584_v59 = vadd.f32 %v2989_v35, %v1583_v19 }
0x1928   :  { %1605 = vrot.lane.b32.xlu1 %v1584_v59, %s2575_s19  ;;  %v2327_v46 = vmul.f32 -1.442695, %v1584_v59 }
0x192a   :  { %2489 = vpow2.f32 %v2327_v46 }
0x1930   :  { %v2490_v35 = vpop.eup %2489 }
0x1931   :  { %v1588_v60 = vadd.f32 1.0, %v2490_v35 }
0x1933   :  { %2491 = vrcp.f32 %v1588_v60  ;;  %v1600_v58 = vand.u32 2147483648, %v1588_v60  ;;  %vm1594_vm1 = vweird.f32 %v1588_v60  ;;  %v1598_v8 = vand.u32 2147483647, %v1588_v60 }
0x1935   :  { %v1601_v5 = vor.u32 1.1754944e-38, %v1600_v58  ;;  %vm1599_vm3 = vcmp.eq.f32.partialorder %v1598_v8, 8.507059e+37 }
0x1939   :  { %v2492_v61 = vpop.eup %2491 }
0x193a   :  { %v1590_v10 = vmul.f32 %v2492_v61, %v1588_v60  ;;  %vm1595_vm0 = vweird.f32 %v2492_v61 }
0x193b   :  { %vm1596_vm2 = vmor %vm1594_vm1, %vm1595_vm0 }
0x193c   :  { %v1591_v2 = vsub.f32 1.0, %v1590_v10 }
0x193e   :  { %v1592_v3 = vmul.f32 %v2492_v61, %v1591_v2 }
0x193f   :  { %v1412_v17 = vpop.permute.xlu2 %1411 }
0x1940   :  { %v1414_v0 = vmul.f32 %v1412_v17, %v1409_v40  ;;  %v1593_v55 = vadd.f32 %v2492_v61, %v1592_v3 }
0x1942   :  { %v3240_v53 = vadd.f32 %v1415_v51, %v1414_v0  ;;  %v1597_v63 = vsel %vm1596_vm2, %v2492_v61, %v1593_v55  ;;  %v3285_v0 = vld [vmem:[%s3409_s1] ss:$0 sm:$0xff] }
0x1943   :  { %v1602_v52 = vsel %vm1599_vm3, %v1601_v5, %v1597_v63 }
0x1944   :  { %v1491_v1 = vsel %vm62_vm4, %v1489_v9, %v3240_v53  ;;  %v1615_v18 = vsub.f32 1.0, %v1602_v52  ;;  %v1621_v43 = vmul.f32 %v1602_v52, %v3225_v24 }
0x1945   :  { %2323 = vmatmul.msk.f32.vlgmr.msrb.gmra.mxu2 %vm131_vm5, %v1491_v1 }
0x1946   :  { %2047 = vmatpush.msrb.mxu2 %v3025_v32 }
0x1948   :  { %2048 = vmatpush.msrb.mxu2 %v3031_v47 }
0x194a   :  { %2049 = vmatpush.msrb.mxu2 %v3037_v49 }
0x194c   :  { %2050 = vmatpush.msrb.mxu2 %v3043_v33 }
0x194e   :  { %2051 = vmatpush.msrb.mxu2 %v3049_v34 }
0x1950   :  { %2052 = vmatpush.msrb.mxu2 %v3055_v36 }
0x1952   :  { %2053 = vmatpush.msrb.mxu2 %v3061_v37 }
0x1954   :  { %2054 = vmatpush.msrb.mxu2 %v3067_v38 }
0x199a   :  { %v1606_v11 = vpop.permute.xlu1 %1605 }
0x199b   :  { %v1608_v6 = vmul.f32 %v1606_v11, %v1602_v52  ;;  %v2335_v11 = vld [vmem:[%s3408_s0 + $0x68] sm:$0xff] }
0x199d   :  { %1610 = vrot.lane.b32.xlu0 %v1608_v6, %s2576_s20 }
0x19c8   :  { %v1512_v13 = vpop.f32.mrf.mxu2 }
0x19c9   :  { %v1513_v14 = vadd.f32 %v3116_v62, %v1512_v13 }
0x19cb   :  { %1535 = vrot.lane.b32.xlu0 %v1513_v14, %s2575_s19  ;;  %v2324_v16 = vmul.f32 -1.442695, %v1513_v14 }
0x1a0f   :  { %v1611_v15 = vpop.permute.xlu0 %1610 }
0x1a10   :  { %v1613_v7 = vadd.f32 %v1611_v15, %v1584_v59 }
0x1a12   :  { %2493 = vtanh.f32 %v1613_v7 }
0x1a13   :  { %2495 = vpow2.f32 %v2324_v16 }
0x1a18   :  { %v2494_v20 = vpop.eup %2493 }
0x1a19   :  { %1617 = vrot.lane.b32.xlu1 %v2494_v20, %s2577_s21  ;;  %v2496_v21 = vpop.eup %2495 }
0x1a1a   :  { %v1518_v22 = vadd.f32 1.0, %v2496_v21 }
0x1a1c   :  { %2497 = vrcp.f32 %v1518_v22  ;;  %v1530_v29 = vand.u32 2147483648, %v1518_v22  ;;  %vm1524_vm7 = vweird.f32 %v1518_v22  ;;  %v1528_v30 = vand.u32 2147483647, %v1518_v22 }
0x1a1e   :  { %v1531_v39 = vor.u32 1.1754944e-38, %v1530_v29  ;;  %vm1529_vm9 = vcmp.eq.f32.partialorder %v1528_v30, 8.507059e+37 }
0x1a22   :  { %v2498_v23 = vpop.eup %2497 }
0x1a23   :  { %v1520_v25 = vmul.f32 %v2498_v23, %v1518_v22  ;;  %vm1525_vm6 = vweird.f32 %v2498_v23 }
0x1a24   :  { %vm1526_vm8 = vmor %vm1524_vm7, %vm1525_vm6 }
0x1a25   :  { %v1521_v26 = vsub.f32 1.0, %v1520_v25 }
0x1a27   :  { %v1522_v27 = vmul.f32 %v2498_v23, %v1521_v26 }
0x1a29   :  { %v1523_v28 = vadd.f32 %v2498_v23, %v1522_v27 }
0x1a2b   :  { %v1527_v31 = vsel %vm1526_vm8, %v2498_v23, %v1523_v28 }
0x1a2c   :  { %v1532_v12 = vsel %vm1529_vm9, %v1531_v39, %v1527_v31 }
0x1a2d   :  { %v1545_v24 = vsub.f32 1.0, %v1532_v12  ;;  %v1551_v19 = vmul.f32 %v1532_v12, %v3240_v53 }
0x1a3d   :  { %v1536_v42 = vpop.permute.xlu0 %1535 }
0x1a3e   :  { %v1538_v45 = vmul.f32 %v1536_v42, %v1532_v12 }
0x1a40   :  { %1540 = vrot.lane.b32.xlu1 %v1538_v45, %s2576_s20 }
0x1a8b   :  { %v1618_v48 = vpop.permute.xlu1 %1617 }
0x1a8c   :  { %v1620_v4 = vmul.f32 %v1618_v48, %v1615_v18 }
0x1a8e   :  { %v3259_v9 = vadd.f32 %v1621_v43, %v1620_v4 }
0x1a90   :  { %1624 = vrot.lane.b32.xlu2 %v3259_v9, %s2577_s21 }
0x1a98   :  { %1693 = vperm.xlu2 %2357, %v2330_v50  }
0x1ab2   :  { %v1541_v44 = vpop.permute.xlu1 %1540 }
0x1ab3   :  { %v1543_v54 = vadd.f32 %v1541_v44, %v1513_v14 }
0x1ab5   :  { %2499 = vtanh.f32 %v1543_v54 }
0x1abb   :  { %v2500_v41 = vpop.eup %2499 }
0x1abc   :  { %1547 = vrot.lane.b32.xlu0 %v2500_v41, %s2577_s21 }
0x1aea   :  { %v1625_v56 = vpop.permute.xlu2 %1624 }
0x1aeb   :  { %2331 = vmatmul.msk.f32.vlgmr.msrb.gmra.mxu3 %vm62_vm4, %v1625_v56 }
0x1af2   :  { %v1694_v51 = vpop.permute.xlu2 %1693 }
0x1b2e   :  { %v1548_v57 = vpop.permute.xlu0 %1547 }
0x1b2f   :  { %v1550_v59 = vmul.f32 %v1548_v57, %v1545_v24 }
0x1b31   :  { %v3269_v40 = vadd.f32 %v1551_v19, %v1550_v59 }
0x1b33   :  { %v1627_v17 = vsel %vm62_vm4, %v1625_v56, %v3269_v40 }
0x1b34   :  { %2328 = vmatmul.msk.f32.vlgmr.msrb.gmra.mxu1 %vm131_vm5, %v1627_v17 }
0x1b35   :  { %2183 = vmatpush.msrb.mxu1 %v3025_v32  ;;  %v1696_v32 = vmul.f32 %v3285_v0, %v1694_v51 }
0x1b37   :  { %2184 = vmatpush.msrb.mxu1 %v3031_v47 }
0x1b39   :  { %2185 = vmatpush.msrb.mxu1 %v3037_v49 }
0x1b3b   :  { %2186 = vmatpush.msrb.mxu1 %v3043_v33  ;;  %v3291_v33 = vld [vmem:[%s3410_s3] ss:$0 sm:$0xff] }
0x1b3d   :  { %2187 = vmatpush.msrb.mxu1 %v3049_v34 }
0x1b3f   :  { %2188 = vmatpush.msrb.mxu1 %v3055_v36 }
0x1b41   :  { %2189 = vmatpush.msrb.mxu1 %v3061_v37 }
0x1b43   :  { %2190 = vmatpush.msrb.mxu1 %v3067_v38 }
0x1b6e   :  { %v1716_v47 = vpop.f32.mrf.mxu3 }
0x1b6f   :  { %v1719_v49 = vadd.f32 %v1716_v47, %v1696_v32 }
0x1b71   :  { %v1720_v34 = vadd.f32 %v3291_v33, %v1719_v49 }
0x1b73   :  { %1741 = vrot.lane.b32.xlu1 %v1720_v34, %s2575_s19  ;;  %v2332_v36 = vmul.f32 -1.442695, %v1720_v34 }
0x1b75   :  { %2501 = vpow2.f32 %v2332_v36 }
0x1b7b   :  { %v2502_v37 = vpop.eup %2501 }
0x1b7c   :  { %v1724_v38 = vadd.f32 1.0, %v2502_v37 }
0x1b7e   :  { %2503 = vrcp.f32 %v1724_v38  ;;  %v1736_v61 = vand.u32 2147483648, %v1724_v38  ;;  %vm1730_vm11 = vweird.f32 %v1724_v38  ;;  %v1734_v10 = vand.u32 2147483647, %v1724_v38 }
0x1b80   :  { %v1737_v3 = vor.u32 1.1754944e-38, %v1736_v61  ;;  %vm1735_vm13 = vcmp.eq.f32.partialorder %v1734_v10, 8.507059e+37 }
0x1b84   :  { %v2504_v53 = vpop.eup %2503 }
0x1b85   :  { %v1726_v1 = vmul.f32 %v2504_v53, %v1724_v38  ;;  %vm1731_vm10 = vweird.f32 %v2504_v53 }
0x1b86   :  { %vm1732_vm12 = vmor %vm1730_vm11, %vm1731_vm10 }
0x1b87   :  { %v1727_v46 = vsub.f32 1.0, %v1726_v1 }
0x1b89   :  { %v1728_v35 = vmul.f32 %v2504_v53, %v1727_v46 }
0x1b8b   :  { %v1729_v60 = vadd.f32 %v2504_v53, %v1728_v35 }
0x1b8d   :  { %v1733_v2 = vsel %vm1732_vm12, %v2504_v53, %v1729_v60 }
0x1b8e   :  { %v1738_v58 = vsel %vm1735_vm13, %v1737_v3, %v1733_v2 }
0x1b8f   :  { %v1751_v39 = vsub.f32 1.0, %v1738_v58  ;;  %v1757_v12 = vmul.f32 %v1738_v58, %v3259_v9 }
0x1bb1   :  { %v1648_v63 = vpop.f32.mrf.mxu1 }
0x1bb2   :  { %v1649_v5 = vadd.f32 %v3116_v62, %v1648_v63 }
0x1bb4   :  { %v2329_v52 = vmul.f32 -1.442695, %v1649_v5 }
0x1bb6   :  { %2505 = vpow2.f32 %v2329_v52 }
0x1bbc   :  { %v2506_v6 = vpop.eup %2505 }
0x1bbd   :  { %v1654_v13 = vadd.f32 1.0, %v2506_v6 }
0x1bbf   :  { %2507 = vrcp.f32 %v1654_v13  ;;  %v1666_v25 = vand.u32 2147483648, %v1654_v13  ;;  %vm1660_vm15 = vweird.f32 %v1654_v13  ;;  %v1664_v26 = vand.u32 2147483647, %v1654_v13 }
0x1bc1   :  { %v1667_v28 = vor.u32 1.1754944e-38, %v1666_v25  ;;  %vm1665_vm1 = vcmp.eq.f32.partialorder %v1664_v26, 8.507059e+37 }
0x1bc5   :  { %v2508_v14 = vpop.eup %2507 }
0x1bc6   :  { %v1656_v15 = vmul.f32 %v2508_v14, %v1654_v13  ;;  %vm1661_vm14 = vweird.f32 %v2508_v14 }
0x1bc7   :  { %vm1662_vm0 = vmor %vm1660_vm15, %vm1661_vm14 }
0x1bc8   :  { %v1657_v7 = vsub.f32 1.0, %v1656_v15 }
0x1bca   :  { %v1658_v21 = vmul.f32 %v2508_v14, %v1657_v7 }
0x1bcc   :  { %v1659_v22 = vadd.f32 %v2508_v14, %v1658_v21 }
0x1bce   :  { %v1663_v27 = vsel %vm1662_vm0, %v2508_v14, %v1659_v22 }
0x1bcf   :  { %v1668_v30 = vsel %vm1665_vm1, %v1667_v28, %v1663_v27 }
0x1bd0   :  { %v1681_v44 = vsub.f32 1.0, %v1668_v30  ;;  %v1687_v41 = vmul.f32 %v1668_v30, %v3269_v40 }
0x1be5   :  { %v1742_v55 = vpop.permute.xlu1 %1741 }
0x1be6   :  { %v1744_v8 = vmul.f32 %v1742_v55, %v1738_v58 }
0x1be8   :  { %1746 = vrot.lane.b32.xlu2 %v1744_v8, %s2576_s20 }
0x1bf0   :  { %1671 = vrot.lane.b32.xlu2 %v1649_v5, %s2575_s19 }
0x1bf8   :  { %1829 = vperm.xlu2 %2357, %v2335_v11  }
0x1c42   :  { %v1747_v16 = vpop.permute.xlu2 %1746 }
0x1c43   :  { %v1749_v20 = vadd.f32 %v1747_v16, %v1720_v34 }
0x1c45   :  { %2509 = vtanh.f32 %v1749_v20 }
0x1c4a   :  { %v1672_v29 = vpop.permute.xlu2 %1671 }
0x1c4b   :  { %v2510_v23 = vpop.eup %2509  ;;  %v1674_v31 = vmul.f32 %v1672_v29, %v1668_v30 }
0x1c4c   :  { %1753 = vrot.lane.b32.xlu0 %v2510_v23, %s2577_s21 }
0x1c52   :  { %v1830_v57 = vpop.permute.xlu2 %1829 }
0x1c53   :  { %v1832_v19 = vmul.f32 %v3285_v0, %v1830_v57 }
0x1c54   :  { %1676 = vrot.lane.b32.xlu0 %v1674_v31, %s2576_s20 }
0x1cbe   :  { %v1754_v42 = vpop.permute.xlu0 %1753 }
0x1cbf   :  { %v1756_v45 = vmul.f32 %v1754_v42, %v1751_v39  ;;  %v2340_v39 = vld [vmem:[%s3408_s0 + $0x70] sm:$0xff] }
0x1cc1   :  { %v3304_v18 = vadd.f32 %v1757_v12, %v1756_v45 }
0x1cc3   :  { %1760 = vrot.lane.b32.xlu1 %v3304_v18, %s2577_s21 }
0x1cc6   :  { %v1677_v48 = vpop.permute.xlu0 %1676 }
0x1cc7   :  { %v1679_v43 = vadd.f32 %v1677_v48, %v1649_v5 }
0x1cc9   :  { %2511 = vtanh.f32 %v1679_v43 }
0x1ccf   :  { %v2512_v4 = vpop.eup %2511 }
0x1cd0   :  { %1683 = vrot.lane.b32.xlu1 %v2512_v4, %s2577_s21 }
0x1d35   :  { %v1761_v50 = vpop.permute.xlu1 %1760 }
0x1d36   :  { %2336 = vmatmul.msk.f32.vlgmr.msra.gmra.mxu2 %vm62_vm4, %v1761_v50 }
0x1d42   :  { %v1684_v54 = vpop.permute.xlu1 %1683 }
0x1d43   :  { %v1686_v9 = vmul.f32 %v1684_v54, %v1681_v44 }
0x1d45   :  { %v3311_v56 = vadd.f32 %v1687_v41, %v1686_v9 }
0x1d47   :  { %v1763_v24 = vsel %vm62_vm4, %v1761_v50, %v3311_v56 }
0x1d48   :  { %2333 = vmatmul.msk.f32.vlgmr.msrb.gmra.mxu0 %vm131_vm5, %v1763_v24 }
0x1db9   :  { %v1852_v59 = vpop.f32.mrf.mxu2 }
0x1dba   :  { %v1855_v17 = vadd.f32 %v1852_v59, %v1832_v19 }
0x1dbc   :  { %v1856_v51 = vadd.f32 %v3291_v33, %v1855_v17 }
0x1dbe   :  { %1877 = vrot.lane.b32.xlu0 %v1856_v51, %s2575_s19  ;;  %v2337_v47 = vmul.f32 -1.442695, %v1856_v51 }
0x1dc0   :  { %2513 = vpow2.f32 %v2337_v47 }
0x1dc5   :  { %v1784_v32 = vpop.f32.mrf.mxu0 }
0x1dc6   :  { %v1785_v40 = vadd.f32 %v3116_v62, %v1784_v32  ;;  %v2514_v49 = vpop.eup %2513 }
0x1dc7   :  { %v1860_v34 = vadd.f32 1.0, %v2514_v49 }
0x1dc8   :  { %1807 = vrot.lane.b32.xlu0 %v1785_v40, %s2575_s19  ;;  %v2334_v3 = vmul.f32 -1.442695, %v1785_v40 }
0x1dc9   :  { %2515 = vrcp.f32 %v1860_v34  ;;  %v1872_v46 = vand.u32 2147483648, %v1860_v34  ;;  %vm1866_vm3 = vweird.f32 %v1860_v34  ;;  %v1870_v35 = vand.u32 2147483647, %v1860_v34 }
0x1dca   :  { %2517 = vpow2.f32 %v2334_v3 }
0x1dcb   :  { %v1873_v61 = vor.u32 1.1754944e-38, %v1872_v46  ;;  %vm1871_vm7 = vcmp.eq.f32.partialorder %v1870_v35, 8.507059e+37 }
0x1dcf   :  { %v2516_v36 = vpop.eup %2515 }
0x1dd0   :  { %v1862_v37 = vmul.f32 %v2516_v36, %v1860_v34  ;;  %vm1867_vm2 = vweird.f32 %v2516_v36  ;;  %v2518_v55 = vpop.eup %2517 }
0x1dd1   :  { %vm1868_vm6 = vmor %vm1866_vm3, %vm1867_vm2  ;;  %v1790_v58 = vadd.f32 1.0, %v2518_v55 }
0x1dd2   :  { %v1863_v38 = vsub.f32 1.0, %v1862_v37 }
0x1dd3   :  { %2519 = vrcp.f32 %v1790_v58  ;;  %v1802_v15 = vand.u32 2147483648, %v1790_v58  ;;  %vm1796_vm9 = vweird.f32 %v1790_v58  ;;  %v1800_v16 = vand.u32 2147483647, %v1790_v58 }
0x1dd4   :  { %v1864_v53 = vmul.f32 %v2516_v36, %v1863_v38 }
0x1dd5   :  { %v1803_v20 = vor.u32 1.1754944e-38, %v1802_v15  ;;  %vm1801_vm11 = vcmp.eq.f32.partialorder %v1800_v16, 8.507059e+37 }
0x1dd6   :  { %v1865_v1 = vadd.f32 %v2516_v36, %v1864_v53 }
0x1dd8   :  { %v1869_v60 = vsel %vm1868_vm6, %v2516_v36, %v1865_v1 }
0x1dd9   :  { %v1874_v10 = vsel %vm1871_vm7, %v1873_v61, %v1869_v60  ;;  %v2520_v8 = vpop.eup %2519 }
0x1dda   :  { %v1792_v63 = vmul.f32 %v2520_v8, %v1790_v58  ;;  %vm1797_vm8 = vweird.f32 %v2520_v8  ;;  %v1887_v25 = vsub.f32 1.0, %v1874_v10  ;;  %v1893_v27 = vmul.f32 %v1874_v10, %v3304_v18 }
0x1ddb   :  { %vm1798_vm10 = vmor %vm1796_vm9, %vm1797_vm8 }
0x1ddc   :  { %v1793_v5 = vsub.f32 1.0, %v1792_v63 }
0x1dde   :  { %v1794_v6 = vmul.f32 %v2520_v8, %v1793_v5 }
0x1de0   :  { %v1795_v13 = vadd.f32 %v2520_v8, %v1794_v6 }
0x1de2   :  { %v1799_v7 = vsel %vm1798_vm10, %v2520_v8, %v1795_v13 }
0x1de3   :  { %v1804_v22 = vsel %vm1801_vm11, %v1803_v20, %v1799_v7 }
0x1de4   :  { %v1817_v45 = vsub.f32 1.0, %v1804_v22  ;;  %v1823_v48 = vmul.f32 %v1804_v22, %v3311_v56  ;;  %v3346_v56 = vld [vmem:[%s3411_s5] ss:$0 sm:$0xff] }
0x1e30   :  { %v1878_v62 = vpop.permute.xlu0 %1877 }
0x1e31   :  { %v1880_v2 = vmul.f32 %v1878_v62, %v1874_v10 }
0x1e33   :  { %1882 = vrot.lane.b32.xlu1 %v1880_v2, %s2576_s20 }
0x1e3a   :  { %v1808_v21 = vpop.permute.xlu0 %1807 }
0x1e3b   :  { %v1810_v23 = vmul.f32 %v1808_v21, %v1804_v22 }
0x1ea5   :  { %v1883_v11 = vpop.permute.xlu1 %1882 }
0x1ea6   :  { %v1885_v52 = vadd.f32 %v1883_v11, %v1856_v51 }
0x1ea8   :  { %2521 = vtanh.f32 %v1885_v52 }
0x1eae   :  { %v2522_v14 = vpop.eup %2521 }
0x1eaf   :  { %1889 = vrot.lane.b32.xlu2 %v2522_v14, %s2577_s21  ;;  %v2345_v14 = vld [vmem:[%s3408_s0 + $0x78] sm:$0xff] }
0x1eb7   :  { %1812 = vrot.lane.b32.xlu2 %v1810_v23, %s2576_s20 }
0x1f09   :  { %v1890_v26 = vpop.permute.xlu2 %1889 }
0x1f0a   :  { %v1892_v28 = vmul.f32 %v1890_v26, %v1887_v25 }
0x1f0c   :  { %v3325_v29 = vadd.f32 %v1893_v27, %v1892_v28 }
0x1f0e   :  { %1896 = vrot.lane.b32.xlu1 %v3325_v29, %s2577_s21 }
0x1f11   :  { %v1813_v30 = vpop.permute.xlu2 %1812 }
0x1f12   :  { %v1815_v31 = vadd.f32 %v1813_v30, %v1785_v40 }
0x1f14   :  { %2523 = vtanh.f32 %v1815_v31 }
0x1f16   :  { %1965 = vperm.xlu1 %2358, %v2340_v39  }
0x1f1a   :  { %v2524_v42 = vpop.eup %2523 }
0x1f1b   :  { %1819 = vrot.lane.b32.xlu0 %v2524_v42, %s2577_s21 }
0x1f80   :  { %v1897_v12 = vpop.permute.xlu1 %1896 }
0x1f81   :  { %2341 = vmatmul.msk.f32.vlgmr.msra.gmra.mxu1 %vm62_vm4, %v1897_v12 }
0x1f88   :  { %v1966_v44 = vpop.permute.xlu1 %1965 }
0x1f89   :  { %v1968_v54 = vmul.f32 %v3285_v0, %v1966_v44 }
0x1f8d   :  { %v1820_v18 = vpop.permute.xlu0 %1819 }
0x1f8e   :  { %v1822_v43 = vmul.f32 %v1820_v18, %v1817_v45 }
0x1f90   :  { %v3335_v4 = vadd.f32 %v1823_v48, %v1822_v43 }
0x1f92   :  { %v1899_v50 = vsel %vm62_vm4, %v1897_v12, %v3335_v4 }
0x1f93   :  { %2338 = vmatmul.msk.f32.vlgmr.msra.gmra.mxu3 %vm131_vm5, %v1899_v50 }
0x1ffe   :  { %v1988_v41 = vpop.f32.mrf.mxu1 }
0x1fff   :  { %v1991_v9 = vadd.f32 %v1988_v41, %v1968_v54 }
0x2001   :  { %v1992_v24 = vadd.f32 %v3291_v33, %v1991_v9 }
0x2003   :  { %2013 = vrot.lane.b32.xlu2 %v1992_v24, %s2575_s19  ;;  %v2342_v59 = vmul.f32 -1.442695, %v1992_v24 }
0x2005   :  { %2525 = vpow2.f32 %v2342_v59 }
0x200b   :  { %v2526_v17 = vpop.eup %2525 }
0x200c   :  { %v1996_v51 = vadd.f32 1.0, %v2526_v17 }
0x200e   :  { %2527 = vrcp.f32 %v1996_v51  ;;  %v2008_v36 = vand.u32 2147483648, %v1996_v51  ;;  %vm2002_vm13 = vweird.f32 %v1996_v51  ;;  %v2006_v37 = vand.u32 2147483647, %v1996_v51 }
0x2010   :  { %v2009_v53 = vor.u32 1.1754944e-38, %v2008_v36  ;;  %vm2007_vm15 = vcmp.eq.f32.partialorder %v2006_v37, 8.507059e+37 }
0x2014   :  { %v2528_v32 = vpop.eup %2527 }
0x2015   :  { %v1998_v40 = vmul.f32 %v2528_v32, %v1996_v51  ;;  %vm2003_vm12 = vweird.f32 %v2528_v32 }
0x2016   :  { %v1920_v57 = vpop.f32.mrf.mxu3  ;;  %vm2004_vm14 = vmor %vm2002_vm13, %vm2003_vm12 }
0x2017   :  { %v1921_v19 = vadd.f32 %v3346_v56, %v1920_v57  ;;  %v1999_v47 = vsub.f32 1.0, %v1998_v40 }
0x2019   :  { %1943 = vrot.lane.b32.xlu1 %v1921_v19, %s2575_s19  ;;  %v2000_v49 = vmul.f32 %v2528_v32, %v1999_v47  ;;  %v2339_v35 = vmul.f32 -1.442695, %v1921_v19 }
0x201b   :  { %v2001_v34 = vadd.f32 %v2528_v32, %v2000_v49  ;;  %2529 = vpow2.f32 %v2339_v35 }
0x201d   :  { %v2005_v38 = vsel %vm2004_vm14, %v2528_v32, %v2001_v34 }
0x201e   :  { %v2010_v1 = vsel %vm2007_vm15, %v2009_v53, %v2005_v38 }
0x201f   :  { %v2023_v23 = vsub.f32 1.0, %v2010_v1  ;;  %v2029_v26 = vmul.f32 %v2010_v1, %v3325_v29 }
0x2021   :  { %v2530_v61 = vpop.eup %2529 }
0x2022   :  { %v1926_v62 = vadd.f32 1.0, %v2530_v61 }
0x2024   :  { %2531 = vrcp.f32 %v1926_v62  ;;  %v1938_v8 = vand.u32 2147483648, %v1926_v62  ;;  %vm1932_vm1 = vweird.f32 %v1926_v62  ;;  %v1936_v63 = vand.u32 2147483647, %v1926_v62 }
0x2026   :  { %v1939_v11 = vor.u32 1.1754944e-38, %v1938_v8  ;;  %vm1937_vm3 = vcmp.eq.f32.partialorder %v1936_v63, 8.507059e+37 }
0x202a   :  { %v2532_v10 = vpop.eup %2531 }
0x202b   :  { %v1928_v2 = vmul.f32 %v2532_v10, %v1926_v62  ;;  %vm1933_vm0 = vweird.f32 %v2532_v10 }
0x202c   :  { %vm1934_vm2 = vmor %vm1932_vm1, %vm1933_vm0  ;;  %vm2266_vm1 = vcmask 7168  }
0x202d   :  { %v1929_v3 = vsub.f32 1.0, %v1928_v2 }
0x202f   :  { %v1930_v55 = vmul.f32 %v2532_v10, %v1929_v3 }
0x2031   :  { %v1931_v58 = vadd.f32 %v2532_v10, %v1930_v55 }
0x2033   :  { %v1935_v5 = vsel %vm1934_vm2, %v2532_v10, %v1931_v58 }
0x2034   :  { %v1940_v6 = vsel %vm1937_vm3, %v1939_v11, %v1935_v5 }
0x2035   :  { %v1953_v31 = vsub.f32 1.0, %v1940_v6  ;;  %v1959_v42 = vmul.f32 %v1940_v6, %v3335_v4 }
0x205d   :  { %v2014_v46 = vpop.permute.xlu2 %2013 }
0x205e   :  { %v2016_v60 = vmul.f32 %v2014_v46, %v2010_v1 }
0x2060   :  { %2018 = vrot.lane.b32.xlu0 %v2016_v60, %s2576_s20 }
0x208b   :  { %v1944_v52 = vpop.permute.xlu1 %1943 }
0x208c   :  { %v1946_v13 = vmul.f32 %v1944_v52, %v1940_v6 }
0x208e   :  { %1948 = vrot.lane.b32.xlu0 %v1946_v13, %s2576_s20 }
0x2096   :  { %2101 = vperm.xlu0 %2356, %v2345_v14  }
0x20d2   :  { %v2019_v15 = vpop.permute.xlu0 %2018 }
0x20d3   :  { %v2021_v16 = vadd.f32 %v2019_v15, %v1992_v24 }
0x20d5   :  { %2533 = vtanh.f32 %v2021_v16 }
0x20db   :  { %v2534_v7 = vpop.eup %2533 }
0x20dc   :  { %2025 = vrot.lane.b32.xlu2 %v2534_v7, %s2577_s21 }
0x2100   :  { %v1949_v20 = vpop.permute.xlu0 %1948 }
0x2101   :  { %v1951_v21 = vadd.f32 %v1949_v20, %v1921_v19 }
0x2103   :  { %2535 = vtanh.f32 %v1951_v21 }
0x2108   :  { %v2102_v29 = vpop.permute.xlu0 %2101 }
0x2109   :  { %v2536_v22 = vpop.eup %2535  ;;  %v2104_v48 = vmul.f32 %v3285_v0, %v2102_v29 }
0x210a   :  { %1955 = vrot.lane.b32.xlu2 %v2536_v22, %s2577_s21 }
0x2136   :  { %v2026_v25 = vpop.permute.xlu2 %2025 }
0x2137   :  { %v2028_v27 = vmul.f32 %v2026_v25, %v2023_v23 }
0x2139   :  { %v3358_v28 = vadd.f32 %v2029_v26, %v2028_v27 }
0x213b   :  { %2032 = vrot.lane.b32.xlu1 %v3358_v28, %s2577_s21 }
0x2164   :  { %v1956_v30 = vpop.permute.xlu2 %1955 }
0x2165   :  { %v1958_v39 = vmul.f32 %v1956_v30, %v1953_v31 }
0x2167   :  { %v3363_v12 = vadd.f32 %v1959_v42, %v1958_v39 }
0x21ad   :  { %v2033_v45 = vpop.permute.xlu1 %2032 }
0x21ae   :  { %v2035_v18 = vsel %vm62_vm4, %v2033_v45, %v3363_v12  ;;  %2346 = vmatmul.msk.f32.vlgmr.msra.gmra.mxu0 %vm62_vm4, %v2033_v45 }
0x21af   :  { %2343 = vmatmul.msk.f32.vlgmr.msrb.gmra.mxu2 %vm131_vm5, %v2035_v18 }
0x222b   :  { %v2124_v43 = vpop.f32.mrf.mxu0 }
0x222c   :  { %v2127_v50 = vadd.f32 %v2124_v43, %v2104_v48 }
0x222e   :  { %v2128_v44 = vadd.f32 %v3291_v33, %v2127_v50 }
0x2230   :  { %2149 = vrot.lane.b32.xlu1 %v2128_v44, %s2575_s19  ;;  %v2347_v57 = vmul.f32 -1.442695, %v2128_v44 }
0x2232   :  { %v2056_v4 = vpop.f32.mrf.mxu2 }
0x2233   :  { %v2057_v54 = vadd.f32 %v3346_v56, %v2056_v4 }
0x2235   :  { %2079 = vrot.lane.b32.xlu2 %v2057_v54, %s2575_s19  ;;  %v2344_v41 = vmul.f32 -1.442695, %v2057_v54 }
0x2237   :  { %2537 = vpow2.f32 %v2344_v41 }
0x223d   :  { %v2538_v9 = vpop.eup %2537 }
0x223e   :  { %v2062_v24 = vadd.f32 1.0, %v2538_v9 }
0x2240   :  { %2539 = vrcp.f32 %v2062_v24  ;;  %v2074_v40 = vand.u32 2147483648, %v2062_v24  ;;  %vm2068_vm7 = vweird.f32 %v2062_v24  ;;  %v2072_v47 = vand.u32 2147483647, %v2062_v24 }
0x2241   :  { %2541 = vpow2.f32 %v2347_v57 }
0x2242   :  { %v2075_v36 = vor.u32 1.1754944e-38, %v2074_v40  ;;  %vm2073_vm9 = vcmp.eq.f32.partialorder %v2072_v47, 8.507059e+37 }
0x2246   :  { %v2540_v19 = vpop.eup %2539 }
0x2247   :  { %v2064_v0 = vmul.f32 %v2540_v19, %v2062_v24  ;;  %v2542_v59 = vpop.eup %2541  ;;  %vm2069_vm6 = vweird.f32 %v2540_v19 }
0x2248   :  { %v2132_v51 = vadd.f32 1.0, %v2542_v59  ;;  %vm2070_vm8 = vmor %vm2068_vm7, %vm2069_vm6  ;;  %v2234_v59 = vld [vmem:[%s3413_s6 + $0x8] sm:$0xff] }
0x2249   :  { %v2065_v17 = vsub.f32 1.0, %v2064_v0  ;;  %v2235_v0 = vld [vmem:[%s3413_s6 + $0x10] sm:$0xff] }
0x224a   :  { %2543 = vrcp.f32 %v2132_v51  ;;  %v2144_v61 = vand.u32 2147483648, %v2132_v51  ;;  %vm2138_vm11 = vweird.f32 %v2132_v51  ;;  %v2142_v62 = vand.u32 2147483647, %v2132_v51 }
0x224b   :  { %v2066_v33 = vmul.f32 %v2540_v19, %v2065_v17  ;;  %v2233_v17 = vld [vmem:[%s3413_s6] sm:$0xff] }
0x224c   :  { %v2145_v2 = vor.u32 1.1754944e-38, %v2144_v61  ;;  %vm2143_vm13 = vcmp.eq.f32.partialorder %v2142_v62, 8.507059e+37 }
0x224d   :  { %v2067_v32 = vadd.f32 %v2540_v19, %v2066_v33 }
0x224f   :  { %v2071_v34 = vsel %vm2070_vm8, %v2540_v19, %v2067_v32  ;;  %v2236_v19 = vld [vmem:[%s3413_s6 + $0x18] sm:$0xff] }
0x2250   :  { %v2544_v49 = vpop.eup %2543  ;;  %v2076_v38 = vsel %vm2073_vm9, %v2075_v36, %v2071_v34  ;;  %2258 = vmatpush.msrb.mxu3 %v2236_v19 }
0x2251   :  { %v2134_v53 = vmul.f32 %v2544_v49, %v2132_v51  ;;  %vm2139_vm10 = vweird.f32 %v2544_v49  ;;  %v2089_v21 = vsub.f32 1.0, %v2076_v38  ;;  %v2095_v23 = vmul.f32 %v2076_v38, %v3363_v12 }
0x2252   :  { %vm2140_vm12 = vmor %vm2138_vm11, %vm2139_vm10  ;;  %2259 = vmatpush.msrb.mxu3 %v2235_v0 }
0x2253   :  { %v2135_v46 = vsub.f32 1.0, %v2134_v53 }
0x2254   :  { %2260 = vmatpush.msrb.mxu3 %v2234_v59 }
0x2255   :  { %v2136_v35 = vmul.f32 %v2544_v49, %v2135_v46 }
0x2256   :  { %2261 = vmatpush.msrb.mxu3 %v2233_v17 }
0x2257   :  { %v2137_v60 = vadd.f32 %v2544_v49, %v2136_v35 }
0x2259   :  { %v2141_v10 = vsel %vm2140_vm12, %v2544_v49, %v2137_v60  ;;  %v13_v49 = vstv %s3414_s7 }
0x225a   :  { %v2146_v55 = vsel %vm2143_vm13, %v2145_v2, %v2141_v10  ;;  %14 = vst [vmem:[#allocation2] sm:$0x1] %v13_v49 }
0x225b   :  { %v2159_v13 = vsub.f32 1.0, %v2146_v55  ;;  %v2165_v15 = vmul.f32 %v2146_v55, %v3358_v28 }
0x2261   :  { %v2362_v36 = vld [vmem:[#allocation2] ss:$0 sm:$0xff] }
0x228f   :  { %v2080_v37 = vpop.permute.xlu2 %2079 }
0x2290   :  { %v2082_v1 = vmul.f32 %v2080_v37, %v2076_v38 }
0x2292   :  { %2084 = vrot.lane.b32.xlu1 %v2082_v1, %s2576_s20 }
0x22a2   :  { %v2150_v3 = vpop.permute.xlu1 %2149 }
0x22a3   :  { %v2152_v58 = vmul.f32 %v2150_v3, %v2146_v55 }
0x22a5   :  { %2154 = vrot.lane.b32.xlu0 %v2152_v58, %s2576_s20 }
0x2304   :  { %v2085_v8 = vpop.permute.xlu1 %2084 }
0x2305   :  { %v2087_v63 = vadd.f32 %v2085_v8, %v2057_v54 }
0x2307   :  { %2545 = vtanh.f32 %v2087_v63 }
0x230d   :  { %v2546_v5 = vpop.eup %2545 }
0x230e   :  { %2091 = vrot.lane.b32.xlu0 %v2546_v5, %s2577_s21 }
0x2317   :  { %v2155_v11 = vpop.permute.xlu0 %2154 }
0x2318   :  { %v2157_v52 = vadd.f32 %v2155_v11, %v2128_v44 }
0x231a   :  { %2547 = vtanh.f32 %v2157_v52 }
0x2320   :  { %v2548_v6 = vpop.eup %2547 }
0x2321   :  { %2161 = vrot.lane.b32.xlu2 %v2548_v6, %s2577_s21 }
0x237b   :  { %v2162_v14 = vpop.permute.xlu2 %2161 }
0x237c   :  { %v2164_v16 = vmul.f32 %v2162_v14, %v2159_v13 }
0x237e   :  { %v2166_v7 = vadd.f32 %v2165_v15, %v2164_v16 }
0x2380   :  { %2168 = vrot.lane.b32.xlu1 %v2166_v7, %s2577_s21  ;;  %v2092_v20 = vpop.permute.xlu0 %2091 }
0x2381   :  { %v2094_v22 = vmul.f32 %v2092_v20, %v2089_v21 }
0x2383   :  { %v2096_v25 = vadd.f32 %v2095_v23, %v2094_v22 }
0x23f2   :  { %v2169_v26 = vpop.permute.xlu1 %2168 }
0x23f3   :  { %v2171_v27 = vsel %vm62_vm4, %v2169_v26, %v2096_v25 }
0x23f4   :  { %2348 = vmatmul.msk.f32.vlgmr.msrb.gmra.mxu1 %vm131_vm5, %v2171_v27 }
0x2471   :  { %v2192_v30 = vpop.f32.mrf.mxu1 }
0x2472   :  { %v2193_v31 = vadd.f32 %v3346_v56, %v2192_v30 }
0x2474   :  { %2215 = vrot.lane.b32.xlu2 %v2193_v31, %s2575_s19  ;;  %v2349_v28 = vmul.f32 -1.442695, %v2193_v31 }
0x2476   :  { %2549 = vpow2.f32 %v2349_v28 }
0x247c   :  { %v2550_v39 = vpop.eup %2549 }
0x247d   :  { %v2198_v42 = vadd.f32 1.0, %v2550_v39 }
0x247f   :  { %2551 = vrcp.f32 %v2198_v42  ;;  %v2210_v43 = vand.u32 2147483648, %v2198_v42  ;;  %vm2204_vm15 = vweird.f32 %v2198_v42  ;;  %v2208_v50 = vand.u32 2147483647, %v2198_v42 }
0x2481   :  { %v2211_v4 = vor.u32 1.1754944e-38, %v2210_v43  ;;  %vm2209_vm0 = vcmp.eq.f32.partialorder %v2208_v50, 8.507059e+37 }
0x2485   :  { %v2552_v45 = vpop.eup %2551 }
0x2486   :  { %v2200_v18 = vmul.f32 %v2552_v45, %v2198_v42  ;;  %vm2205_vm14 = vweird.f32 %v2552_v45 }
0x2487   :  { %vm2206_vm5 = vmor %vm2204_vm15, %vm2205_vm14 }
0x2488   :  { %v2201_v29 = vsub.f32 1.0, %v2200_v18 }
0x248a   :  { %v2202_v12 = vmul.f32 %v2552_v45, %v2201_v29 }
0x248c   :  { %v2203_v48 = vadd.f32 %v2552_v45, %v2202_v12 }
0x248e   :  { %v2207_v44 = vsel %vm2206_vm5, %v2552_v45, %v2203_v48 }
0x248f   :  { %v2212_v54 = vsel %vm2209_vm0, %v2211_v4, %v2207_v44 }
0x2490   :  { %v2225_v51 = vsub.f32 1.0, %v2212_v54  ;;  %v2231_v32 = vmul.f32 %v2212_v54, %v2096_v25 }
0x24ce   :  { %v2216_v56 = vpop.permute.xlu2 %2215 }
0x24cf   :  { %v2218_v41 = vmul.f32 %v2216_v56, %v2212_v54 }
0x24d1   :  { %2220 = vrot.lane.b32.xlu0 %v2218_v41, %s2576_s20 }
0x2543   :  { %v2221_v9 = vpop.permute.xlu0 %2220 }
0x2544   :  { %v2223_v24 = vadd.f32 %v2221_v9, %v2193_v31 }
0x2546   :  { %2553 = vtanh.f32 %v2223_v24 }
0x254c   :  { %v2554_v57 = vpop.eup %2553 }
0x254d   :  { %2227 = vrot.lane.b32.xlu1 %v2554_v57, %s2577_s21 }
0x25bf   :  { %v2228_v33 = vpop.permute.xlu1 %2227 }
0x25c0   :  { %v2230_v40 = vmul.f32 %v2228_v33, %v2225_v51 }
0x25c2   :  { %v2232_v47 = vadd.f32 %v2231_v32, %v2230_v40 }
0x25c4   :  { %2242 = vrot.lane.b32.xlu2 %v2232_v47, %s2577_s21 }
0x261e   :  { %v2243_v34 = vpop.permute.xlu2 %2242 }
0x261f   :  { %2350 = vmatmul.msk.f32.vlgmr.msrb.gmra.mxu3 %vm62_vm4, %v2243_v34 }
0x26a2   :  { %v2263_v37 = vpop.f32.mrf.mxu3 }
0x26a3   :  { %v2264_v38 = vadd.f32 %v2362_v36, %v2263_v37 }
0x26a5   :  { %2267 = vst.msk [vmem:[%s3415_s8] sm:$0xff] %vm2266_vm1, %v2264_v38 }

</bundles_post_ra>
